<compile_context>
chip_gen: v5e
topology: v5e:2x2
jax: 0.10.0
libtpu: 0.0.40
codegen_flags: <defaults>
</compile_context>

<pallas_src>
import functools

import jax
import jax.numpy as jnp
from jax import lax
from jax.experimental import pallas as pl
from jax.experimental.pallas import tpu as pltpu

_VMEM_LIMIT = 32 * 1024 * 1024  # safe on v5e/v6e/v7x scoped VMEM


# ----------------------------- Pallas kernels ------------------------------

def _matmul_t_bias_kernel(w_ref, x_ref, b_ref, o_ref, *, relu):
    # (Cout, K) @ (K, tn) -> (Cout, tn): output long axis on lanes.
    acc = jnp.dot(w_ref[...], x_ref[...], preferred_element_type=jnp.float32)
    acc = acc + b_ref[...]
    if relu:
        acc = jnp.maximum(acc, 0.0)
    o_ref[...] = acc


def _pick_tile(n, preferred=512):
    for t in (preferred, 256, 128):
        if n % t == 0:
            return t
    return n  # fall back to a single full block (still lane-dense)


def matmul_t_bias(wt, cols_t, bias_col, *, relu):
    """out^T = wt @ cols_t + bias.  wt:(Cout,K), cols_t:(K,N), bias:(Cout,1)."""
    cout, k = wt.shape
    k2, n = cols_t.shape
    assert k == k2
    tn = _pick_tile(n)
    return pl.pallas_call(
        functools.partial(_matmul_t_bias_kernel, relu=relu),
        out_shape=jax.ShapeDtypeStruct((cout, n), jnp.float32),
        grid=(n // tn,),
        in_specs=[
            pl.BlockSpec((cout, k), lambda i: (0, 0)),   # weights: resident
            pl.BlockSpec((k, tn), lambda i: (0, i)),     # pixel tile
            pl.BlockSpec((cout, 1), lambda i: (0, 0)),   # bias: resident
        ],
        out_specs=pl.BlockSpec((cout, tn), lambda i: (0, i)),
        compiler_params=pltpu.CompilerParams(
            dimension_semantics=("parallel",),
            vmem_limit_bytes=_VMEM_LIMIT),
    )(wt, cols_t, bias_col)


def _fc_block_kernel(x_ref, w1_ref, b1_ref, g1_ref, be1_ref,
                     w2_ref, b2_ref, g2_ref, be2_ref, o_ref, *, eps1, eps2):
    # Linear 1
    h = jnp.dot(x_ref[...], w1_ref[...], preferred_element_type=jnp.float32)
    h = h + b1_ref[...]
    # BatchNorm1d(32, eps=0.8), training mode (batch stats, biased variance)
    m1 = jnp.mean(h, axis=0, keepdims=True)
    v1 = jnp.mean((h - m1) ** 2, axis=0, keepdims=True)
    h = (h - m1) * lax.rsqrt(v1 + eps1)
    h = jnp.maximum(h * g1_ref[...] + be1_ref[...], 0.0)
    # Linear 2 -- the (B, 32) intermediate `h` stays in VMEM/vregs
    y = jnp.dot(h, w2_ref[...], preferred_element_type=jnp.float32)
    y = y + b2_ref[...]
    # BatchNorm1d(down_dim, eps=1e-5), training mode
    m2 = jnp.mean(y, axis=0, keepdims=True)
    v2 = jnp.mean((y - m2) ** 2, axis=0, keepdims=True)
    y = (y - m2) * lax.rsqrt(v2 + eps2)
    o_ref[...] = jnp.maximum(y * g2_ref[...] + be2_ref[...], 0.0)


def fc_block(x, w1, b1, g1, be1, w2, b2, g2, be2, *, eps1, eps2):
    """Fused Linear->BN->ReLU->Linear->BN->ReLU; whole problem in VMEM.

    NOTE: BN reduces over the batch axis, so the batch dimension must not be
    tiled here (it is not -- everything fits comfortably in VMEM: ~1.1 MiB).
    """
    B = x.shape[0]
    N = w2.shape[1]
    return pl.pallas_call(
        functools.partial(_fc_block_kernel, eps1=eps1, eps2=eps2),
        out_shape=jax.ShapeDtypeStruct((B, N), jnp.float32),
        compiler_params=pltpu.CompilerParams(vmem_limit_bytes=_VMEM_LIMIT),
    )(x, w1, b1, g1, be1, w2, b2, g2, be2)


# ------------------------------- JAX glue -----------------------------------

def im2col_t_nchw(x_nchw, ksize, stride, pad):
    """Transposed im2col: (ksize*ksize*C, B*Ho*Wo), row order (kh, kw, cin),
    column order (b, ho, wo)."""
    B, C, H, W = x_nchw.shape
    xp = jnp.pad(x_nchw, ((0, 0), (0, 0), (pad, pad), (pad, pad)))
    Ho = (H + 2 * pad - ksize) // stride + 1
    Wo = (W + 2 * pad - ksize) // stride + 1
    taps = []
    for kh in range(ksize):
        for kw in range(ksize):
            taps.append(xp[:, :, kh:kh + stride * Ho:stride,
                           kw:kw + stride * Wo:stride])
    t = jnp.stack(taps, axis=0)                 # (kk, B, C, Ho, Wo)
    t = jnp.transpose(t, (0, 2, 1, 3, 4))       # (kk, C, B, Ho, Wo)
    return t.reshape(ksize * ksize * C, B * Ho * Wo), Ho, Wo


# Row/col collapse maps for "nearest upsample x2 then 3x3 conv" expressed as a
# per-output-phase conv on the LOW-RES grid.  Indexed (phase, low_tap, kernel_row).
_PHASE_MAP = jnp.array(
    [[[1., 0., 0.], [0., 1., 1.], [0., 0., 0.]],   # output row parity 0
     [[0., 0., 0.], [1., 1., 0.], [0., 0., 1.]]],  # output row parity 1
    jnp.float32)


def prepare_params(params):
    """Hoist all weight/bias layout transforms out of the jitted forward."""
    co1, ci1, kh, kw = params["conv1_w"].shape
    conv1_wt = jnp.transpose(params["conv1_w"], (0, 2, 3, 1)).reshape(
        co1, kh * kw * ci1)                                     # (64, 9*C)

    co2, ci2, _, _ = params["conv2_w"].shape
    # Effective phase weights: W_eff[(ph,pw,co),(a,b,ci)]
    w2_eff = jnp.einsum("par,qbc,oirc->pqoabi",
                        _PHASE_MAP, _PHASE_MAP, params["conv2_w"])
    conv2_wt_eff = w2_eff.reshape(4 * co2, 9 * ci2)             # (4*C, 9*64)
    conv2_b_eff = jnp.tile(params["conv2_b"], 4).reshape(4 * co2, 1)

    return {
        "conv1_wt": conv1_wt,
        "conv1_b": params["conv1_b"].reshape(co1, 1),
        "fc1_w": params["fc1_w"],
        "fc1_b": params["fc1_b"].reshape(1, -1),
        "bn1_gamma": params["bn1_gamma"].reshape(1, -1),
        "bn1_beta": params["bn1_beta"].reshape(1, -1),
        "fc2_w": params["fc2_w"],
        "fc2_b": params["fc2_b"].reshape(1, -1),
        "bn2_gamma": params["bn2_gamma"].reshape(1, -1),
        "bn2_beta": params["bn2_beta"].reshape(1, -1),
        "conv2_wt_eff": conv2_wt_eff,
        "conv2_b_eff": conv2_b_eff,
    }


def init_params(key, channels, img_size):
    down_size = img_size // 2
    down_dim = 64 * down_size * down_size
    ks = jax.random.split(key, 8)

    def u(k, shape, fan_in):
        bound = 1.0 / jnp.sqrt(fan_in)
        return jax.random.uniform(k, shape, jnp.float32, -bound, bound)

    return {
        "conv1_w": u(ks[0], (64, channels, 3, 3), channels * 9),
        "conv1_b": u(ks[1], (64,), channels * 9),
        "fc1_w":   u(ks[2], (down_dim, 32), down_dim),   # stored (in, out)
        "fc1_b":   u(ks[3], (32,), down_dim),
        "bn1_gamma": jnp.ones((32,), jnp.float32),
        "bn1_beta":  jnp.zeros((32,), jnp.float32),
        "fc2_w":   u(ks[4], (32, down_dim), 32),
        "fc2_b":   u(ks[5], (down_dim,), 32),
        "bn2_gamma": jnp.ones((down_dim,), jnp.float32),
        "bn2_beta":  jnp.zeros((down_dim,), jnp.float32),
        "conv2_w": u(ks[6], (channels, 64, 3, 3), 64 * 9),
        "conv2_b": u(ks[7], (channels,), 64 * 9),
    }


def discriminator_forward(p, img_nchw):
    B, C, H, W = img_nchw.shape
    x = img_nchw.astype(jnp.float32)
    co1 = p["conv1_wt"].shape[0]           # 64

    # --- down: Conv2d(C, 64, 3, stride 2, pad 1) + ReLU, transposed matmul ---
    cols1_t, Ho, Wo = im2col_t_nchw(x, ksize=3, stride=2, pad=1)    # (9C, B*Ho*Wo)
    d_t = matmul_t_bias(p["conv1_wt"], cols1_t, p["conv1_b"], relu=True)  # (64, B*Ho*Wo)

    # Flatten exactly as PyTorch .view(B, -1) on NCHW: per batch order (C, H, W).
    flat = jnp.transpose(d_t.reshape(co1, B, Ho, Wo),
                         (1, 0, 2, 3)).reshape(B, co1 * Ho * Wo)

    # --- fc: Linear->BN(eps=0.8)->ReLU->Linear->BN->ReLU, one fused kernel ---
    h = fc_block(flat, p["fc1_w"], p["fc1_b"], p["bn1_gamma"], p["bn1_beta"],
                 p["fc2_w"], p["fc2_b"], p["bn2_gamma"], p["bn2_beta"],
                 eps1=0.8, eps2=1e-5)                               # (B, 64*Ho*Wo)

    # --- up: Upsample(x2, nearest) + Conv2d(64, C, 3, 1, 1) fused as a
    #     phase-weight matmul on the low-res grid (no upsampled tensor). ---
    low = h.reshape(B, co1, Ho, Wo)
    cols2_t, _, _ = im2col_t_nchw(low, ksize=3, stride=1, pad=1)    # (576, B*Ho*Wo)
    o_t = matmul_t_bias(p["conv2_wt_eff"], cols2_t, p["conv2_b_eff"],
                        relu=False)                                 # (4*C, B*Ho*Wo)

    # Pixel-shuffle the 4 output phases: rows are (ph, pw, co), cols (b, i, j).
    o = o_t.reshape(2, 2, C, B, Ho, Wo)
    o = jnp.transpose(o, (3, 2, 4, 0, 5, 1)).reshape(B, C, 2 * Ho, 2 * Wo)
    return o                                                        # NCHW


if __name__ == "__main__":
    CHANNELS = 4
    IMG_SIZE = 16
    BATCH = 2

    key = jax.random.PRNGKey(0)
    k_img, k_par = jax.random.split(key)
    img = jax.random.normal(k_img, (BATCH, CHANNELS, IMG_SIZE, IMG_SIZE),
                            dtype=jnp.float32)
    params = init_params(k_par, CHANNELS, IMG_SIZE)
    prepared = prepare_params(params)        # layout transforms hoisted off the hot path

    out = jax.jit(discriminator_forward)(prepared, img)
    jax.block_until_ready(out)
    assert out.shape == (BATCH, CHANNELS, IMG_SIZE, IMG_SIZE)
    assert out.dtype == jnp.float32
    print("KERNEL_OK")
</pallas_src>

<mosaic_0001>
module attributes {stable_mosaic.version = 11 : i64} {
  func.func @_matmul_t_bias_kernel(%arg0: i32, %arg1: memref<64x36xf32, #tpu.memory_space<vmem>>, %arg2: memref<36x128xf32, #tpu.memory_space<vmem>>, %arg3: memref<64x1xf32, #tpu.memory_space<vmem>>, %arg4: memref<64x128xf32, #tpu.memory_space<vmem>>) attributes {dimension_semantics = [#tpu.dimension_semantics<parallel>], iteration_bounds = array<i64: 1>, scalar_prefetch = 0 : i64, scratch_operands = 0 : i64, tpu.core_type = #tpu.core_type<tc>, window_params = [{pipeline_mode = #tpu.pipeline_mode<synchronous>, transform_indices = @transform_0, window_bounds = array<i64: 64, 36>}, {transform_indices = @transform_1, window_bounds = array<i64: 36, 128>}, {pipeline_mode = #tpu.pipeline_mode<synchronous>, transform_indices = @transform_2, window_bounds = array<i64: 64, 1>}, {transform_indices = @transform_3, window_bounds = array<i64: 64, 128>}]} {
    %c0 = arith.constant 0 : index
    %c0_0 = arith.constant 0 : index
    %0 = vector.load %arg1[%c0, %c0_0] : memref<64x36xf32, #tpu.memory_space<vmem>>, vector<64x36xf32>
    %c0_1 = arith.constant 0 : index
    %c0_2 = arith.constant 0 : index
    %1 = vector.load %arg2[%c0_1, %c0_2] : memref<36x128xf32, #tpu.memory_space<vmem>>, vector<36x128xf32>
    %cst = arith.constant dense<0.000000e+00> : vector<64x128xf32>
    %2 = tpu.matmul %0, %1, %cst {dimension_numbers = #tpu.dot_dimension_numbers<[1], [0], [0], [1], [0, 0, 1, 1], [], []>} : vector<64x36xf32>, vector<36x128xf32>, vector<64x128xf32> -> vector<64x128xf32>
    %c0_3 = arith.constant 0 : index
    %c0_4 = arith.constant 0 : index
    %3 = vector.load %arg3[%c0_3, %c0_4] : memref<64x1xf32, #tpu.memory_space<vmem>>, vector<64x1xf32>
    %4 = vector.broadcast %3 : vector<64x1xf32> to vector<64x128xf32>
    %5 = arith.addf %2, %4 : vector<64x128xf32>
    %cst_5 = arith.constant 0.000000e+00 : f32
    %6 = vector.broadcast %cst_5 : f32 to vector<64x128xf32>
    %7 = arith.maximumf %5, %6 : vector<64x128xf32>
    %c0_6 = arith.constant 0 : index
    %c0_7 = arith.constant 0 : index
    %8 = vector.load %arg4[%c0_6, %c0_7] : memref<64x128xf32, #tpu.memory_space<vmem>>, vector<64x128xf32>
    tpu.vector_store %arg4[%c0_6, %c0_7], %7 {strides = array<i32>} : memref<64x128xf32, #tpu.memory_space<vmem>>, vector<64x128xf32>,
    return
  }
  func.func @transform_0(%arg0: i32) -> (i32, i32) {
    %c0_i32 = arith.constant 0 : i32
    %c0_i32_0 = arith.constant 0 : i32
    %c0_i32_1 = arith.constant 0 : i32
    return %c0_i32, %c0_i32_0 : i32, i32
  }
  func.func @transform_1(%arg0: i32) -> (i32, i32) {
    %c0_i32 = arith.constant 0 : i32
    %c0_i32_0 = arith.constant 0 : i32
    return %c0_i32, %arg0 : i32, i32
  }
  func.func @transform_2(%arg0: i32) -> (i32, i32) {
    %c0_i32 = arith.constant 0 : i32
    %c0_i32_0 = arith.constant 0 : i32
    %c0_i32_1 = arith.constant 0 : i32
    return %c0_i32, %c0_i32_0 : i32, i32
  }
  func.func @transform_3(%arg0: i32) -> (i32, i32) {
    %c0_i32 = arith.constant 0 : i32
    %c0_i32_0 = arith.constant 0 : i32
    return %c0_i32, %arg0 : i32, i32
  }
}

module attributes {stable_mosaic.version = 11 : i64} {
  func.func @_fc_block_kernel(%arg0: memref<2x4096xf32, #tpu.memory_space<vmem>>, %arg1: memref<4096x32xf32, #tpu.memory_space<vmem>>, %arg2: memref<1x32xf32, #tpu.memory_space<vmem>>, %arg3: memref<1x32xf32, #tpu.memory_space<vmem>>, %arg4: memref<1x32xf32, #tpu.memory_space<vmem>>, %arg5: memref<32x4096xf32, #tpu.memory_space<vmem>>, %arg6: memref<1x4096xf32, #tpu.memory_space<vmem>>, %arg7: memref<1x4096xf32, #tpu.memory_space<vmem>>, %arg8: memref<1x4096xf32, #tpu.memory_space<vmem>>, %arg9: memref<2x4096xf32, #tpu.memory_space<vmem>>) attributes {dimension_semantics = [], scalar_prefetch = 0 : i64, scratch_operands = 0 : i64, tpu.core_type = #tpu.core_type<tc>} {
    %c0 = arith.constant 0 : index
    %c0_0 = arith.constant 0 : index
    %0 = vector.load %arg0[%c0, %c0_0] : memref<2x4096xf32, #tpu.memory_space<vmem>>, vector<2x4096xf32>
    %c0_1 = arith.constant 0 : index
    %c0_2 = arith.constant 0 : index
    %1 = vector.load %arg1[%c0_1, %c0_2] : memref<4096x32xf32, #tpu.memory_space<vmem>>, vector<4096x32xf32>
    %cst = arith.constant dense<0.000000e+00> : vector<2x32xf32>
    %2 = tpu.matmul %0, %1, %cst {dimension_numbers = #tpu.dot_dimension_numbers<[1], [0], [0], [1], [0, 0, 1, 1], [], []>} : vector<2x4096xf32>, vector<4096x32xf32>, vector<2x32xf32> -> vector<2x32xf32>
    %c0_3 = arith.constant 0 : index
    %c0_4 = arith.constant 0 : index
    %3 = vector.load %arg2[%c0_3, %c0_4] : memref<1x32xf32, #tpu.memory_space<vmem>>, vector<1x32xf32>
    %4 = vector.broadcast %3 : vector<1x32xf32> to vector<2x32xf32>
    %5 = arith.addf %2, %4 : vector<2x32xf32>
    %cst_5 = arith.constant dense<0.000000e+00> : vector<32xf32>
    %6 = vector.multi_reduction <add>, %5, %cst_5 [0] : vector<2x32xf32> to vector<32xf32>
    %7 = vector.shape_cast %6 : vector<32xf32> to vector<1x32xf32>
    %cst_6 = arith.constant 2.000000e+00 : f32
    %8 = vector.broadcast %cst_6 : f32 to vector<1x32xf32>
    %9 = arith.divf %7, %8 : vector<1x32xf32>
    %10 = vector.broadcast %9 : vector<1x32xf32> to vector<2x32xf32>
    %11 = arith.subf %5, %10 : vector<2x32xf32>
    %12 = arith.mulf %11, %11 : vector<2x32xf32>
    %cst_7 = arith.constant dense<0.000000e+00> : vector<32xf32>
    %13 = vector.multi_reduction <add>, %12, %cst_7 [0] : vector<2x32xf32> to vector<32xf32>
    %14 = vector.shape_cast %13 : vector<32xf32> to vector<1x32xf32>
    %cst_8 = arith.constant 2.000000e+00 : f32
    %15 = vector.broadcast %cst_8 : f32 to vector<1x32xf32>
    %16 = arith.divf %14, %15 : vector<1x32xf32>
    %17 = vector.broadcast %9 : vector<1x32xf32> to vector<2x32xf32>
    %18 = arith.subf %5, %17 : vector<2x32xf32>
    %cst_9 = arith.constant 8.000000e-01 : f32
    %19 = vector.broadcast %cst_9 : f32 to vector<1x32xf32>
    %20 = arith.addf %16, %19 : vector<1x32xf32>
    %21 = math.rsqrt %20 : vector<1x32xf32>
    %22 = vector.broadcast %21 : vector<1x32xf32> to vector<2x32xf32>
    %23 = arith.mulf %18, %22 : vector<2x32xf32>
    %c0_10 = arith.constant 0 : index
    %c0_11 = arith.constant 0 : index
    %24 = vector.load %arg3[%c0_10, %c0_11] : memref<1x32xf32, #tpu.memory_space<vmem>>, vector<1x32xf32>
    %25 = vector.broadcast %24 : vector<1x32xf32> to vector<2x32xf32>
    %26 = arith.mulf %23, %25 : vector<2x32xf32>
    %c0_12 = arith.constant 0 : index
    %c0_13 = arith.constant 0 : index
    %27 = vector.load %arg4[%c0_12, %c0_13] : memref<1x32xf32, #tpu.memory_space<vmem>>, vector<1x32xf32>
    %28 = vector.broadcast %27 : vector<1x32xf32> to vector<2x32xf32>
    %29 = arith.addf %26, %28 : vector<2x32xf32>
    %cst_14 = arith.constant 0.000000e+00 : f32
    %30 = vector.broadcast %cst_14 : f32 to vector<2x32xf32>
    %31 = arith.maximumf %29, %30 : vector<2x32xf32>
    %c0_15 = arith.constant 0 : index
    %c0_16 = arith.constant 0 : index
    %32 = vector.load %arg5[%c0_15, %c0_16] : memref<32x4096xf32, #tpu.memory_space<vmem>>, vector<32x4096xf32>
    %cst_17 = arith.constant dense<0.000000e+00> : vector<2x4096xf32>
    %33 = tpu.matmul %31, %32, %cst_17 {dimension_numbers = #tpu.dot_dimension_numbers<[1], [0], [0], [1], [0, 0, 1, 1], [], []>} : vector<2x32xf32>, vector<32x4096xf32>, vector<2x4096xf32> -> vector<2x4096xf32>
    %c0_18 = arith.constant 0 : index
    %c0_19 = arith.constant 0 : index
    %34 = vector.load %arg6[%c0_18, %c0_19] : memref<1x4096xf32, #tpu.memory_space<vmem>>, vector<1x4096xf32>
    %35 = vector.broadcast %34 : vector<1x4096xf32> to vector<2x4096xf32>
    %36 = arith.addf %33, %35 : vector<2x4096xf32>
    %cst_20 = arith.constant dense<0.000000e+00> : vector<4096xf32>
    %37 = vector.multi_reduction <add>, %36, %cst_20 [0] : vector<2x4096xf32> to vector<4096xf32>
    %38 = vector.shape_cast %37 : vector<4096xf32> to vector<1x4096xf32>
    %cst_21 = arith.constant 2.000000e+00 : f32
    %39 = vector.broadcast %cst_21 : f32 to vector<1x4096xf32>
    %40 = arith.divf %38, %39 : vector<1x4096xf32>
    %41 = vector.broadcast %40 : vector<1x4096xf32> to vector<2x4096xf32>
    %42 = arith.subf %36, %41 : vector<2x4096xf32>
    %43 = arith.mulf %42, %42 : vector<2x4096xf32>
    %cst_22 = arith.constant dense<0.000000e+00> : vector<4096xf32>
    %44 = vector.multi_reduction <add>, %43, %cst_22 [0] : vector<2x4096xf32> to vector<4096xf32>
    %45 = vector.shape_cast %44 : vector<4096xf32> to vector<1x4096xf32>
    %cst_23 = arith.constant 2.000000e+00 : f32
    %46 = vector.broadcast %cst_23 : f32 to vector<1x4096xf32>
    %47 = arith.divf %45, %46 : vector<1x4096xf32>
    %48 = vector.broadcast %40 : vector<1x4096xf32> to vector<2x4096xf32>
    %49 = arith.subf %36, %48 : vector<2x4096xf32>
    %cst_24 = arith.constant 9.99999974E-6 : f32
    %50 = vector.broadcast %cst_24 : f32 to vector<1x4096xf32>
    %51 = arith.addf %47, %50 : vector<1x4096xf32>
    %52 = math.rsqrt %51 : vector<1x4096xf32>
    %53 = vector.broadcast %52 : vector<1x4096xf32> to vector<2x4096xf32>
    %54 = arith.mulf %49, %53 : vector<2x4096xf32>
    %c0_25 = arith.constant 0 : index
    %c0_26 = arith.constant 0 : index
    %55 = vector.load %arg7[%c0_25, %c0_26] : memref<1x4096xf32, #tpu.memory_space<vmem>>, vector<1x4096xf32>
    %56 = vector.broadcast %55 : vector<1x4096xf32> to vector<2x4096xf32>
    %57 = arith.mulf %54, %56 : vector<2x4096xf32>
    %c0_27 = arith.constant 0 : index
    %c0_28 = arith.constant 0 : index
    %58 = vector.load %arg8[%c0_27, %c0_28] : memref<1x4096xf32, #tpu.memory_space<vmem>>, vector<1x4096xf32>
    %59 = vector.broadcast %58 : vector<1x4096xf32> to vector<2x4096xf32>
    %60 = arith.addf %57, %59 : vector<2x4096xf32>
    %cst_29 = arith.constant 0.000000e+00 : f32
    %61 = vector.broadcast %cst_29 : f32 to vector<2x4096xf32>
    %62 = arith.maximumf %60, %61 : vector<2x4096xf32>
    %c0_30 = arith.constant 0 : index
    %c0_31 = arith.constant 0 : index
    %63 = vector.load %arg9[%c0_30, %c0_31] : memref<2x4096xf32, #tpu.memory_space<vmem>>, vector<2x4096xf32>
    tpu.vector_store %arg9[%c0_30, %c0_31], %62 {strides = array<i32>} : memref<2x4096xf32, #tpu.memory_space<vmem>>, vector<2x4096xf32>,
    return
  }
}

module attributes {stable_mosaic.version = 11 : i64} {
  func.func @_matmul_t_bias_kernel(%arg0: i32, %arg1: memref<16x576xf32, #tpu.memory_space<vmem>>, %arg2: memref<576x128xf32, #tpu.memory_space<vmem>>, %arg3: memref<16x1xf32, #tpu.memory_space<vmem>>, %arg4: memref<16x128xf32, #tpu.memory_space<vmem>>) attributes {dimension_semantics = [#tpu.dimension_semantics<parallel>], iteration_bounds = array<i64: 1>, scalar_prefetch = 0 : i64, scratch_operands = 0 : i64, tpu.core_type = #tpu.core_type<tc>, window_params = [{pipeline_mode = #tpu.pipeline_mode<synchronous>, transform_indices = @transform_0, window_bounds = array<i64: 16, 576>}, {transform_indices = @transform_1, window_bounds = array<i64: 576, 128>}, {pipeline_mode = #tpu.pipeline_mode<synchronous>, transform_indices = @transform_2, window_bounds = array<i64: 16, 1>}, {transform_indices = @transform_3, window_bounds = array<i64: 16, 128>}]} {
    %c0 = arith.constant 0 : index
    %c0_0 = arith.constant 0 : index
    %0 = vector.load %arg1[%c0, %c0_0] : memref<16x576xf32, #tpu.memory_space<vmem>>, vector<16x576xf32>
    %c0_1 = arith.constant 0 : index
    %c0_2 = arith.constant 0 : index
    %1 = vector.load %arg2[%c0_1, %c0_2] : memref<576x128xf32, #tpu.memory_space<vmem>>, vector<576x128xf32>
    %cst = arith.constant dense<0.000000e+00> : vector<16x128xf32>
    %2 = tpu.matmul %0, %1, %cst {dimension_numbers = #tpu.dot_dimension_numbers<[1], [0], [0], [1], [0, 0, 1, 1], [], []>} : vector<16x576xf32>, vector<576x128xf32>, vector<16x128xf32> -> vector<16x128xf32>
    %c0_3 = arith.constant 0 : index
    %c0_4 = arith.constant 0 : index
    %3 = vector.load %arg3[%c0_3, %c0_4] : memref<16x1xf32, #tpu.memory_space<vmem>>, vector<16x1xf32>
    %4 = vector.broadcast %3 : vector<16x1xf32> to vector<16x128xf32>
    %5 = arith.addf %2, %4 : vector<16x128xf32>
    %c0_5 = arith.constant 0 : index
    %c0_6 = arith.constant 0 : index
    %6 = vector.load %arg4[%c0_5, %c0_6] : memref<16x128xf32, #tpu.memory_space<vmem>>, vector<16x128xf32>
    tpu.vector_store %arg4[%c0_5, %c0_6], %5 {strides = array<i32>} : memref<16x128xf32, #tpu.memory_space<vmem>>, vector<16x128xf32>,
    return
  }
  func.func @transform_0(%arg0: i32) -> (i32, i32) {
    %c0_i32 = arith.constant 0 : i32
    %c0_i32_0 = arith.constant 0 : i32
    %c0_i32_1 = arith.constant 0 : i32
    return %c0_i32, %c0_i32_0 : i32, i32
  }
  func.func @transform_1(%arg0: i32) -> (i32, i32) {
    %c0_i32 = arith.constant 0 : i32
    %c0_i32_0 = arith.constant 0 : i32
    return %c0_i32, %arg0 : i32, i32
  }
  func.func @transform_2(%arg0: i32) -> (i32, i32) {
    %c0_i32 = arith.constant 0 : i32
    %c0_i32_0 = arith.constant 0 : i32
    %c0_i32_1 = arith.constant 0 : i32
    return %c0_i32, %c0_i32_0 : i32, i32
  }
  func.func @transform_3(%arg0: i32) -> (i32, i32) {
    %c0_i32 = arith.constant 0 : i32
    %c0_i32_0 = arith.constant 0 : i32
    return %c0_i32, %arg0 : i32, i32
  }
}

</mosaic_0001>

<bundles_post_ra>
// kernel: discriminator_forward.3
= control target key start
LH: loop header
LB: loop body
LE: loop exit
PB: predicated region body
PF: predicated region fallthrough
CT: control target
= control target key end

     0   :  { %vm100_vm0 = vcmask 1043456   ;;  %v193_v1 = vmov 0   ;;  %vm75_vm1 = vcmask 293888   ;;  %s309_s1 = inlined_call_operand.vmem [shape: f32[36,128], index: 1, kind: input, shape index: {}]   ;;  %s310_s2 = inlined_call_operand.vmem [shape: f32[64,1], index: 2, kind: input, shape index: {}]   ;;  %s311_s0 = inlined_call_operand.vmem [shape: f32[64,36], index: 0, kind: input, shape index: {}]   ;;  %s312_s3 = inlined_call_operand.vmem [shape: f32[64,128], index: 3, kind: output, shape index: {}]  }
   0x1   :  { %v26_v0 = vld [vmem:[%s309_s1 + $0x20] sm:$0xf]  ;;  %191 = vset.pattern.permute.xlu1 %v193_v1  ;;  %190 = vset.pattern.permute.xlu0 %v193_v1  ;;  %v29_v2 = vld [vmem:[%s310_s2 + $0x10] sm:$0xff]  ;;  %v25_v4 = vld [vmem:[%s309_s1 + $0x18] sm:$0xff] }
   0x2   :  { %v27_v3 = vld [vmem:[%s310_s2] sm:$0xff]  ;;  %165 = vmatpush.msk.msra.mxu0 %vm100_vm0, %v26_v0  ;;  %174 = vmatpush.msk.msra.mxu1 %vm100_vm0, %v26_v0  ;;  %v24_v5 = vld [vmem:[%s309_s1 + $0x10] sm:$0xff]  ;;  %v23_v6 = vld [vmem:[%s309_s1 + $0x8] sm:$0xff] }
   0x3   :  { %175 = vmatpush.msk.msra.mxu2 %vm100_vm0, %v26_v0  ;;  %176 = vmatpush.msk.msra.mxu3 %vm100_vm0, %v26_v0  ;;  %v22_v7 = vld [vmem:[%s309_s1] sm:$0xff]  ;;  %v16_v9 = vld [vmem:[%s311_s0 + $0x10] sm:$0xff]  ;;  %v30_v12 = vld [vmem:[%s310_s2 + $0x18] sm:$0xff] }
   0x4   :  { %47 = vperm.xlu1 %191, %v29_v2   ;;  %37 = vperm.xlu0 %190, %v27_v3   ;;  %v14_v8 = vld [vmem:[%s311_s0] sm:$0xff]  ;;  %v20_v11 = vld [vmem:[%s311_s0 + $0x30] sm:$0xff]  ;;  %v28_v13 = vld [vmem:[%s310_s2 + $0x8] sm:$0xff] }
   0x5   :  { %116 = vmatpush.msra.mxu0 %v25_v4  ;;  %177 = vmatpush.msra.mxu1 %v25_v4  ;;  %v18_v10 = vld [vmem:[%s311_s0 + $0x20] sm:$0xff]  ;;  %v15_v15 = vld [vmem:[%s311_s0 + $0x8] sm:$0xff]  ;;  %v17_v16 = vld [vmem:[%s311_s0 + $0x18] sm:$0xff] }
   0x6   :  { %178 = vmatpush.msra.mxu2 %v25_v4  ;;  %179 = vmatpush.msra.mxu3 %v25_v4  ;;  %v31_v14 = vld [vmem:[%s310_s2 + $0x20] sm:$0xff]  ;;  %v19_v17 = vld [vmem:[%s311_s0 + $0x28] sm:$0xff]  ;;  %v21_v18 = vld [vmem:[%s311_s0 + $0x38] sm:$0xff] }
   0x7   :  { %117 = vmatpush.msra.mxu0 %v24_v5  ;;  %180 = vmatpush.msra.mxu1 %v24_v5  ;;  %v34_v19 = vld [vmem:[%s310_s2 + $0x38] sm:$0xff]  ;;  %v33_v20 = vld [vmem:[%s310_s2 + $0x30] sm:$0xff]  ;;  %v32_v21 = vld [vmem:[%s310_s2 + $0x28] sm:$0xff] }
   0x8   :  { %181 = vmatpush.msra.mxu2 %v24_v5  ;;  %182 = vmatpush.msra.mxu3 %v24_v5 }
   0x9   :  { %118 = vmatpush.msra.mxu0 %v23_v6  ;;  %183 = vmatpush.msra.mxu1 %v23_v6 }
   0xa   :  { %184 = vmatpush.msra.mxu2 %v23_v6  ;;  %185 = vmatpush.msra.mxu3 %v23_v6 }
   0xb   :  { %119 = vmatpush.msra.mxu0 %v22_v7  ;;  %186 = vmatpush.msra.mxu1 %v22_v7 }
   0xc   :  { %187 = vmatpush.msra.mxu2 %v22_v7  ;;  %188 = vmatpush.msra.mxu3 %v22_v7 }
   0xd   :  { %166 = vmatmul.msk.f32.vlgmr.msra.gmra.mxu0 %vm75_vm1, %v14_v8  ;;  %168 = vmatmul.msk.f32.vlgmr.msra.gmra.mxu1 %vm75_vm1, %v16_v9 }
   0xe   :  { %170 = vmatmul.msk.f32.vlgmr.msra.gmra.mxu2 %vm75_vm1, %v18_v10  ;;  %172 = vmatmul.msk.f32.vlgmr.msra.gmra.mxu3 %vm75_vm1, %v20_v11 }
   0xf   :  { %52 = vperm.xlu1 %191, %v30_v12   ;;  %42 = vperm.xlu0 %190, %v28_v13  }
  0x10   :  { %192 = vset.pattern.permute.xlu2 %v193_v1 }
  0x11   :  { %57 = vperm.xlu2 %192, %v31_v14  }
  0x15   :  { %167 = vmatmul.msk.f32.gmra.mxu0 %vm75_vm1, %v15_v15  ;;  %169 = vmatmul.msk.f32.gmra.mxu1 %vm75_vm1, %v17_v16 }
  0x16   :  { %171 = vmatmul.msk.f32.gmra.mxu2 %vm75_vm1, %v19_v17  ;;  %173 = vmatmul.msk.f32.gmra.mxu3 %vm75_vm1, %v21_v18 }
  0x17   :  { %72 = vperm.xlu1 %191, %v34_v19   ;;  %67 = vperm.xlu0 %190, %v33_v20  }
  0x19   :  { %62 = vperm.xlu2 %192, %v32_v21  }
  0x6b   :  { %v58_v32 = vpop.permute.xlu2 %57 }
  0x73   :  { %v63_v47 = vpop.permute.xlu2 %62 }
  0x76   :  { %v38_v22 = vpop.permute.xlu0 %37  ;;  %v48_v23 = vpop.permute.xlu1 %47 }
  0x81   :  { %v43_v24 = vpop.permute.xlu0 %42  ;;  %v53_v31 = vpop.permute.xlu1 %52 }
  0x89   :  { %v68_v33 = vpop.permute.xlu0 %67  ;;  %v73_v46 = vpop.permute.xlu1 %72 }
  0x8a   :  { %v121_v25 = vpop.f32.mrf.mxu0  ;;  %v127_v26 = vpop.f32.mrf.mxu1 }
  0x8b   :  { %v122_v27 = vadd.f32 %v121_v25, %v38_v22  ;;  %v128_v28 = vadd.f32 %v127_v26, %v48_v23 }
  0x8d   :  { %v145_v29 = vmax.f32 %v122_v27, 0.0  ;;  %v147_v30 = vmax.f32 %v128_v28, 0.0 }
  0x8f   :  { %153 = vst [vmem:[%s312_s3] sm:$0xff] %v145_v29 }
  0x90   :  { %155 = vst [vmem:[%s312_s3 + $0x10] sm:$0xff] %v147_v30 }
  0x91   :  { %v133_v34 = vpop.f32.mrf.mxu2  ;;  %v139_v35 = vpop.f32.mrf.mxu3 }
  0x92   :  { %v134_v36 = vadd.f32 %v133_v34, %v58_v32  ;;  %v140_v37 = vadd.f32 %v139_v35, %v68_v33  ;;  %v124_v38 = vpop.f32.mrf.mxu0  ;;  %v130_v39 = vpop.f32.mrf.mxu1 }
  0x93   :  { %v125_v40 = vadd.f32 %v124_v38, %v43_v24  ;;  %v131_v41 = vadd.f32 %v130_v39, %v53_v31 }
  0x94   :  { %v149_v42 = vmax.f32 %v134_v36, 0.0  ;;  %v151_v43 = vmax.f32 %v140_v37, 0.0 }
  0x95   :  { %v146_v44 = vmax.f32 %v125_v40, 0.0  ;;  %v148_v45 = vmax.f32 %v131_v41, 0.0 }
  0x96   :  { %157 = vst [vmem:[%s312_s3 + $0x20] sm:$0xff] %v149_v42 }
  0x97   :  { %159 = vst [vmem:[%s312_s3 + $0x30] sm:$0xff] %v151_v43 }
  0x98   :  { %154 = vst [vmem:[%s312_s3 + $0x8] sm:$0xff] %v146_v44 }
  0x99   :  { %156 = vst [vmem:[%s312_s3 + $0x18] sm:$0xff] %v148_v45  ;;  %v136_v48 = vpop.f32.mrf.mxu2  ;;  %v142_v49 = vpop.f32.mrf.mxu3 }
  0x9a   :  { %v137_v50 = vadd.f32 %v136_v48, %v63_v47  ;;  %v143_v51 = vadd.f32 %v142_v49, %v73_v46 }
  0x9c   :  { %v150_v52 = vmax.f32 %v137_v50, 0.0  ;;  %v152_v53 = vmax.f32 %v143_v51, 0.0 }
  0x9e   :  { %158 = vst [vmem:[%s312_s3 + $0x28] sm:$0xff] %v150_v52 }
  0x9f   :  { %160 = vst [vmem:[%s312_s3 + $0x38] sm:$0xff] %v152_v53 }

// kernel: discriminator_forward.4
= control target key start
LH: loop header
LB: loop body
LE: loop exit
PB: predicated region body
PF: predicated region fallthrough
CT: control target
= control target key end

     0   :  { %vm1277_vm0 = vcmask 254976   ;;  %vm1526_vm5 = vcmask 261120   ;;  %vm2170_vm6 = vcmask 1041408   ;;  %s6750_s1 = inlined_call_operand.vmem [shape: f32[4096,32], index: 1, kind: input, shape index: {}]   ;;  %s6751_s0 = inlined_call_operand.vmem [shape: f32[2,4096], index: 0, kind: input, shape index: {}]   ;;  %s6752_s2 = inlined_call_operand.vmem [shape: f32[1,32], index: 2, kind: input, shape index: {}]   ;;  %s6753_s3 = inlined_call_operand.vmem [shape: f32[1,32], index: 3, kind: input, shape index: {}]   ;;  %s6754_s4 = inlined_call_operand.vmem [shape: f32[1,32], index: 4, kind: input, shape index: {}]   ;;  %s6755_s5 = inlined_call_operand.vmem [shape: f32[32,4096], index: 5, kind: input, shape index: {}]   ;;  %s6756_s6 = inlined_call_operand.vmem [shape: f32[1,4096], index: 6, kind: input, shape index: {}]   ;;  %s6757_s7 = inlined_call_operand.vmem [shape: f32[1,4096], index: 7, kind: input, shape index: {}]   ;;  %s6758_s8 = inlined_call_operand.vmem [shape: f32[1,4096], index: 8, kind: input, shape index: {}]   ;;  %s6759_s9 = inlined_call_operand.vmem [shape: f32[2,4096], index: 9, kind: output, shape index: {}]  }
   0x1   :  { %v55_v0 = vld [vmem:[%s6750_s1 + $0x78] sm:$0xff]  ;;  %v54_v2 = vld [vmem:[%s6750_s1 + $0x70] sm:$0xff]  ;;  %v53_v6 = vld [vmem:[%s6750_s1 + $0x68] sm:$0xff] }
   0x2   :  { %v87_v1 = vld [vmem:[%s6750_s1 + $0x178] sm:$0xff]  ;;  %637 = vmatpush.msra.mxu0 %v55_v0  ;;  %v86_v4 = vld [vmem:[%s6750_s1 + $0x170] sm:$0xff]  ;;  %v85_v8 = vld [vmem:[%s6750_s1 + $0x168] sm:$0xff] }
   0x3   :  { %677 = vmatpush.msra.mxu2 %v87_v1  ;;  %v71_v3 = vld [vmem:[%s6750_s1 + $0xf8] sm:$0xff]  ;;  %v70_v7 = vld [vmem:[%s6750_s1 + $0xf0] sm:$0xff]  ;;  %v69_v10 = vld [vmem:[%s6750_s1 + $0xe8] sm:$0xff] }
   0x4   :  { %v103_v5 = vld [vmem:[%s6750_s1 + $0x1f8] sm:$0xff]  ;;  %657 = vmatpush.msra.mxu1 %v71_v3  ;;  %638 = vmatpush.msra.mxu0 %v54_v2  ;;  %v102_v9 = vld [vmem:[%s6750_s1 + $0x1f0] sm:$0xff]  ;;  %v52_v11 = vld [vmem:[%s6750_s1 + $0x60] sm:$0xff] }
   0x5   :  { %697 = vmatpush.msra.mxu3 %v103_v5  ;;  %678 = vmatpush.msra.mxu2 %v86_v4  ;;  %v84_v12 = vld [vmem:[%s6750_s1 + $0x160] sm:$0xff]  ;;  %v101_v13 = vld [vmem:[%s6750_s1 + $0x1e8] sm:$0xff]  ;;  %v51_v16 = vld [vmem:[%s6750_s1 + $0x58] sm:$0xff] }
   0x6   :  { %658 = vmatpush.msra.mxu1 %v70_v7  ;;  %639 = vmatpush.msra.mxu0 %v53_v6  ;;  %v68_v14 = vld [vmem:[%s6750_s1 + $0xe0] sm:$0xff]  ;;  %v83_v17 = vld [vmem:[%s6750_s1 + $0x158] sm:$0xff]  ;;  %v50_v20 = vld [vmem:[%s6750_s1 + $0x50] sm:$0xff] }
   0x7   :  { %698 = vmatpush.msra.mxu3 %v102_v9  ;;  %679 = vmatpush.msra.mxu2 %v85_v8  ;;  %v100_v15 = vld [vmem:[%s6750_s1 + $0x1e0] sm:$0xff]  ;;  %v67_v18 = vld [vmem:[%s6750_s1 + $0xd8] sm:$0xff]  ;;  %v82_v21 = vld [vmem:[%s6750_s1 + $0x150] sm:$0xff] }
   0x8   :  { %659 = vmatpush.msra.mxu1 %v69_v10  ;;  %640 = vmatpush.msra.mxu0 %v52_v11  ;;  %v99_v19 = vld [vmem:[%s6750_s1 + $0x1d8] sm:$0xff]  ;;  %v66_v22 = vld [vmem:[%s6750_s1 + $0xd0] sm:$0xff]  ;;  %v49_v24 = vld [vmem:[%s6750_s1 + $0x48] sm:$0xff] }
   0x9   :  { %699 = vmatpush.msra.mxu3 %v101_v13  ;;  %680 = vmatpush.msra.mxu2 %v84_v12  ;;  %v98_v23 = vld [vmem:[%s6750_s1 + $0x1d0] sm:$0xff]  ;;  %v81_v25 = vld [vmem:[%s6750_s1 + $0x148] sm:$0xff]  ;;  %v48_v28 = vld [vmem:[%s6750_s1 + $0x40] sm:$0xff] }
   0xa   :  { %660 = vmatpush.msra.mxu1 %v68_v14  ;;  %641 = vmatpush.msra.mxu0 %v51_v16  ;;  %v65_v26 = vld [vmem:[%s6750_s1 + $0xc8] sm:$0xff]  ;;  %v80_v29 = vld [vmem:[%s6750_s1 + $0x140] sm:$0xff]  ;;  %v47_v32 = vld [vmem:[%s6750_s1 + $0x38] sm:$0xff] }
   0xb   :  { %700 = vmatpush.msra.mxu3 %v100_v15  ;;  %681 = vmatpush.msra.mxu2 %v83_v17  ;;  %v97_v27 = vld [vmem:[%s6750_s1 + $0x1c8] sm:$0xff]  ;;  %v64_v30 = vld [vmem:[%s6750_s1 + $0xc0] sm:$0xff]  ;;  %v79_v33 = vld [vmem:[%s6750_s1 + $0x138] sm:$0xff] }
   0xc   :  { %661 = vmatpush.msra.mxu1 %v67_v18  ;;  %642 = vmatpush.msra.mxu0 %v50_v20  ;;  %v96_v31 = vld [vmem:[%s6750_s1 + $0x1c0] sm:$0xff]  ;;  %v63_v34 = vld [vmem:[%s6750_s1 + $0xb8] sm:$0xff]  ;;  %v46_v36 = vld [vmem:[%s6750_s1 + $0x30] sm:$0xff] }
   0xd   :  { %701 = vmatpush.msra.mxu3 %v99_v19  ;;  %682 = vmatpush.msra.mxu2 %v82_v21  ;;  %v95_v35 = vld [vmem:[%s6750_s1 + $0x1b8] sm:$0xff]  ;;  %v78_v37 = vld [vmem:[%s6750_s1 + $0x130] sm:$0xff]  ;;  %v45_v40 = vld [vmem:[%s6750_s1 + $0x28] sm:$0xff] }
   0xe   :  { %662 = vmatpush.msra.mxu1 %v66_v22  ;;  %643 = vmatpush.msra.mxu0 %v49_v24  ;;  %v62_v38 = vld [vmem:[%s6750_s1 + $0xb0] sm:$0xff]  ;;  %v77_v41 = vld [vmem:[%s6750_s1 + $0x128] sm:$0xff]  ;;  %v44_v44 = vld [vmem:[%s6750_s1 + $0x20] sm:$0xff] }
   0xf   :  { %702 = vmatpush.msra.mxu3 %v98_v23  ;;  %683 = vmatpush.msra.mxu2 %v81_v25  ;;  %v94_v39 = vld [vmem:[%s6750_s1 + $0x1b0] sm:$0xff]  ;;  %v61_v42 = vld [vmem:[%s6750_s1 + $0xa8] sm:$0xff]  ;;  %v76_v45 = vld [vmem:[%s6750_s1 + $0x120] sm:$0xff] }
  0x10   :  { %663 = vmatpush.msra.mxu1 %v65_v26  ;;  %644 = vmatpush.msra.mxu0 %v48_v28  ;;  %v93_v43 = vld [vmem:[%s6750_s1 + $0x1a8] sm:$0xff]  ;;  %v60_v46 = vld [vmem:[%s6750_s1 + $0xa0] sm:$0xff]  ;;  %v43_v48 = vld [vmem:[%s6750_s1 + $0x18] sm:$0xff] }
  0x11   :  { %703 = vmatpush.msra.mxu3 %v97_v27  ;;  %684 = vmatpush.msra.mxu2 %v80_v29  ;;  %v92_v47 = vld [vmem:[%s6750_s1 + $0x1a0] sm:$0xff]  ;;  %v75_v49 = vld [vmem:[%s6750_s1 + $0x118] sm:$0xff]  ;;  %v42_v52 = vld [vmem:[%s6750_s1 + $0x10] sm:$0xff] }
  0x12   :  { %664 = vmatpush.msra.mxu1 %v64_v30  ;;  %645 = vmatpush.msra.mxu0 %v47_v32  ;;  %v59_v50 = vld [vmem:[%s6750_s1 + $0x98] sm:$0xff]  ;;  %v74_v53 = vld [vmem:[%s6750_s1 + $0x110] sm:$0xff]  ;;  %v41_v56 = vld [vmem:[%s6750_s1 + $0x8] sm:$0xff] }
  0x13   :  { %704 = vmatpush.msra.mxu3 %v96_v31  ;;  %685 = vmatpush.msra.mxu2 %v79_v33  ;;  %v91_v51 = vld [vmem:[%s6750_s1 + $0x198] sm:$0xff]  ;;  %v58_v54 = vld [vmem:[%s6750_s1 + $0x90] sm:$0xff]  ;;  %v73_v57 = vld [vmem:[%s6750_s1 + $0x108] sm:$0xff] }
  0x14   :  { %665 = vmatpush.msra.mxu1 %v63_v34  ;;  %646 = vmatpush.msra.mxu0 %v46_v36  ;;  %v90_v55 = vld [vmem:[%s6750_s1 + $0x190] sm:$0xff]  ;;  %v57_v58 = vld [vmem:[%s6750_s1 + $0x88] sm:$0xff]  ;;  %v40_v60 = vld [vmem:[%s6750_s1] sm:$0xff] }
  0x15   :  { %705 = vmatpush.msra.mxu3 %v95_v35  ;;  %686 = vmatpush.msra.mxu2 %v78_v37  ;;  %v89_v59 = vld [vmem:[%s6750_s1 + $0x188] sm:$0xff]  ;;  %v72_v61 = vld [vmem:[%s6750_s1 + $0x100] sm:$0xff]  ;;  %v119_v62 = vld [vmem:[%s6750_s1 + $0x278] sm:$0xff] }
  0x16   :  { %666 = vmatpush.msra.mxu1 %v62_v38  ;;  %647 = vmatpush.msra.mxu0 %v45_v40  ;;  %v151_v63 = vld [vmem:[%s6750_s1 + $0x378] sm:$0xff]  ;;  %v56_v0 = vld [vmem:[%s6750_s1 + $0x80] sm:$0xff]  ;;  %v118_v2 = vld [vmem:[%s6750_s1 + $0x270] sm:$0xff] }
  0x17   :  { %706 = vmatpush.msra.mxu3 %v94_v39  ;;  %687 = vmatpush.msra.mxu2 %v77_v41  ;;  %v88_v1 = vld [vmem:[%s6750_s1 + $0x180] sm:$0xff]  ;;  %v135_v3 = vld [vmem:[%s6750_s1 + $0x2f8] sm:$0xff]  ;;  %v150_v4 = vld [vmem:[%s6750_s1 + $0x370] sm:$0xff] }
  0x18   :  { %667 = vmatpush.msra.mxu1 %v61_v42  ;;  %648 = vmatpush.msra.mxu0 %v44_v44  ;;  %v167_v5 = vld [vmem:[%s6750_s1 + $0x3f8] sm:$0xff]  ;;  %v117_v6 = vld [vmem:[%s6750_s1 + $0x268] sm:$0xff]  ;;  %v134_v7 = vld [vmem:[%s6750_s1 + $0x2f0] sm:$0xff] }
  0x19   :  { %707 = vmatpush.msra.mxu3 %v93_v43  ;;  %688 = vmatpush.msra.mxu2 %v76_v45  ;;  %v149_v8 = vld [vmem:[%s6750_s1 + $0x368] sm:$0xff]  ;;  %v166_v9 = vld [vmem:[%s6750_s1 + $0x3f0] sm:$0xff]  ;;  %v116_v10 = vld [vmem:[%s6750_s1 + $0x260] sm:$0xff] }
  0x1a   :  { %668 = vmatpush.msra.mxu1 %v60_v46  ;;  %649 = vmatpush.msra.mxu0 %v43_v48  ;;  %v133_v11 = vld [vmem:[%s6750_s1 + $0x2e8] sm:$0xff]  ;;  %v148_v12 = vld [vmem:[%s6750_s1 + $0x360] sm:$0xff]  ;;  %v115_v14 = vld [vmem:[%s6750_s1 + $0x258] sm:$0xff] }
  0x1b   :  { %708 = vmatpush.msra.mxu3 %v92_v47  ;;  %689 = vmatpush.msra.mxu2 %v75_v49  ;;  %v165_v13 = vld [vmem:[%s6750_s1 + $0x3e8] sm:$0xff]  ;;  %v132_v15 = vld [vmem:[%s6750_s1 + $0x2e0] sm:$0xff]  ;;  %v147_v16 = vld [vmem:[%s6750_s1 + $0x358] sm:$0xff] }
  0x1c   :  { %669 = vmatpush.msra.mxu1 %v59_v50  ;;  %650 = vmatpush.msra.mxu0 %v42_v52  ;;  %v164_v17 = vld [vmem:[%s6750_s1 + $0x3e0] sm:$0xff]  ;;  %v114_v18 = vld [vmem:[%s6750_s1 + $0x250] sm:$0xff]  ;;  %v131_v19 = vld [vmem:[%s6750_s1 + $0x2d8] sm:$0xff] }
  0x1d   :  { %709 = vmatpush.msra.mxu3 %v91_v51  ;;  %690 = vmatpush.msra.mxu2 %v74_v53  ;;  %v146_v20 = vld [vmem:[%s6750_s1 + $0x350] sm:$0xff]  ;;  %v163_v21 = vld [vmem:[%s6750_s1 + $0x3d8] sm:$0xff]  ;;  %v113_v22 = vld [vmem:[%s6750_s1 + $0x248] sm:$0xff] }
  0x1e   :  { %670 = vmatpush.msra.mxu1 %v58_v54  ;;  %651 = vmatpush.msra.mxu0 %v41_v56  ;;  %v130_v23 = vld [vmem:[%s6750_s1 + $0x2d0] sm:$0xff]  ;;  %v145_v24 = vld [vmem:[%s6750_s1 + $0x348] sm:$0xff]  ;;  %v32_v26 = vld [vmem:[%s6751_s0] sm:$0xff] }
  0x1f   :  { %710 = vmatpush.msra.mxu3 %v90_v55  ;;  %691 = vmatpush.msra.mxu2 %v73_v57  ;;  %v162_v25 = vld [vmem:[%s6750_s1 + $0x3d0] sm:$0xff]  ;;  %v112_v27 = vld [vmem:[%s6750_s1 + $0x240] sm:$0xff]  ;;  %v129_v28 = vld [vmem:[%s6750_s1 + $0x2c8] sm:$0xff]  ;;  %564 = vst [vmem:[#allocation1] ss:$4 sm:$0xff] %v32_v26 }
  0x20   :  { %671 = vmatpush.msra.mxu1 %v57_v58  ;;  %652 = vmatpush.msra.mxu0 %v40_v60  ;;  %v144_v29 = vld [vmem:[%s6750_s1 + $0x340] sm:$0xff]  ;;  %v161_v30 = vld [vmem:[%s6750_s1 + $0x3c8] sm:$0xff]  ;;  %v111_v31 = vld [vmem:[%s6750_s1 + $0x238] sm:$0xff] }
  0x21   :  { %711 = vmatpush.msra.mxu3 %v89_v59  ;;  %692 = vmatpush.msra.mxu2 %v72_v61  ;;  %v128_v32 = vld [vmem:[%s6750_s1 + $0x2c0] sm:$0xff]  ;;  %v143_v33 = vld [vmem:[%s6750_s1 + $0x338] sm:$0xff]  ;;  %v110_v35 = vld [vmem:[%s6750_s1 + $0x230] sm:$0xff] }
  0x22   :  { %717 = vmatpush.msrb.mxu0 %v119_v62  ;;  %672 = vmatpush.msra.mxu1 %v56_v0  ;;  %v160_v34 = vld [vmem:[%s6750_s1 + $0x3c0] sm:$0xff]  ;;  %v127_v36 = vld [vmem:[%s6750_s1 + $0x2b8] sm:$0xff]  ;;  %v142_v37 = vld [vmem:[%s6750_s1 + $0x330] sm:$0xff] }
  0x23   :  { %757 = vmatpush.msrb.mxu2 %v151_v63  ;;  %712 = vmatpush.msra.mxu3 %v88_v1  ;;  %v159_v38 = vld [vmem:[%s6750_s1 + $0x3b8] sm:$0xff]  ;;  %v109_v39 = vld [vmem:[%s6750_s1 + $0x228] sm:$0xff]  ;;  %v126_v40 = vld [vmem:[%s6750_s1 + $0x2b0] sm:$0xff] }
  0x24   :  { %718 = vmatpush.msrb.mxu0 %v118_v2  ;;  %737 = vmatpush.msrb.mxu1 %v135_v3  ;;  %v141_v41 = vld [vmem:[%s6750_s1 + $0x328] sm:$0xff]  ;;  %v158_v42 = vld [vmem:[%s6750_s1 + $0x3b0] sm:$0xff]  ;;  %v108_v44 = vld [vmem:[%s6750_s1 + $0x220] sm:$0xff] }
  0x25   :  { %758 = vmatpush.msrb.mxu2 %v150_v4  ;;  %777 = vmatpush.msrb.mxu3 %v167_v5  ;;  %v33_v43 = vld [vmem:[%s6751_s0 + $0x8] sm:$0xff]  ;;  %v34_v46 = vld [vmem:[%s6751_s0 + $0x10] sm:$0xff]  ;;  %v140_v47 = vld [vmem:[%s6750_s1 + $0x320] sm:$0xff] }
  0x26   :  { %719 = vmatpush.msrb.mxu0 %v117_v6  ;;  %738 = vmatpush.msrb.mxu1 %v134_v7  ;;  %v125_v45 = vld [vmem:[%s6750_s1 + $0x2a8] sm:$0xff]  ;;  %566 = vst [vmem:[#allocation1 + $0x20] ss:$4 sm:$0xff] %v33_v43  ;;  %v567_v48 = vld.sshfl [vmem:[#allocation1] sm:$0xff pattern:$0x73625140] }
  0x27   :  { %759 = vmatpush.msrb.mxu2 %v149_v8  ;;  %778 = vmatpush.msrb.mxu3 %v166_v9  ;;  %v569_v49 = vld.sshfl [vmem:[#allocation1 + $0x10] sm:$0xff pattern:$0x73625140]  ;;  %v3964_v50 = vld.sshfl [vmem:[#allocation1 + $0x8] sm:$0xff pattern:$0x73625140] }
  0x28   :  { %720 = vmatpush.msrb.mxu0 %v116_v10  ;;  %739 = vmatpush.msrb.mxu1 %v133_v11  ;;  %v3966_v51 = vld.sshfl [vmem:[#allocation1 + $0x18] sm:$0xff pattern:$0x73625140]  ;;  %v157_v52 = vld [vmem:[%s6750_s1 + $0x3a8] sm:$0xff]  ;;  %v124_v54 = vld [vmem:[%s6750_s1 + $0x2a0] sm:$0xff] }
  0x29   :  { %760 = vmatpush.msrb.mxu2 %v148_v12  ;;  %779 = vmatpush.msrb.mxu3 %v165_v13  ;;  %v107_v53 = vld [vmem:[%s6750_s1 + $0x218] sm:$0xff]  ;;  %575 = vst [vmem:[#allocation1] ss:$4 sm:$0xff] %v34_v46  ;;  %v156_v56 = vld [vmem:[%s6750_s1 + $0x3a0] sm:$0xff]  ;;  %v106_v57 = vld [vmem:[%s6750_s1 + $0x210] sm:$0xff] }
  0x2a   :  { %721 = vmatpush.msrb.mxu0 %v115_v14  ;;  %740 = vmatpush.msrb.mxu1 %v132_v15  ;;  %v139_v55 = vld [vmem:[%s6750_s1 + $0x318] sm:$0xff]  ;;  %v138_v59 = vld [vmem:[%s6750_s1 + $0x310] sm:$0xff]  ;;  %v105_v61 = vld [vmem:[%s6750_s1 + $0x208] sm:$0xff] }
  0x2b   :  { %761 = vmatpush.msrb.mxu2 %v147_v16  ;;  %780 = vmatpush.msrb.mxu3 %v164_v17  ;;  %v123_v58 = vld [vmem:[%s6750_s1 + $0x298] sm:$0xff]  ;;  %v122_v62 = vld [vmem:[%s6750_s1 + $0x290] sm:$0xff]  ;;  %v137_v4 = vld [vmem:[%s6750_s1 + $0x308] sm:$0xff] }
  0x2c   :  { %722 = vmatpush.msrb.mxu0 %v114_v18  ;;  %741 = vmatpush.msrb.mxu1 %v131_v19  ;;  %v155_v60 = vld [vmem:[%s6750_s1 + $0x398] sm:$0xff]  ;;  %v154_v5 = vld [vmem:[%s6750_s1 + $0x390] sm:$0xff]  ;;  %v104_v6 = vld [vmem:[%s6750_s1 + $0x200] sm:$0xff] }
  0x2d   :  { %762 = vmatpush.msrb.mxu2 %v146_v20  ;;  %781 = vmatpush.msrb.mxu3 %v163_v21  ;;  %v35_v63 = vld [vmem:[%s6751_s0 + $0x18] sm:$0xff]  ;;  %v4004_v0 = vld.sshfl [vmem:[#allocation1 + $0x30] sm:$0xff pattern:$0x73625140]  ;;  %v121_v7 = vld [vmem:[%s6750_s1 + $0x288] sm:$0xff] }
  0x2e   :  { %723 = vmatpush.msrb.mxu0 %v113_v22  ;;  %742 = vmatpush.msrb.mxu1 %v130_v23  ;;  %v4006_v1 = vld.sshfl [vmem:[#allocation1 + $0x20] sm:$0xff pattern:$0x73625140]  ;;  %v4008_v2 = vld.sshfl [vmem:[#allocation1 + $0x38] sm:$0xff pattern:$0x73625140] }
  0x2f   :  { %763 = vmatpush.msrb.mxu2 %v145_v24  ;;  %782 = vmatpush.msrb.mxu3 %v162_v25  ;;  %v4010_v3 = vld.sshfl [vmem:[#allocation1 + $0x28] sm:$0xff pattern:$0x73625140]  ;;  %v136_v8 = vld [vmem:[%s6750_s1 + $0x300] sm:$0xff]  ;;  %v183_v10 = vld [vmem:[%s6750_s1 + $0x478] sm:$0xff] }
  0x30   :  { %724 = vmatpush.msrb.mxu0 %v112_v27  ;;  %743 = vmatpush.msrb.mxu1 %v129_v28  ;;  %576 = vst [vmem:[#allocation1 + $0x20] ss:$4 sm:$0xff] %v35_v63  ;;  %v153_v9 = vld [vmem:[%s6750_s1 + $0x388] sm:$0xff]  ;;  %v215_v11 = vld [vmem:[%s6750_s1 + $0x578] sm:$0xff]  ;;  %v120_v12 = vld [vmem:[%s6750_s1 + $0x280] sm:$0xff] }
  0x31   :  { %764 = vmatpush.msrb.mxu2 %v144_v29  ;;  %783 = vmatpush.msrb.mxu3 %v161_v30  ;;  %v152_v13 = vld [vmem:[%s6750_s1 + $0x380] sm:$0xff]  ;;  %v182_v14 = vld [vmem:[%s6750_s1 + $0x470] sm:$0xff]  ;;  %v199_v15 = vld [vmem:[%s6750_s1 + $0x4f8] sm:$0xff] }
  0x32   :  { %725 = vmatpush.msrb.mxu0 %v111_v31  ;;  %744 = vmatpush.msrb.mxu1 %v128_v32  ;;  %v214_v16 = vld [vmem:[%s6750_s1 + $0x570] sm:$0xff]  ;;  %v231_v17 = vld [vmem:[%s6750_s1 + $0x5f8] sm:$0xff]  ;;  %v181_v18 = vld [vmem:[%s6750_s1 + $0x468] sm:$0xff] }
  0x33   :  { %765 = vmatpush.msrb.mxu2 %v143_v33  ;;  %784 = vmatpush.msrb.mxu3 %v160_v34  ;;  %v198_v19 = vld [vmem:[%s6750_s1 + $0x4f0] sm:$0xff]  ;;  %v213_v20 = vld [vmem:[%s6750_s1 + $0x568] sm:$0xff]  ;;  %v180_v22 = vld [vmem:[%s6750_s1 + $0x460] sm:$0xff] }
  0x34   :  { %726 = vmatpush.msrb.mxu0 %v110_v35  ;;  %745 = vmatpush.msrb.mxu1 %v127_v36  ;;  %v230_v21 = vld [vmem:[%s6750_s1 + $0x5f0] sm:$0xff]  ;;  %v197_v23 = vld [vmem:[%s6750_s1 + $0x4e8] sm:$0xff]  ;;  %v212_v24 = vld [vmem:[%s6750_s1 + $0x560] sm:$0xff] }
  0x35   :  { %766 = vmatpush.msrb.mxu2 %v142_v37  ;;  %785 = vmatpush.msrb.mxu3 %v159_v38  ;;  %v229_v25 = vld [vmem:[%s6750_s1 + $0x5e8] sm:$0xff]  ;;  %v179_v26 = vld [vmem:[%s6750_s1 + $0x458] sm:$0xff]  ;;  %v196_v27 = vld [vmem:[%s6750_s1 + $0x4e0] sm:$0xff] }
  0x36   :  { %727 = vmatpush.msrb.mxu0 %v109_v39  ;;  %746 = vmatpush.msrb.mxu1 %v126_v40  ;;  %v4086_v28 = vld.sshfl [vmem:[#allocation1] sm:$0xff pattern:$0x73625140]  ;;  %v211_v29 = vld [vmem:[%s6750_s1 + $0x558] sm:$0xff]  ;;  %v178_v35 = vld [vmem:[%s6750_s1 + $0x450] sm:$0xff] }
  0x37   :  { %767 = vmatpush.msrb.mxu2 %v141_v41  ;;  %786 = vmatpush.msrb.mxu3 %v158_v42  ;;  %v4091_v30 = vld.sshfl [vmem:[#allocation1 + $0x10] sm:$0xff pattern:$0x73625140]  ;;  %v36_v31 = vld [vmem:[%s6751_s0 + $0x20] sm:$0xff]  ;;  %v195_v36 = vld [vmem:[%s6750_s1 + $0x4d8] sm:$0xff] }
  0x38   :  { %728 = vmatpush.msrb.mxu0 %v108_v44  ;;  %747 = vmatpush.msrb.mxu1 %v125_v45  ;;  %v4096_v32 = vld.sshfl [vmem:[#allocation1 + $0x8] sm:$0xff pattern:$0x73625140]  ;;  %v4098_v33 = vld.sshfl [vmem:[#allocation1 + $0x18] sm:$0xff pattern:$0x73625140] }
  0x39   :  { %768 = vmatpush.msrb.mxu2 %v140_v47  ;;  %787 = vmatpush.msrb.mxu3 %v157_v52  ;;  %v228_v34 = vld [vmem:[%s6750_s1 + $0x5e0] sm:$0xff]  ;;  %585 = vst [vmem:[#allocation1] ss:$4 sm:$0xff] %v36_v31  ;;  %v210_v37 = vld [vmem:[%s6750_s1 + $0x550] sm:$0xff]  ;;  %v227_v38 = vld [vmem:[%s6750_s1 + $0x5d8] sm:$0xff] }
  0x3a   :  { %729 = vmatpush.msrb.mxu0 %v107_v53  ;;  %748 = vmatpush.msrb.mxu1 %v124_v54  ;;  %v177_v39 = vld [vmem:[%s6750_s1 + $0x448] sm:$0xff]  ;;  %v194_v40 = vld [vmem:[%s6750_s1 + $0x4d0] sm:$0xff]  ;;  %v176_v43 = vld [vmem:[%s6750_s1 + $0x440] sm:$0xff] }
  0x3b   :  { %769 = vmatpush.msrb.mxu2 %v139_v55  ;;  %788 = vmatpush.msrb.mxu3 %v156_v56  ;;  %v209_v41 = vld [vmem:[%s6750_s1 + $0x548] sm:$0xff]  ;;  %v226_v42 = vld [vmem:[%s6750_s1 + $0x5d0] sm:$0xff]  ;;  %v208_v45 = vld [vmem:[%s6750_s1 + $0x540] sm:$0xff] }
  0x3c   :  { %730 = vmatpush.msrb.mxu0 %v106_v57  ;;  %749 = vmatpush.msrb.mxu1 %v123_v58  ;;  %v193_v44 = vld [vmem:[%s6750_s1 + $0x4c8] sm:$0xff]  ;;  %v175_v47 = vld [vmem:[%s6750_s1 + $0x438] sm:$0xff]  ;;  %v206_v53 = vld [vmem:[%s6750_s1 + $0x530] sm:$0xff] }
  0x3d   :  { %770 = vmatpush.msrb.mxu2 %v138_v59  ;;  %789 = vmatpush.msrb.mxu3 %v155_v60  ;;  %v225_v46 = vld [vmem:[%s6750_s1 + $0x5c8] sm:$0xff]  ;;  %v191_v52 = vld [vmem:[%s6750_s1 + $0x4b8] sm:$0xff]  ;;  %v190_v56 = vld [vmem:[%s6750_s1 + $0x4b0] sm:$0xff] }
  0x3e   :  { %731 = vmatpush.msrb.mxu0 %v105_v61  ;;  %750 = vmatpush.msrb.mxu1 %v122_v62  ;;  %v223_v54 = vld [vmem:[%s6750_s1 + $0x5b8] sm:$0xff]  ;;  %v173_v55 = vld [vmem:[%s6750_s1 + $0x428] sm:$0xff]  ;;  %v222_v58 = vld [vmem:[%s6750_s1 + $0x5b0] sm:$0xff] }
  0x3f   :  { %771 = vmatpush.msrb.mxu2 %v137_v4  ;;  %790 = vmatpush.msrb.mxu3 %v154_v5  ;;  %v205_v57 = vld [vmem:[%s6750_s1 + $0x528] sm:$0xff]  ;;  %v172_v59 = vld [vmem:[%s6750_s1 + $0x420] sm:$0xff]  ;;  %v171_v63 = vld [vmem:[%s6750_s1 + $0x418] sm:$0xff] }
  0x40   :  { %732 = vmatpush.msrb.mxu0 %v104_v6  ;;  %751 = vmatpush.msrb.mxu1 %v121_v7  ;;  %v189_v60 = vld [vmem:[%s6750_s1 + $0x4a8] sm:$0xff]  ;;  %v204_v61 = vld [vmem:[%s6750_s1 + $0x520] sm:$0xff]  ;;  %v187_v4 = vld [vmem:[%s6750_s1 + $0x498] sm:$0xff] }
  0x41   :  { %772 = vmatpush.msrb.mxu2 %v136_v8  ;;  %791 = vmatpush.msrb.mxu3 %v153_v9  ;;  %v221_v62 = vld [vmem:[%s6750_s1 + $0x5a8] sm:$0xff]  ;;  %v202_v5 = vld [vmem:[%s6750_s1 + $0x510] sm:$0xff]  ;;  %v219_v6 = vld [vmem:[%s6750_s1 + $0x598] sm:$0xff] }
  0x42   :  { %653 = vmatmul.f32.vlgmr.msra.gmra.mxu0 %v567_v48  ;;  %693 = vmatmul.f32.vlgmr.msra.gmra.mxu2 %v569_v49  ;;  %v192_v48 = vld [vmem:[%s6750_s1 + $0x4c0] sm:$0xff]  ;;  %v207_v49 = vld [vmem:[%s6750_s1 + $0x538] sm:$0xff]  ;;  %v169_v7 = vld [vmem:[%s6750_s1 + $0x408] sm:$0xff] }
  0x43   :  { %797 = vmatpush.msra.mxu0 %v183_v10  ;;  %837 = vmatpush.msra.mxu2 %v215_v11  ;;  %v186_v8 = vld [vmem:[%s6750_s1 + $0x490] sm:$0xff]  ;;  %v201_v9 = vld [vmem:[%s6750_s1 + $0x508] sm:$0xff]  ;;  %v168_v11 = vld [vmem:[%s6750_s1 + $0x400] sm:$0xff] }
  0x44   :  { %752 = vmatpush.msrb.mxu1 %v120_v12  ;;  %792 = vmatpush.msrb.mxu3 %v152_v13  ;;  %v218_v10 = vld [vmem:[%s6750_s1 + $0x590] sm:$0xff]  ;;  %v185_v12 = vld [vmem:[%s6750_s1 + $0x488] sm:$0xff]  ;;  %v200_v13 = vld [vmem:[%s6750_s1 + $0x500] sm:$0xff] }
  0x45   :  { %673 = vmatmul.f32.vlgmr.msra.gmra.mxu1 %v3964_v50  ;;  %713 = vmatmul.f32.vlgmr.msra.gmra.mxu3 %v3966_v51  ;;  %v224_v50 = vld [vmem:[%s6750_s1 + $0x5c0] sm:$0xff]  ;;  %v174_v51 = vld [vmem:[%s6750_s1 + $0x430] sm:$0xff]  ;;  %v261_v31 = vld [vmem:[%s6750_s1 + $0x6e8] sm:$0xff] }
  0x46   :  { %798 = vmatpush.msra.mxu0 %v182_v14  ;;  %817 = vmatpush.msra.mxu1 %v199_v15  ;;  %v217_v14 = vld [vmem:[%s6750_s1 + $0x588] sm:$0xff]  ;;  %v247_v15 = vld [vmem:[%s6750_s1 + $0x678] sm:$0xff] }
  0x47   :  { %838 = vmatpush.msra.mxu2 %v214_v16  ;;  %857 = vmatpush.msra.mxu3 %v231_v17  ;;  %v279_v16 = vld [vmem:[%s6750_s1 + $0x778] sm:$0xff]  ;;  %v184_v17 = vld [vmem:[%s6750_s1 + $0x480] sm:$0xff] }
  0x48   :  { %799 = vmatpush.msra.mxu0 %v181_v18  ;;  %818 = vmatpush.msra.mxu1 %v198_v19  ;;  %v216_v18 = vld [vmem:[%s6750_s1 + $0x580] sm:$0xff]  ;;  %v246_v19 = vld [vmem:[%s6750_s1 + $0x670] sm:$0xff] }
  0x49   :  { %839 = vmatpush.msra.mxu2 %v213_v20  ;;  %858 = vmatpush.msra.mxu3 %v230_v21  ;;  %v263_v20 = vld [vmem:[%s6750_s1 + $0x6f8] sm:$0xff]  ;;  %v278_v21 = vld [vmem:[%s6750_s1 + $0x770] sm:$0xff] }
  0x4a   :  { %800 = vmatpush.msra.mxu0 %v180_v22  ;;  %819 = vmatpush.msra.mxu1 %v197_v23  ;;  %v295_v22 = vld [vmem:[%s6750_s1 + $0x7f8] sm:$0xff]  ;;  %v245_v23 = vld [vmem:[%s6750_s1 + $0x668] sm:$0xff] }
  0x4b   :  { %840 = vmatpush.msra.mxu2 %v212_v24  ;;  %859 = vmatpush.msra.mxu3 %v229_v25  ;;  %v262_v24 = vld [vmem:[%s6750_s1 + $0x6f0] sm:$0xff]  ;;  %v277_v25 = vld [vmem:[%s6750_s1 + $0x768] sm:$0xff] }
  0x4c   :  { %773 = vmatmul.f32.vlgmr.msrb.gmra.mxu2 %v4004_v0  ;;  %801 = vmatpush.msra.mxu0 %v179_v26  ;;  %v188_v0 = vld [vmem:[%s6750_s1 + $0x4a0] sm:$0xff]  ;;  %v294_v26 = vld [vmem:[%s6750_s1 + $0x7f0] sm:$0xff] }
  0x4d   :  { %820 = vmatpush.msra.mxu1 %v196_v27  ;;  %841 = vmatpush.msra.mxu2 %v211_v29  ;;  %v244_v27 = vld [vmem:[%s6750_s1 + $0x660] sm:$0xff]  ;;  %v4284_v29 = vld.sshfl [vmem:[#allocation1 + $0x30] sm:$0xff pattern:$0x73625140] }
  0x4e   :  { %860 = vmatpush.msra.mxu3 %v228_v34  ;;  %733 = vmatmul.f32.vlgmr.msrb.gmra.mxu0 %v4006_v1  ;;  %v203_v1 = vld [vmem:[%s6750_s1 + $0x518] sm:$0xff]  ;;  %v276_v34 = vld [vmem:[%s6750_s1 + $0x760] sm:$0xff] }
  0x4f   :  { %793 = vmatmul.f32.vlgmr.msrb.gmra.mxu3 %v4008_v2  ;;  %802 = vmatpush.msra.mxu0 %v178_v35  ;;  %v220_v2 = vld [vmem:[%s6750_s1 + $0x5a0] sm:$0xff]  ;;  %v293_v35 = vld [vmem:[%s6750_s1 + $0x7e8] sm:$0xff] }
  0x50   :  { %821 = vmatpush.msra.mxu1 %v195_v36  ;;  %842 = vmatpush.msra.mxu2 %v210_v37  ;;  %v243_v36 = vld [vmem:[%s6750_s1 + $0x658] sm:$0xff]  ;;  %v260_v37 = vld [vmem:[%s6750_s1 + $0x6e0] sm:$0xff] }
  0x51   :  { %861 = vmatpush.msra.mxu3 %v227_v38  ;;  %753 = vmatmul.f32.vlgmr.msrb.gmra.mxu1 %v4010_v3  ;;  %v170_v3 = vld [vmem:[%s6750_s1 + $0x410] sm:$0xff]  ;;  %v275_v38 = vld [vmem:[%s6750_s1 + $0x758] sm:$0xff] }
  0x52   :  { %803 = vmatpush.msra.mxu0 %v177_v39  ;;  %822 = vmatpush.msra.mxu1 %v194_v40  ;;  %v292_v39 = vld [vmem:[%s6750_s1 + $0x7e0] sm:$0xff]  ;;  %v242_v40 = vld [vmem:[%s6750_s1 + $0x650] sm:$0xff] }
  0x53   :  { %843 = vmatpush.msra.mxu2 %v209_v41  ;;  %862 = vmatpush.msra.mxu3 %v226_v42  ;;  %v259_v41 = vld [vmem:[%s6750_s1 + $0x6d8] sm:$0xff]  ;;  %v274_v42 = vld [vmem:[%s6750_s1 + $0x750] sm:$0xff] }
  0x54   :  { %804 = vmatpush.msra.mxu0 %v176_v43  ;;  %823 = vmatpush.msra.mxu1 %v193_v44  ;;  %v291_v43 = vld [vmem:[%s6750_s1 + $0x7d8] sm:$0xff]  ;;  %v241_v44 = vld [vmem:[%s6750_s1 + $0x648] sm:$0xff] }
  0x55   :  { %844 = vmatpush.msra.mxu2 %v208_v45  ;;  %863 = vmatpush.msra.mxu3 %v225_v46  ;;  %v258_v45 = vld [vmem:[%s6750_s1 + $0x6d0] sm:$0xff]  ;;  %v273_v46 = vld [vmem:[%s6750_s1 + $0x748] sm:$0xff] }
  0x56   :  { %805 = vmatpush.msra.mxu0 %v175_v47  ;;  %824 = vmatpush.msra.mxu1 %v192_v48  ;;  %v290_v47 = vld [vmem:[%s6750_s1 + $0x7d0] sm:$0xff]  ;;  %v240_v48 = vld [vmem:[%s6750_s1 + $0x640] sm:$0xff] }
  0x57   :  { %845 = vmatpush.msra.mxu2 %v207_v49  ;;  %864 = vmatpush.msra.mxu3 %v224_v50  ;;  %v257_v49 = vld [vmem:[%s6750_s1 + $0x6c8] sm:$0xff]  ;;  %v272_v50 = vld [vmem:[%s6750_s1 + $0x740] sm:$0xff] }
  0x58   :  { %806 = vmatpush.msra.mxu0 %v174_v51  ;;  %825 = vmatpush.msra.mxu1 %v191_v52  ;;  %v289_v51 = vld [vmem:[%s6750_s1 + $0x7c8] sm:$0xff]  ;;  %v239_v52 = vld [vmem:[%s6750_s1 + $0x638] sm:$0xff] }
  0x59   :  { %846 = vmatpush.msra.mxu2 %v206_v53  ;;  %865 = vmatpush.msra.mxu3 %v223_v54  ;;  %v256_v53 = vld [vmem:[%s6750_s1 + $0x6c0] sm:$0xff]  ;;  %v271_v54 = vld [vmem:[%s6750_s1 + $0x738] sm:$0xff] }
  0x5a   :  { %807 = vmatpush.msra.mxu0 %v173_v55  ;;  %826 = vmatpush.msra.mxu1 %v190_v56  ;;  %v288_v55 = vld [vmem:[%s6750_s1 + $0x7c0] sm:$0xff]  ;;  %v238_v56 = vld [vmem:[%s6750_s1 + $0x630] sm:$0xff] }
  0x5b   :  { %847 = vmatpush.msra.mxu2 %v205_v57  ;;  %866 = vmatpush.msra.mxu3 %v222_v58  ;;  %v255_v57 = vld [vmem:[%s6750_s1 + $0x6b8] sm:$0xff]  ;;  %v270_v58 = vld [vmem:[%s6750_s1 + $0x730] sm:$0xff] }
  0x5c   :  { %808 = vmatpush.msra.mxu0 %v172_v59  ;;  %827 = vmatpush.msra.mxu1 %v189_v60  ;;  %v287_v59 = vld [vmem:[%s6750_s1 + $0x7b8] sm:$0xff]  ;;  %v237_v60 = vld [vmem:[%s6750_s1 + $0x628] sm:$0xff] }
  0x5d   :  { %848 = vmatpush.msra.mxu2 %v204_v61  ;;  %867 = vmatpush.msra.mxu3 %v221_v62  ;;  %v254_v61 = vld [vmem:[%s6750_s1 + $0x6b0] sm:$0xff]  ;;  %v269_v62 = vld [vmem:[%s6750_s1 + $0x728] sm:$0xff] }
  0x5e   :  { %809 = vmatpush.msra.mxu0 %v171_v63  ;;  %828 = vmatpush.msra.mxu1 %v188_v0  ;;  %v286_v63 = vld [vmem:[%s6750_s1 + $0x7b0] sm:$0xff]  ;;  %v236_v0 = vld [vmem:[%s6750_s1 + $0x620] sm:$0xff] }
  0x5f   :  { %849 = vmatpush.msra.mxu2 %v203_v1  ;;  %868 = vmatpush.msra.mxu3 %v220_v2  ;;  %v253_v1 = vld [vmem:[%s6750_s1 + $0x6a8] sm:$0xff]  ;;  %v268_v2 = vld [vmem:[%s6750_s1 + $0x720] sm:$0xff] }
  0x60   :  { %810 = vmatpush.msra.mxu0 %v170_v3  ;;  %829 = vmatpush.msra.mxu1 %v187_v4  ;;  %v285_v3 = vld [vmem:[%s6750_s1 + $0x7a8] sm:$0xff]  ;;  %v235_v4 = vld [vmem:[%s6750_s1 + $0x618] sm:$0xff] }
  0x61   :  { %850 = vmatpush.msra.mxu2 %v202_v5  ;;  %869 = vmatpush.msra.mxu3 %v219_v6  ;;  %v252_v5 = vld [vmem:[%s6750_s1 + $0x6a0] sm:$0xff]  ;;  %v267_v6 = vld [vmem:[%s6750_s1 + $0x718] sm:$0xff] }
  0x62   :  { %811 = vmatpush.msra.mxu0 %v169_v7  ;;  %830 = vmatpush.msra.mxu1 %v186_v8  ;;  %v284_v7 = vld [vmem:[%s6750_s1 + $0x7a0] sm:$0xff]  ;;  %v234_v8 = vld [vmem:[%s6750_s1 + $0x610] sm:$0xff] }
  0x63   :  { %851 = vmatpush.msra.mxu2 %v201_v9  ;;  %870 = vmatpush.msra.mxu3 %v218_v10  ;;  %v251_v9 = vld [vmem:[%s6750_s1 + $0x698] sm:$0xff]  ;;  %v266_v10 = vld [vmem:[%s6750_s1 + $0x710] sm:$0xff] }
  0x64   :  { %812 = vmatpush.msra.mxu0 %v168_v11  ;;  %831 = vmatpush.msra.mxu1 %v185_v12  ;;  %v283_v11 = vld [vmem:[%s6750_s1 + $0x798] sm:$0xff]  ;;  %v233_v12 = vld [vmem:[%s6750_s1 + $0x608] sm:$0xff] }
  0x65   :  { %852 = vmatpush.msra.mxu2 %v200_v13  ;;  %871 = vmatpush.msra.mxu3 %v217_v14  ;;  %v250_v13 = vld [vmem:[%s6750_s1 + $0x690] sm:$0xff]  ;;  %v265_v14 = vld [vmem:[%s6750_s1 + $0x708] sm:$0xff] }
  0x66   :  { %813 = vmatmul.f32.vlgmr.msra.gmra.mxu0 %v4086_v28  ;;  %853 = vmatmul.f32.vlgmr.msra.gmra.mxu2 %v4091_v30  ;;  %v4282_v28 = vld.sshfl [vmem:[#allocation1 + $0x20] sm:$0xff pattern:$0x73625140]  ;;  %v4286_v30 = vld.sshfl [vmem:[#allocation1 + $0x28] sm:$0xff pattern:$0x73625140] }
  0x67   :  { %877 = vmatpush.msrb.mxu0 %v247_v15  ;;  %917 = vmatpush.msrb.mxu2 %v279_v16  ;;  %v282_v15 = vld [vmem:[%s6750_s1 + $0x790] sm:$0xff]  ;;  %v232_v16 = vld [vmem:[%s6750_s1 + $0x600] sm:$0xff] }
  0x68   :  { %832 = vmatpush.msra.mxu1 %v184_v17  ;;  %872 = vmatpush.msra.mxu3 %v216_v18  ;;  %v249_v17 = vld [vmem:[%s6750_s1 + $0x688] sm:$0xff]  ;;  %v264_v18 = vld [vmem:[%s6750_s1 + $0x700] sm:$0xff] }
  0x69   :  { %833 = vmatmul.f32.vlgmr.msra.gmra.mxu1 %v4096_v32  ;;  %873 = vmatmul.f32.vlgmr.msra.gmra.mxu3 %v4098_v33  ;;  %v37_v32 = vld [vmem:[%s6751_s0 + $0x28] sm:$0xff]  ;;  %v4294_v33 = vld.sshfl [vmem:[#allocation1 + $0x38] sm:$0xff pattern:$0x73625140] }
  0x6a   :  { %878 = vmatpush.msrb.mxu0 %v246_v19  ;;  %897 = vmatpush.msrb.mxu1 %v263_v20  ;;  %586 = vst [vmem:[#allocation1 + $0x20] ss:$4 sm:$0xff] %v37_v32  ;;  %v281_v19 = vld [vmem:[%s6750_s1 + $0x788] sm:$0xff]  ;;  %v311_v20 = vld [vmem:[%s6750_s1 + $0x878] sm:$0xff] }
  0x6b   :  { %918 = vmatpush.msrb.mxu2 %v278_v21  ;;  %937 = vmatpush.msrb.mxu3 %v295_v22  ;;  %v343_v21 = vld [vmem:[%s6750_s1 + $0x978] sm:$0xff]  ;;  %v248_v22 = vld [vmem:[%s6750_s1 + $0x680] sm:$0xff]  ;;  %v341_v32 = vld [vmem:[%s6750_s1 + $0x968] sm:$0xff] }
  0x6c   :  { %879 = vmatpush.msrb.mxu0 %v245_v23  ;;  %898 = vmatpush.msrb.mxu1 %v262_v24  ;;  %v280_v23 = vld [vmem:[%s6750_s1 + $0x780] sm:$0xff]  ;;  %v38_v24 = vld [vmem:[%s6751_s0 + $0x30] sm:$0xff] }
  0x6d   :  { %919 = vmatpush.msrb.mxu2 %v277_v25  ;;  %938 = vmatpush.msrb.mxu3 %v294_v26  ;;  %v310_v25 = vld [vmem:[%s6750_s1 + $0x870] sm:$0xff]  ;;  %v327_v26 = vld [vmem:[%s6750_s1 + $0x8f8] sm:$0xff] }
  0x6e   :  { %880 = vmatpush.msrb.mxu0 %v244_v27  ;;  %899 = vmatpush.msrb.mxu1 %v261_v31  ;;  %v342_v27 = vld [vmem:[%s6750_s1 + $0x970] sm:$0xff] }
  0x6f   :  { %920 = vmatpush.msrb.mxu2 %v276_v34  ;;  %939 = vmatpush.msrb.mxu3 %v293_v35  ;;  %v326_v31 = vld [vmem:[%s6750_s1 + $0x8f0] sm:$0xff]  ;;  %v4489_v35 = vld.sshfl [vmem:[#allocation1] sm:$0xff pattern:$0x73625140] }
  0x70   :  { %881 = vmatpush.msrb.mxu0 %v243_v36  ;;  %900 = vmatpush.msrb.mxu1 %v260_v37  ;;  %v358_v34 = vld [vmem:[%s6750_s1 + $0x9f0] sm:$0xff]  ;;  %v4493_v37 = vld.sshfl [vmem:[#allocation1 + $0x8] sm:$0xff pattern:$0x73625140] }
  0x71   :  { %921 = vmatpush.msrb.mxu2 %v275_v38  ;;  %940 = vmatpush.msrb.mxu3 %v292_v39  ;;  %v4491_v36 = vld.sshfl [vmem:[#allocation1 + $0x10] sm:$0xff pattern:$0x73625140]  ;;  %v4495_v38 = vld.sshfl [vmem:[#allocation1 + $0x18] sm:$0xff pattern:$0x73625140] }
  0x72   :  { %882 = vmatpush.msrb.mxu0 %v242_v40  ;;  %901 = vmatpush.msrb.mxu1 %v259_v41  ;;  %v308_v39 = vld [vmem:[%s6750_s1 + $0x860] sm:$0xff]  ;;  %595 = vst [vmem:[#allocation1] ss:$4 sm:$0xff] %v38_v24  ;;  %v357_v40 = vld [vmem:[%s6750_s1 + $0x9e8] sm:$0xff]  ;;  %v307_v41 = vld [vmem:[%s6750_s1 + $0x858] sm:$0xff] }
  0x73   :  { %922 = vmatpush.msrb.mxu2 %v274_v42  ;;  %941 = vmatpush.msrb.mxu3 %v291_v43  ;;  %v324_v42 = vld [vmem:[%s6750_s1 + $0x8e0] sm:$0xff]  ;;  %v339_v43 = vld [vmem:[%s6750_s1 + $0x958] sm:$0xff]  ;;  %v345_v24 = vld [vmem:[%s6750_s1 + $0x988] sm:$0xff] }
  0x74   :  { %883 = vmatpush.msrb.mxu0 %v241_v44  ;;  %902 = vmatpush.msrb.mxu1 %v258_v45  ;;  %v356_v44 = vld [vmem:[%s6750_s1 + $0x9e0] sm:$0xff]  ;;  %v306_v45 = vld [vmem:[%s6750_s1 + $0x850] sm:$0xff] }
  0x75   :  { %923 = vmatpush.msrb.mxu2 %v273_v46  ;;  %942 = vmatpush.msrb.mxu3 %v290_v47  ;;  %v323_v46 = vld [vmem:[%s6750_s1 + $0x8d8] sm:$0xff]  ;;  %v338_v47 = vld [vmem:[%s6750_s1 + $0x950] sm:$0xff] }
  0x76   :  { %884 = vmatpush.msrb.mxu0 %v240_v48  ;;  %903 = vmatpush.msrb.mxu1 %v257_v49  ;;  %v355_v48 = vld [vmem:[%s6750_s1 + $0x9d8] sm:$0xff]  ;;  %v305_v49 = vld [vmem:[%s6750_s1 + $0x848] sm:$0xff] }
  0x77   :  { %924 = vmatpush.msrb.mxu2 %v272_v50  ;;  %943 = vmatpush.msrb.mxu3 %v289_v51  ;;  %v322_v50 = vld [vmem:[%s6750_s1 + $0x8d0] sm:$0xff]  ;;  %v337_v51 = vld [vmem:[%s6750_s1 + $0x948] sm:$0xff] }
  0x78   :  { %885 = vmatpush.msrb.mxu0 %v239_v52  ;;  %904 = vmatpush.msrb.mxu1 %v256_v53  ;;  %v354_v52 = vld [vmem:[%s6750_s1 + $0x9d0] sm:$0xff]  ;;  %v304_v53 = vld [vmem:[%s6750_s1 + $0x840] sm:$0xff] }
  0x79   :  { %925 = vmatpush.msrb.mxu2 %v271_v54  ;;  %944 = vmatpush.msrb.mxu3 %v288_v55  ;;  %v321_v54 = vld [vmem:[%s6750_s1 + $0x8c8] sm:$0xff]  ;;  %v336_v55 = vld [vmem:[%s6750_s1 + $0x940] sm:$0xff] }
  0x7a   :  { %886 = vmatpush.msrb.mxu0 %v238_v56  ;;  %905 = vmatpush.msrb.mxu1 %v255_v57  ;;  %v353_v56 = vld [vmem:[%s6750_s1 + $0x9c8] sm:$0xff]  ;;  %v303_v57 = vld [vmem:[%s6750_s1 + $0x838] sm:$0xff] }
  0x7b   :  { %926 = vmatpush.msrb.mxu2 %v270_v58  ;;  %945 = vmatpush.msrb.mxu3 %v287_v59  ;;  %v320_v58 = vld [vmem:[%s6750_s1 + $0x8c0] sm:$0xff]  ;;  %v335_v59 = vld [vmem:[%s6750_s1 + $0x938] sm:$0xff] }
  0x7c   :  { %887 = vmatpush.msrb.mxu0 %v237_v60  ;;  %906 = vmatpush.msrb.mxu1 %v254_v61  ;;  %v352_v60 = vld [vmem:[%s6750_s1 + $0x9c0] sm:$0xff]  ;;  %v302_v61 = vld [vmem:[%s6750_s1 + $0x830] sm:$0xff] }
  0x7d   :  { %927 = vmatpush.msrb.mxu2 %v269_v62  ;;  %946 = vmatpush.msrb.mxu3 %v286_v63  ;;  %v319_v62 = vld [vmem:[%s6750_s1 + $0x8b8] sm:$0xff]  ;;  %v334_v63 = vld [vmem:[%s6750_s1 + $0x930] sm:$0xff] }
  0x7e   :  { %888 = vmatpush.msrb.mxu0 %v236_v0  ;;  %907 = vmatpush.msrb.mxu1 %v253_v1  ;;  %v351_v0 = vld [vmem:[%s6750_s1 + $0x9b8] sm:$0xff]  ;;  %v301_v1 = vld [vmem:[%s6750_s1 + $0x828] sm:$0xff] }
  0x7f   :  { %928 = vmatpush.msrb.mxu2 %v268_v2  ;;  %947 = vmatpush.msrb.mxu3 %v285_v3  ;;  %v318_v2 = vld [vmem:[%s6750_s1 + $0x8b0] sm:$0xff]  ;;  %v333_v3 = vld [vmem:[%s6750_s1 + $0x928] sm:$0xff] }
  0x80   :  { %889 = vmatpush.msrb.mxu0 %v235_v4  ;;  %908 = vmatpush.msrb.mxu1 %v252_v5  ;;  %v350_v4 = vld [vmem:[%s6750_s1 + $0x9b0] sm:$0xff]  ;;  %v300_v5 = vld [vmem:[%s6750_s1 + $0x820] sm:$0xff] }
  0x81   :  { %929 = vmatpush.msrb.mxu2 %v267_v6  ;;  %948 = vmatpush.msrb.mxu3 %v284_v7  ;;  %v317_v6 = vld [vmem:[%s6750_s1 + $0x8a8] sm:$0xff]  ;;  %v332_v7 = vld [vmem:[%s6750_s1 + $0x920] sm:$0xff] }
  0x82   :  { %890 = vmatpush.msrb.mxu0 %v234_v8  ;;  %909 = vmatpush.msrb.mxu1 %v251_v9  ;;  %v349_v8 = vld [vmem:[%s6750_s1 + $0x9a8] sm:$0xff]  ;;  %v299_v9 = vld [vmem:[%s6750_s1 + $0x818] sm:$0xff] }
  0x83   :  { %930 = vmatpush.msrb.mxu2 %v266_v10  ;;  %949 = vmatpush.msrb.mxu3 %v283_v11  ;;  %v316_v10 = vld [vmem:[%s6750_s1 + $0x8a0] sm:$0xff]  ;;  %v331_v11 = vld [vmem:[%s6750_s1 + $0x918] sm:$0xff] }
  0x84   :  { %891 = vmatpush.msrb.mxu0 %v233_v12  ;;  %910 = vmatpush.msrb.mxu1 %v250_v13  ;;  %v348_v12 = vld [vmem:[%s6750_s1 + $0x9a0] sm:$0xff]  ;;  %v298_v13 = vld [vmem:[%s6750_s1 + $0x810] sm:$0xff] }
  0x85   :  { %931 = vmatpush.msrb.mxu2 %v265_v14  ;;  %950 = vmatpush.msrb.mxu3 %v282_v15  ;;  %v315_v14 = vld [vmem:[%s6750_s1 + $0x898] sm:$0xff]  ;;  %v330_v15 = vld [vmem:[%s6750_s1 + $0x910] sm:$0xff] }
  0x86   :  { %892 = vmatpush.msrb.mxu0 %v232_v16  ;;  %911 = vmatpush.msrb.mxu1 %v249_v17  ;;  %v347_v16 = vld [vmem:[%s6750_s1 + $0x998] sm:$0xff]  ;;  %v297_v17 = vld [vmem:[%s6750_s1 + $0x808] sm:$0xff] }
  0x87   :  { %932 = vmatpush.msrb.mxu2 %v264_v18  ;;  %951 = vmatpush.msrb.mxu3 %v281_v19  ;;  %v314_v18 = vld [vmem:[%s6750_s1 + $0x890] sm:$0xff]  ;;  %v329_v19 = vld [vmem:[%s6750_s1 + $0x908] sm:$0xff] }
  0x88   :  { %893 = vmatmul.f32.vlgmr.msrb.gmra.mxu0 %v4282_v28  ;;  %933 = vmatmul.f32.vlgmr.msrb.gmra.mxu2 %v4284_v29  ;;  %v359_v28 = vld [vmem:[%s6750_s1 + $0x9f8] sm:$0xff]  ;;  %v309_v29 = vld [vmem:[%s6750_s1 + $0x868] sm:$0xff] }
  0x89   :  { %957 = vmatpush.msra.mxu0 %v311_v20  ;;  %997 = vmatpush.msra.mxu2 %v343_v21  ;;  %v346_v20 = vld [vmem:[%s6750_s1 + $0x990] sm:$0xff]  ;;  %v296_v21 = vld [vmem:[%s6750_s1 + $0x800] sm:$0xff] }
  0x8a   :  { %912 = vmatpush.msrb.mxu1 %v248_v22  ;;  %952 = vmatpush.msrb.mxu3 %v280_v23  ;;  %v313_v22 = vld [vmem:[%s6750_s1 + $0x888] sm:$0xff]  ;;  %v328_v23 = vld [vmem:[%s6750_s1 + $0x900] sm:$0xff] }
  0x8b   :  { %913 = vmatmul.f32.vlgmr.msrb.gmra.mxu1 %v4286_v30  ;;  %953 = vmatmul.f32.vlgmr.msrb.gmra.mxu3 %v4294_v33  ;;  %v325_v30 = vld [vmem:[%s6750_s1 + $0x8e8] sm:$0xff]  ;;  %v340_v33 = vld [vmem:[%s6750_s1 + $0x960] sm:$0xff] }
  0x8c   :  { %958 = vmatpush.msra.mxu0 %v310_v25  ;;  %977 = vmatpush.msra.mxu1 %v327_v26  ;;  %v375_v25 = vld [vmem:[%s6750_s1 + $0xa78] sm:$0xff] }
  0x8d   :  { %998 = vmatpush.msra.mxu2 %v342_v27  ;;  %1017 = vmatpush.msra.mxu3 %v359_v28  ;;  %v407_v26 = vld [vmem:[%s6750_s1 + $0xb78] sm:$0xff]  ;;  %v312_v27 = vld [vmem:[%s6750_s1 + $0x880] sm:$0xff] }
  0x8e   :  { %959 = vmatpush.msra.mxu0 %v309_v29  ;;  %978 = vmatpush.msra.mxu1 %v326_v31  ;;  %v344_v28 = vld [vmem:[%s6750_s1 + $0x980] sm:$0xff]  ;;  %v39_v29 = vld [vmem:[%s6751_s0 + $0x38] sm:$0xff]  ;;  %v374_v31 = vld [vmem:[%s6750_s1 + $0xa70] sm:$0xff] }
  0x8f   :  { %999 = vmatpush.msra.mxu2 %v341_v32  ;;  %1018 = vmatpush.msra.mxu3 %v358_v34  ;;  %v391_v32 = vld [vmem:[%s6750_s1 + $0xaf8] sm:$0xff]  ;;  %v406_v34 = vld [vmem:[%s6750_s1 + $0xb70] sm:$0xff] }
  0x90   :  { %960 = vmatpush.msra.mxu0 %v308_v39  ;;  %979 = vmatpush.msra.mxu1 %v325_v30  ;;  %v390_v39 = vld [vmem:[%s6750_s1 + $0xaf0] sm:$0xff]  ;;  %v405_v30 = vld [vmem:[%s6750_s1 + $0xb68] sm:$0xff] }
  0x91   :  { %1000 = vmatpush.msra.mxu2 %v340_v33  ;;  %1019 = vmatpush.msra.mxu3 %v357_v40  ;;  %v422_v33 = vld [vmem:[%s6750_s1 + $0xbf0] sm:$0xff]  ;;  %v4696_v40 = vld.sshfl [vmem:[#allocation1 + $0x20] sm:$0xff pattern:$0x73625140] }
  0x92   :  { %961 = vmatpush.msra.mxu0 %v307_v41  ;;  %980 = vmatpush.msra.mxu1 %v324_v42  ;;  %v4698_v41 = vld.sshfl [vmem:[#allocation1 + $0x30] sm:$0xff pattern:$0x73625140]  ;;  %v4700_v42 = vld.sshfl [vmem:[#allocation1 + $0x28] sm:$0xff pattern:$0x73625140] }
  0x93   :  { %1001 = vmatpush.msra.mxu2 %v339_v43  ;;  %1020 = vmatpush.msra.mxu3 %v356_v44  ;;  %v4702_v43 = vld.sshfl [vmem:[#allocation1 + $0x38] sm:$0xff pattern:$0x73625140]  ;;  %v372_v44 = vld [vmem:[%s6750_s1 + $0xa60] sm:$0xff] }
  0x94   :  { %962 = vmatpush.msra.mxu0 %v306_v45  ;;  %981 = vmatpush.msra.mxu1 %v323_v46  ;;  %596 = vst [vmem:[#allocation1 + $0x20] ss:$4 sm:$0xff] %v39_v29  ;;  %v421_v45 = vld [vmem:[%s6750_s1 + $0xbe8] sm:$0xff]  ;;  %v371_v46 = vld [vmem:[%s6750_s1 + $0xa58] sm:$0xff] }
  0x95   :  { %1002 = vmatpush.msra.mxu2 %v338_v47  ;;  %1021 = vmatpush.msra.mxu3 %v355_v48  ;;  %v388_v47 = vld [vmem:[%s6750_s1 + $0xae0] sm:$0xff]  ;;  %v403_v48 = vld [vmem:[%s6750_s1 + $0xb58] sm:$0xff]  ;;  %v409_v29 = vld [vmem:[%s6750_s1 + $0xb88] sm:$0xff] }
  0x96   :  { %963 = vmatpush.msra.mxu0 %v305_v49  ;;  %982 = vmatpush.msra.mxu1 %v322_v50  ;;  %v420_v49 = vld [vmem:[%s6750_s1 + $0xbe0] sm:$0xff]  ;;  %v370_v50 = vld [vmem:[%s6750_s1 + $0xa50] sm:$0xff] }
  0x97   :  { %1003 = vmatpush.msra.mxu2 %v337_v51  ;;  %1022 = vmatpush.msra.mxu3 %v354_v52  ;;  %v387_v51 = vld [vmem:[%s6750_s1 + $0xad8] sm:$0xff]  ;;  %v402_v52 = vld [vmem:[%s6750_s1 + $0xb50] sm:$0xff] }
  0x98   :  { %964 = vmatpush.msra.mxu0 %v304_v53  ;;  %983 = vmatpush.msra.mxu1 %v321_v54  ;;  %v419_v53 = vld [vmem:[%s6750_s1 + $0xbd8] sm:$0xff]  ;;  %v369_v54 = vld [vmem:[%s6750_s1 + $0xa48] sm:$0xff] }
  0x99   :  { %1004 = vmatpush.msra.mxu2 %v336_v55  ;;  %1023 = vmatpush.msra.mxu3 %v353_v56  ;;  %v386_v55 = vld [vmem:[%s6750_s1 + $0xad0] sm:$0xff]  ;;  %v401_v56 = vld [vmem:[%s6750_s1 + $0xb48] sm:$0xff] }
  0x9a   :  { %965 = vmatpush.msra.mxu0 %v303_v57  ;;  %984 = vmatpush.msra.mxu1 %v320_v58  ;;  %v418_v57 = vld [vmem:[%s6750_s1 + $0xbd0] sm:$0xff]  ;;  %v368_v58 = vld [vmem:[%s6750_s1 + $0xa40] sm:$0xff] }
  0x9b   :  { %1005 = vmatpush.msra.mxu2 %v335_v59  ;;  %1024 = vmatpush.msra.mxu3 %v352_v60  ;;  %v385_v59 = vld [vmem:[%s6750_s1 + $0xac8] sm:$0xff]  ;;  %v400_v60 = vld [vmem:[%s6750_s1 + $0xb40] sm:$0xff] }
  0x9c   :  { %966 = vmatpush.msra.mxu0 %v302_v61  ;;  %985 = vmatpush.msra.mxu1 %v319_v62  ;;  %v417_v61 = vld [vmem:[%s6750_s1 + $0xbc8] sm:$0xff]  ;;  %v367_v62 = vld [vmem:[%s6750_s1 + $0xa38] sm:$0xff] }
  0x9d   :  { %1006 = vmatpush.msra.mxu2 %v334_v63  ;;  %1025 = vmatpush.msra.mxu3 %v351_v0  ;;  %v384_v63 = vld [vmem:[%s6750_s1 + $0xac0] sm:$0xff]  ;;  %v399_v0 = vld [vmem:[%s6750_s1 + $0xb38] sm:$0xff] }
  0x9e   :  { %967 = vmatpush.msra.mxu0 %v301_v1  ;;  %986 = vmatpush.msra.mxu1 %v318_v2  ;;  %v416_v1 = vld [vmem:[%s6750_s1 + $0xbc0] sm:$0xff]  ;;  %v366_v2 = vld [vmem:[%s6750_s1 + $0xa30] sm:$0xff] }
  0x9f   :  { %1007 = vmatpush.msra.mxu2 %v333_v3  ;;  %1026 = vmatpush.msra.mxu3 %v350_v4  ;;  %v383_v3 = vld [vmem:[%s6750_s1 + $0xab8] sm:$0xff]  ;;  %v398_v4 = vld [vmem:[%s6750_s1 + $0xb30] sm:$0xff] }
  0xa0   :  { %968 = vmatpush.msra.mxu0 %v300_v5  ;;  %987 = vmatpush.msra.mxu1 %v317_v6  ;;  %v415_v5 = vld [vmem:[%s6750_s1 + $0xbb8] sm:$0xff]  ;;  %v365_v6 = vld [vmem:[%s6750_s1 + $0xa28] sm:$0xff] }
  0xa1   :  { %1008 = vmatpush.msra.mxu2 %v332_v7  ;;  %1027 = vmatpush.msra.mxu3 %v349_v8  ;;  %v382_v7 = vld [vmem:[%s6750_s1 + $0xab0] sm:$0xff]  ;;  %v397_v8 = vld [vmem:[%s6750_s1 + $0xb28] sm:$0xff] }
  0xa2   :  { %969 = vmatpush.msra.mxu0 %v299_v9  ;;  %988 = vmatpush.msra.mxu1 %v316_v10  ;;  %v414_v9 = vld [vmem:[%s6750_s1 + $0xbb0] sm:$0xff]  ;;  %v364_v10 = vld [vmem:[%s6750_s1 + $0xa20] sm:$0xff] }
  0xa3   :  { %1009 = vmatpush.msra.mxu2 %v331_v11  ;;  %1028 = vmatpush.msra.mxu3 %v348_v12  ;;  %v381_v11 = vld [vmem:[%s6750_s1 + $0xaa8] sm:$0xff]  ;;  %v396_v12 = vld [vmem:[%s6750_s1 + $0xb20] sm:$0xff] }
  0xa4   :  { %970 = vmatpush.msra.mxu0 %v298_v13  ;;  %989 = vmatpush.msra.mxu1 %v315_v14  ;;  %v413_v13 = vld [vmem:[%s6750_s1 + $0xba8] sm:$0xff]  ;;  %v363_v14 = vld [vmem:[%s6750_s1 + $0xa18] sm:$0xff] }
  0xa5   :  { %1010 = vmatpush.msra.mxu2 %v330_v15  ;;  %1029 = vmatpush.msra.mxu3 %v347_v16  ;;  %v380_v15 = vld [vmem:[%s6750_s1 + $0xaa0] sm:$0xff]  ;;  %v395_v16 = vld [vmem:[%s6750_s1 + $0xb18] sm:$0xff] }
  0xa6   :  { %971 = vmatpush.msra.mxu0 %v297_v17  ;;  %990 = vmatpush.msra.mxu1 %v314_v18  ;;  %v412_v17 = vld [vmem:[%s6750_s1 + $0xba0] sm:$0xff]  ;;  %v362_v18 = vld [vmem:[%s6750_s1 + $0xa10] sm:$0xff] }
  0xa7   :  { %1011 = vmatpush.msra.mxu2 %v329_v19  ;;  %1030 = vmatpush.msra.mxu3 %v346_v20  ;;  %v379_v19 = vld [vmem:[%s6750_s1 + $0xa98] sm:$0xff]  ;;  %v394_v20 = vld [vmem:[%s6750_s1 + $0xb10] sm:$0xff] }
  0xa8   :  { %972 = vmatpush.msra.mxu0 %v296_v21  ;;  %991 = vmatpush.msra.mxu1 %v313_v22  ;;  %v411_v21 = vld [vmem:[%s6750_s1 + $0xb98] sm:$0xff]  ;;  %v361_v22 = vld [vmem:[%s6750_s1 + $0xa08] sm:$0xff] }
  0xa9   :  { %1012 = vmatpush.msra.mxu2 %v328_v23  ;;  %1031 = vmatpush.msra.mxu3 %v345_v24  ;;  %v378_v23 = vld [vmem:[%s6750_s1 + $0xa90] sm:$0xff]  ;;  %v393_v24 = vld [vmem:[%s6750_s1 + $0xb08] sm:$0xff] }
  0xaa   :  { %973 = vmatmul.f32.vlgmr.msra.gmra.mxu0 %v4489_v35  ;;  %1013 = vmatmul.f32.vlgmr.msra.gmra.mxu2 %v4491_v36  ;;  %v423_v35 = vld [vmem:[%s6750_s1 + $0xbf8] sm:$0xff]  ;;  %v373_v36 = vld [vmem:[%s6750_s1 + $0xa68] sm:$0xff] }
  0xab   :  { %1037 = vmatpush.msrb.mxu0 %v375_v25  ;;  %1077 = vmatpush.msrb.mxu2 %v407_v26  ;;  %v410_v25 = vld [vmem:[%s6750_s1 + $0xb90] sm:$0xff]  ;;  %v360_v26 = vld [vmem:[%s6750_s1 + $0xa00] sm:$0xff] }
  0xac   :  { %992 = vmatpush.msra.mxu1 %v312_v27  ;;  %1032 = vmatpush.msra.mxu3 %v344_v28  ;;  %v377_v27 = vld [vmem:[%s6750_s1 + $0xa88] sm:$0xff]  ;;  %v392_v28 = vld [vmem:[%s6750_s1 + $0xb00] sm:$0xff] }
  0xad   :  { %993 = vmatmul.f32.vlgmr.msra.gmra.mxu1 %v4493_v37  ;;  %1033 = vmatmul.f32.vlgmr.msra.gmra.mxu3 %v4495_v38  ;;  %v389_v37 = vld [vmem:[%s6750_s1 + $0xae8] sm:$0xff]  ;;  %v404_v38 = vld [vmem:[%s6750_s1 + $0xb60] sm:$0xff] }
  0xae   :  { %1038 = vmatpush.msrb.mxu0 %v374_v31  ;;  %1057 = vmatpush.msrb.mxu1 %v391_v32  ;;  %v439_v31 = vld [vmem:[%s6750_s1 + $0xc78] sm:$0xff] }
  0xaf   :  { %1078 = vmatpush.msrb.mxu2 %v406_v34  ;;  %1097 = vmatpush.msrb.mxu3 %v423_v35  ;;  %v471_v32 = vld [vmem:[%s6750_s1 + $0xd78] sm:$0xff]  ;;  %v376_v34 = vld [vmem:[%s6750_s1 + $0xa80] sm:$0xff] }
  0xb0   :  { %1039 = vmatpush.msrb.mxu0 %v373_v36  ;;  %1058 = vmatpush.msrb.mxu1 %v390_v39  ;;  %v408_v35 = vld [vmem:[%s6750_s1 + $0xb80] sm:$0xff]  ;;  %v438_v36 = vld [vmem:[%s6750_s1 + $0xc70] sm:$0xff]  ;;  %v455_v39 = vld [vmem:[%s6750_s1 + $0xcf8] sm:$0xff] }
  0xb1   :  { %1079 = vmatpush.msrb.mxu2 %v405_v30  ;;  %1098 = vmatpush.msrb.mxu3 %v422_v33  ;;  %v470_v30 = vld [vmem:[%s6750_s1 + $0xd70] sm:$0xff]  ;;  %v487_v33 = vld [vmem:[%s6750_s1 + $0xdf8] sm:$0xff] }
  0xb2   :  { %1040 = vmatpush.msrb.mxu0 %v372_v44  ;;  %1059 = vmatpush.msrb.mxu1 %v389_v37  ;;  %v469_v44 = vld [vmem:[%s6750_s1 + $0xd68] sm:$0xff] }
  0xb3   :  { %1080 = vmatpush.msrb.mxu2 %v404_v38  ;;  %1099 = vmatpush.msrb.mxu3 %v421_v45  ;;  %v453_v37 = vld [vmem:[%s6750_s1 + $0xce8] sm:$0xff]  ;;  %v468_v38 = vld [vmem:[%s6750_s1 + $0xd60] sm:$0xff] }
  0xb4   :  { %1041 = vmatpush.msrb.mxu0 %v371_v46  ;;  %1060 = vmatpush.msrb.mxu1 %v388_v47  ;;  %v485_v45 = vld [vmem:[%s6750_s1 + $0xde8] sm:$0xff]  ;;  %v435_v46 = vld [vmem:[%s6750_s1 + $0xc58] sm:$0xff]  ;;  %v452_v47 = vld [vmem:[%s6750_s1 + $0xce0] sm:$0xff] }
  0xb5   :  { %1081 = vmatpush.msrb.mxu2 %v403_v48  ;;  %1100 = vmatpush.msrb.mxu3 %v420_v49  ;;  %v467_v48 = vld [vmem:[%s6750_s1 + $0xd58] sm:$0xff]  ;;  %v484_v49 = vld [vmem:[%s6750_s1 + $0xde0] sm:$0xff] }
  0xb6   :  { %1042 = vmatpush.msrb.mxu0 %v370_v50  ;;  %1061 = vmatpush.msrb.mxu1 %v387_v51  ;;  %v434_v50 = vld [vmem:[%s6750_s1 + $0xc50] sm:$0xff]  ;;  %v451_v51 = vld [vmem:[%s6750_s1 + $0xcd8] sm:$0xff] }
  0xb7   :  { %1082 = vmatpush.msrb.mxu2 %v402_v52  ;;  %1101 = vmatpush.msrb.mxu3 %v419_v53  ;;  %v466_v52 = vld [vmem:[%s6750_s1 + $0xd50] sm:$0xff]  ;;  %v483_v53 = vld [vmem:[%s6750_s1 + $0xdd8] sm:$0xff] }
  0xb8   :  { %1043 = vmatpush.msrb.mxu0 %v369_v54  ;;  %1062 = vmatpush.msrb.mxu1 %v386_v55  ;;  %v433_v54 = vld [vmem:[%s6750_s1 + $0xc48] sm:$0xff]  ;;  %v450_v55 = vld [vmem:[%s6750_s1 + $0xcd0] sm:$0xff] }
  0xb9   :  { %1083 = vmatpush.msrb.mxu2 %v401_v56  ;;  %1102 = vmatpush.msrb.mxu3 %v418_v57  ;;  %v465_v56 = vld [vmem:[%s6750_s1 + $0xd48] sm:$0xff]  ;;  %v482_v57 = vld [vmem:[%s6750_s1 + $0xdd0] sm:$0xff] }
  0xba   :  { %1044 = vmatpush.msrb.mxu0 %v368_v58  ;;  %1063 = vmatpush.msrb.mxu1 %v385_v59  ;;  %v432_v58 = vld [vmem:[%s6750_s1 + $0xc40] sm:$0xff]  ;;  %v449_v59 = vld [vmem:[%s6750_s1 + $0xcc8] sm:$0xff] }
  0xbb   :  { %1084 = vmatpush.msrb.mxu2 %v400_v60  ;;  %1103 = vmatpush.msrb.mxu3 %v417_v61  ;;  %v464_v60 = vld [vmem:[%s6750_s1 + $0xd40] sm:$0xff]  ;;  %v481_v61 = vld [vmem:[%s6750_s1 + $0xdc8] sm:$0xff] }
  0xbc   :  { %1045 = vmatpush.msrb.mxu0 %v367_v62  ;;  %1064 = vmatpush.msrb.mxu1 %v384_v63  ;;  %v431_v62 = vld [vmem:[%s6750_s1 + $0xc38] sm:$0xff]  ;;  %v448_v63 = vld [vmem:[%s6750_s1 + $0xcc0] sm:$0xff] }
  0xbd   :  { %1085 = vmatpush.msrb.mxu2 %v399_v0  ;;  %1104 = vmatpush.msrb.mxu3 %v416_v1  ;;  %v463_v0 = vld [vmem:[%s6750_s1 + $0xd38] sm:$0xff]  ;;  %v480_v1 = vld [vmem:[%s6750_s1 + $0xdc0] sm:$0xff] }
  0xbe   :  { %1046 = vmatpush.msrb.mxu0 %v366_v2  ;;  %1065 = vmatpush.msrb.mxu1 %v383_v3  ;;  %v430_v2 = vld [vmem:[%s6750_s1 + $0xc30] sm:$0xff]  ;;  %v447_v3 = vld [vmem:[%s6750_s1 + $0xcb8] sm:$0xff] }
  0xbf   :  { %1086 = vmatpush.msrb.mxu2 %v398_v4  ;;  %1105 = vmatpush.msrb.mxu3 %v415_v5  ;;  %v462_v4 = vld [vmem:[%s6750_s1 + $0xd30] sm:$0xff]  ;;  %v479_v5 = vld [vmem:[%s6750_s1 + $0xdb8] sm:$0xff] }
  0xc0   :  { %1047 = vmatpush.msrb.mxu0 %v365_v6  ;;  %1066 = vmatpush.msrb.mxu1 %v382_v7  ;;  %v429_v6 = vld [vmem:[%s6750_s1 + $0xc28] sm:$0xff]  ;;  %v446_v7 = vld [vmem:[%s6750_s1 + $0xcb0] sm:$0xff] }
  0xc1   :  { %1087 = vmatpush.msrb.mxu2 %v397_v8  ;;  %1106 = vmatpush.msrb.mxu3 %v414_v9  ;;  %v461_v8 = vld [vmem:[%s6750_s1 + $0xd28] sm:$0xff]  ;;  %v478_v9 = vld [vmem:[%s6750_s1 + $0xdb0] sm:$0xff] }
  0xc2   :  { %1048 = vmatpush.msrb.mxu0 %v364_v10  ;;  %1067 = vmatpush.msrb.mxu1 %v381_v11  ;;  %v428_v10 = vld [vmem:[%s6750_s1 + $0xc20] sm:$0xff]  ;;  %v445_v11 = vld [vmem:[%s6750_s1 + $0xca8] sm:$0xff] }
  0xc3   :  { %1088 = vmatpush.msrb.mxu2 %v396_v12  ;;  %1107 = vmatpush.msrb.mxu3 %v413_v13  ;;  %v460_v12 = vld [vmem:[%s6750_s1 + $0xd20] sm:$0xff]  ;;  %v477_v13 = vld [vmem:[%s6750_s1 + $0xda8] sm:$0xff] }
  0xc4   :  { %1049 = vmatpush.msrb.mxu0 %v363_v14  ;;  %1068 = vmatpush.msrb.mxu1 %v380_v15  ;;  %v427_v14 = vld [vmem:[%s6750_s1 + $0xc18] sm:$0xff]  ;;  %v444_v15 = vld [vmem:[%s6750_s1 + $0xca0] sm:$0xff] }
  0xc5   :  { %1089 = vmatpush.msrb.mxu2 %v395_v16  ;;  %1108 = vmatpush.msrb.mxu3 %v412_v17  ;;  %v459_v16 = vld [vmem:[%s6750_s1 + $0xd18] sm:$0xff]  ;;  %v476_v17 = vld [vmem:[%s6750_s1 + $0xda0] sm:$0xff] }
  0xc6   :  { %1050 = vmatpush.msrb.mxu0 %v362_v18  ;;  %1069 = vmatpush.msrb.mxu1 %v379_v19  ;;  %v426_v18 = vld [vmem:[%s6750_s1 + $0xc10] sm:$0xff]  ;;  %v443_v19 = vld [vmem:[%s6750_s1 + $0xc98] sm:$0xff] }
  0xc7   :  { %1090 = vmatpush.msrb.mxu2 %v394_v20  ;;  %1109 = vmatpush.msrb.mxu3 %v411_v21  ;;  %v458_v20 = vld [vmem:[%s6750_s1 + $0xd10] sm:$0xff]  ;;  %v475_v21 = vld [vmem:[%s6750_s1 + $0xd98] sm:$0xff] }
  0xc8   :  { %1051 = vmatpush.msrb.mxu0 %v361_v22  ;;  %1070 = vmatpush.msrb.mxu1 %v378_v23  ;;  %v425_v22 = vld [vmem:[%s6750_s1 + $0xc08] sm:$0xff]  ;;  %v442_v23 = vld [vmem:[%s6750_s1 + $0xc90] sm:$0xff] }
  0xc9   :  { %1091 = vmatpush.msrb.mxu2 %v393_v24  ;;  %1110 = vmatpush.msrb.mxu3 %v410_v25  ;;  %v457_v24 = vld [vmem:[%s6750_s1 + $0xd08] sm:$0xff]  ;;  %v474_v25 = vld [vmem:[%s6750_s1 + $0xd90] sm:$0xff] }
  0xca   :  { %1052 = vmatpush.msrb.mxu0 %v360_v26  ;;  %1071 = vmatpush.msrb.mxu1 %v377_v27  ;;  %v424_v26 = vld [vmem:[%s6750_s1 + $0xc00] sm:$0xff]  ;;  %v441_v27 = vld [vmem:[%s6750_s1 + $0xc88] sm:$0xff] }
  0xcb   :  { %1092 = vmatpush.msrb.mxu2 %v392_v28  ;;  %1111 = vmatpush.msrb.mxu3 %v409_v29  ;;  %v456_v28 = vld [vmem:[%s6750_s1 + $0xd00] sm:$0xff]  ;;  %v473_v29 = vld [vmem:[%s6750_s1 + $0xd88] sm:$0xff] }
  0xcc   :  { %1053 = vmatmul.f32.vlgmr.msrb.gmra.mxu0 %v4696_v40  ;;  %1093 = vmatmul.f32.vlgmr.msrb.gmra.mxu2 %v4698_v41  ;;  %v437_v40 = vld [vmem:[%s6750_s1 + $0xc68] sm:$0xff]  ;;  %v454_v41 = vld [vmem:[%s6750_s1 + $0xcf0] sm:$0xff] }
  0xcd   :  { %1117 = vmatpush.msra.mxu0 %v439_v31  ;;  %1157 = vmatpush.msra.mxu2 %v471_v32  ;;  %v597_v31 = vld.sshfl [vmem:[#allocation1] sm:$0xff pattern:$0x73625140]  ;;  %v599_v32 = vld.sshfl [vmem:[#allocation1 + $0x10] sm:$0xff pattern:$0x73625140] }
  0xce   :  { %1072 = vmatpush.msrb.mxu1 %v376_v34  ;;  %1112 = vmatpush.msrb.mxu3 %v408_v35  ;;  %v503_v34 = vld [vmem:[%s6750_s1 + $0xe78] sm:$0xff] }
  0xcf   :  { %1073 = vmatmul.f32.vlgmr.msrb.gmra.mxu1 %v4700_v42  ;;  %1113 = vmatmul.f32.vlgmr.msrb.gmra.mxu3 %v4702_v43  ;;  %v486_v42 = vld [vmem:[%s6750_s1 + $0xdf0] sm:$0xff]  ;;  %v436_v43 = vld [vmem:[%s6750_s1 + $0xc60] sm:$0xff]  ;;  %v535_v35 = vld [vmem:[%s6750_s1 + $0xf78] sm:$0xff] }
  0xd0   :  { %1118 = vmatpush.msra.mxu0 %v438_v36  ;;  %1137 = vmatpush.msra.mxu1 %v455_v39  ;;  %v440_v36 = vld [vmem:[%s6750_s1 + $0xc80] sm:$0xff] }
  0xd1   :  { %1158 = vmatpush.msra.mxu2 %v470_v30  ;;  %1177 = vmatpush.msra.mxu3 %v487_v33  ;;  %v472_v39 = vld [vmem:[%s6750_s1 + $0xd80] sm:$0xff]  ;;  %v598_v30 = vld.sshfl [vmem:[#allocation1 + $0x8] sm:$0xff pattern:$0x73625140] }
  0xd2   :  { %1119 = vmatpush.msra.mxu0 %v437_v40  ;;  %1138 = vmatpush.msra.mxu1 %v454_v41  ;;  %v600_v33 = vld.sshfl [vmem:[#allocation1 + $0x18] sm:$0xff pattern:$0x73625140]  ;;  %v502_v40 = vld [vmem:[%s6750_s1 + $0xe70] sm:$0xff] }
  0xd3   :  { %1159 = vmatpush.msra.mxu2 %v469_v44  ;;  %1178 = vmatpush.msra.mxu3 %v486_v42  ;;  %v519_v41 = vld [vmem:[%s6750_s1 + $0xef8] sm:$0xff]  ;;  %v534_v44 = vld [vmem:[%s6750_s1 + $0xf70] sm:$0xff] }
  0xd4   :  { %1120 = vmatpush.msra.mxu0 %v436_v43  ;;  %1139 = vmatpush.msra.mxu1 %v453_v37  ;;  %v551_v42 = vld [vmem:[%s6750_s1 + $0xff8] sm:$0xff]  ;;  %v501_v43 = vld [vmem:[%s6750_s1 + $0xe68] sm:$0xff]  ;;  %v518_v37 = vld [vmem:[%s6750_s1 + $0xef0] sm:$0xff] }
  0xd5   :  { %1160 = vmatpush.msra.mxu2 %v468_v38  ;;  %1179 = vmatpush.msra.mxu3 %v485_v45  ;;  %v533_v38 = vld [vmem:[%s6750_s1 + $0xf68] sm:$0xff]  ;;  %v550_v45 = vld [vmem:[%s6750_s1 + $0xff0] sm:$0xff] }
  0xd6   :  { %1121 = vmatpush.msra.mxu0 %v435_v46  ;;  %1140 = vmatpush.msra.mxu1 %v452_v47  ;;  %v500_v46 = vld [vmem:[%s6750_s1 + $0xe60] sm:$0xff]  ;;  %v517_v47 = vld [vmem:[%s6750_s1 + $0xee8] sm:$0xff] }
  0xd7   :  { %1161 = vmatpush.msra.mxu2 %v467_v48  ;;  %1180 = vmatpush.msra.mxu3 %v484_v49  ;;  %v532_v48 = vld [vmem:[%s6750_s1 + $0xf60] sm:$0xff]  ;;  %v549_v49 = vld [vmem:[%s6750_s1 + $0xfe8] sm:$0xff] }
  0xd8   :  { %1122 = vmatpush.msra.mxu0 %v434_v50  ;;  %1141 = vmatpush.msra.mxu1 %v451_v51  ;;  %v499_v50 = vld [vmem:[%s6750_s1 + $0xe58] sm:$0xff]  ;;  %v516_v51 = vld [vmem:[%s6750_s1 + $0xee0] sm:$0xff] }
  0xd9   :  { %1162 = vmatpush.msra.mxu2 %v466_v52  ;;  %1181 = vmatpush.msra.mxu3 %v483_v53  ;;  %v531_v52 = vld [vmem:[%s6750_s1 + $0xf58] sm:$0xff]  ;;  %v548_v53 = vld [vmem:[%s6750_s1 + $0xfe0] sm:$0xff] }
  0xda   :  { %1123 = vmatpush.msra.mxu0 %v433_v54  ;;  %1142 = vmatpush.msra.mxu1 %v450_v55  ;;  %v498_v54 = vld [vmem:[%s6750_s1 + $0xe50] sm:$0xff]  ;;  %v515_v55 = vld [vmem:[%s6750_s1 + $0xed8] sm:$0xff] }
  0xdb   :  { %1163 = vmatpush.msra.mxu2 %v465_v56  ;;  %1182 = vmatpush.msra.mxu3 %v482_v57  ;;  %v530_v56 = vld [vmem:[%s6750_s1 + $0xf50] sm:$0xff]  ;;  %v547_v57 = vld [vmem:[%s6750_s1 + $0xfd8] sm:$0xff] }
  0xdc   :  { %1124 = vmatpush.msra.mxu0 %v432_v58  ;;  %1143 = vmatpush.msra.mxu1 %v449_v59  ;;  %v497_v58 = vld [vmem:[%s6750_s1 + $0xe48] sm:$0xff]  ;;  %v514_v59 = vld [vmem:[%s6750_s1 + $0xed0] sm:$0xff] }
  0xdd   :  { %1164 = vmatpush.msra.mxu2 %v464_v60  ;;  %1183 = vmatpush.msra.mxu3 %v481_v61  ;;  %v529_v60 = vld [vmem:[%s6750_s1 + $0xf48] sm:$0xff]  ;;  %v546_v61 = vld [vmem:[%s6750_s1 + $0xfd0] sm:$0xff] }
  0xde   :  { %1125 = vmatpush.msra.mxu0 %v431_v62  ;;  %1144 = vmatpush.msra.mxu1 %v448_v63  ;;  %v496_v62 = vld [vmem:[%s6750_s1 + $0xe40] sm:$0xff]  ;;  %v513_v63 = vld [vmem:[%s6750_s1 + $0xec8] sm:$0xff] }
  0xdf   :  { %1165 = vmatpush.msra.mxu2 %v463_v0  ;;  %1184 = vmatpush.msra.mxu3 %v480_v1  ;;  %v528_v0 = vld [vmem:[%s6750_s1 + $0xf40] sm:$0xff]  ;;  %v545_v1 = vld [vmem:[%s6750_s1 + $0xfc8] sm:$0xff] }
  0xe0   :  { %1126 = vmatpush.msra.mxu0 %v430_v2  ;;  %1145 = vmatpush.msra.mxu1 %v447_v3  ;;  %v495_v2 = vld [vmem:[%s6750_s1 + $0xe38] sm:$0xff]  ;;  %v512_v3 = vld [vmem:[%s6750_s1 + $0xec0] sm:$0xff] }
  0xe1   :  { %1166 = vmatpush.msra.mxu2 %v462_v4  ;;  %1185 = vmatpush.msra.mxu3 %v479_v5  ;;  %v527_v4 = vld [vmem:[%s6750_s1 + $0xf38] sm:$0xff]  ;;  %v544_v5 = vld [vmem:[%s6750_s1 + $0xfc0] sm:$0xff] }
  0xe2   :  { %1127 = vmatpush.msra.mxu0 %v429_v6  ;;  %1146 = vmatpush.msra.mxu1 %v446_v7  ;;  %v494_v6 = vld [vmem:[%s6750_s1 + $0xe30] sm:$0xff]  ;;  %v511_v7 = vld [vmem:[%s6750_s1 + $0xeb8] sm:$0xff] }
  0xe3   :  { %1167 = vmatpush.msra.mxu2 %v461_v8  ;;  %1186 = vmatpush.msra.mxu3 %v478_v9  ;;  %v526_v8 = vld [vmem:[%s6750_s1 + $0xf30] sm:$0xff]  ;;  %v543_v9 = vld [vmem:[%s6750_s1 + $0xfb8] sm:$0xff] }
  0xe4   :  { %1128 = vmatpush.msra.mxu0 %v428_v10  ;;  %1147 = vmatpush.msra.mxu1 %v445_v11  ;;  %v493_v10 = vld [vmem:[%s6750_s1 + $0xe28] sm:$0xff]  ;;  %v510_v11 = vld [vmem:[%s6750_s1 + $0xeb0] sm:$0xff] }
  0xe5   :  { %1168 = vmatpush.msra.mxu2 %v460_v12  ;;  %1187 = vmatpush.msra.mxu3 %v477_v13  ;;  %v525_v12 = vld [vmem:[%s6750_s1 + $0xf28] sm:$0xff]  ;;  %v542_v13 = vld [vmem:[%s6750_s1 + $0xfb0] sm:$0xff] }
  0xe6   :  { %1129 = vmatpush.msra.mxu0 %v427_v14  ;;  %1148 = vmatpush.msra.mxu1 %v444_v15  ;;  %v492_v14 = vld [vmem:[%s6750_s1 + $0xe20] sm:$0xff]  ;;  %v509_v15 = vld [vmem:[%s6750_s1 + $0xea8] sm:$0xff] }
  0xe7   :  { %1169 = vmatpush.msra.mxu2 %v459_v16  ;;  %1188 = vmatpush.msra.mxu3 %v476_v17  ;;  %v524_v16 = vld [vmem:[%s6750_s1 + $0xf20] sm:$0xff]  ;;  %v541_v17 = vld [vmem:[%s6750_s1 + $0xfa8] sm:$0xff] }
  0xe8   :  { %1130 = vmatpush.msra.mxu0 %v426_v18  ;;  %1149 = vmatpush.msra.mxu1 %v443_v19  ;;  %v491_v18 = vld [vmem:[%s6750_s1 + $0xe18] sm:$0xff]  ;;  %v508_v19 = vld [vmem:[%s6750_s1 + $0xea0] sm:$0xff] }
  0xe9   :  { %1170 = vmatpush.msra.mxu2 %v458_v20  ;;  %1189 = vmatpush.msra.mxu3 %v475_v21  ;;  %v523_v20 = vld [vmem:[%s6750_s1 + $0xf18] sm:$0xff]  ;;  %v540_v21 = vld [vmem:[%s6750_s1 + $0xfa0] sm:$0xff] }
  0xea   :  { %1131 = vmatpush.msra.mxu0 %v425_v22  ;;  %1150 = vmatpush.msra.mxu1 %v442_v23  ;;  %v490_v22 = vld [vmem:[%s6750_s1 + $0xe10] sm:$0xff]  ;;  %v507_v23 = vld [vmem:[%s6750_s1 + $0xe98] sm:$0xff] }
  0xeb   :  { %1171 = vmatpush.msra.mxu2 %v457_v24  ;;  %1190 = vmatpush.msra.mxu3 %v474_v25  ;;  %v522_v24 = vld [vmem:[%s6750_s1 + $0xf10] sm:$0xff]  ;;  %v539_v25 = vld [vmem:[%s6750_s1 + $0xf98] sm:$0xff] }
  0xec   :  { %1132 = vmatpush.msra.mxu0 %v424_v26  ;;  %1151 = vmatpush.msra.mxu1 %v441_v27  ;;  %v489_v26 = vld [vmem:[%s6750_s1 + $0xe08] sm:$0xff]  ;;  %v506_v27 = vld [vmem:[%s6750_s1 + $0xe90] sm:$0xff] }
  0xed   :  { %1172 = vmatpush.msra.mxu2 %v456_v28  ;;  %1191 = vmatpush.msra.mxu3 %v473_v29  ;;  %v521_v28 = vld [vmem:[%s6750_s1 + $0xf08] sm:$0xff]  ;;  %v538_v29 = vld [vmem:[%s6750_s1 + $0xf90] sm:$0xff] }
  0xee   :  { %1133 = vmatmul.f32.vlgmr.msra.gmra.mxu0 %v597_v31  ;;  %1173 = vmatmul.f32.vlgmr.msra.gmra.mxu2 %v599_v32  ;;  %v488_v31 = vld [vmem:[%s6750_s1 + $0xe00] sm:$0xff]  ;;  %v505_v32 = vld [vmem:[%s6750_s1 + $0xe88] sm:$0xff] }
  0xef   :  { %1197 = vmatpush.msrb.mxu0 %v503_v34  ;;  %1237 = vmatpush.msrb.mxu2 %v535_v35  ;;  %v520_v34 = vld [vmem:[%s6750_s1 + $0xf00] sm:$0xff]  ;;  %v537_v35 = vld [vmem:[%s6750_s1 + $0xf88] sm:$0xff] }
  0xf0   :  { %1152 = vmatpush.msra.mxu1 %v440_v36  ;;  %1192 = vmatpush.msra.mxu3 %v472_v39  ;;  %v601_v36 = vld.sshfl [vmem:[#allocation1 + $0x20] sm:$0xff pattern:$0x73625140]  ;;  %v603_v39 = vld.sshfl [vmem:[#allocation1 + $0x30] sm:$0xff pattern:$0x73625140] }
  0xf1   :  { %1153 = vmatmul.f32.vlgmr.msra.gmra.mxu1 %v598_v30  ;;  %1193 = vmatmul.f32.vlgmr.msra.gmra.mxu3 %v600_v33  ;;  %v504_v30 = vld [vmem:[%s6750_s1 + $0xe80] sm:$0xff] }
  0xf2   :  { %1198 = vmatpush.msrb.mxu0 %v502_v40  ;;  %1217 = vmatpush.msrb.mxu1 %v519_v41  ;;  %v536_v33 = vld [vmem:[%s6750_s1 + $0xf80] sm:$0xff]  ;;  %v602_v40 = vld.sshfl [vmem:[#allocation1 + $0x28] sm:$0xff pattern:$0x73625140] }
  0xf3   :  { %1238 = vmatpush.msrb.mxu2 %v534_v44  ;;  %1257 = vmatpush.msrb.mxu3 %v551_v42  ;;  %v604_v41 = vld.sshfl [vmem:[#allocation1 + $0x38] sm:$0xff pattern:$0x73625140]  ;;  %v3506_v44 = vld [vmem:[%s6752_s2] ss:$0 sm:$0xff]  ;;  %v654_v42 = vpop.f32.mrf.mxu0 }
  0xf4   :  { %1199 = vmatpush.msrb.mxu0 %v501_v43  ;;  %1218 = vmatpush.msrb.mxu1 %v518_v37  ;;  %v655_v43 = vadd.f32 %v3506_v44, %v654_v42  ;;  %v674_v37 = vpop.f32.mrf.mxu1 }
  0xf5   :  { %1239 = vmatpush.msrb.mxu2 %v533_v38  ;;  %1258 = vmatpush.msrb.mxu3 %v550_v45  ;;  %v694_v45 = vpop.f32.mrf.mxu2 }
  0xf6   :  { %1200 = vmatpush.msrb.mxu0 %v500_v46  ;;  %1219 = vmatpush.msrb.mxu1 %v517_v47  ;;  %v675_v38 = vadd.f32 %v674_v37, %v655_v43  ;;  %v714_v47 = vpop.f32.mrf.mxu3 }
  0xf7   :  { %1240 = vmatpush.msrb.mxu2 %v532_v48  ;;  %1259 = vmatpush.msrb.mxu3 %v549_v49 }
  0xf8   :  { %1201 = vmatpush.msrb.mxu0 %v499_v50  ;;  %1220 = vmatpush.msrb.mxu1 %v516_v51  ;;  %v695_v46 = vadd.f32 %v694_v45, %v675_v38 }
  0xf9   :  { %1241 = vmatpush.msrb.mxu2 %v531_v52  ;;  %1260 = vmatpush.msrb.mxu3 %v548_v53 }
  0xfa   :  { %1202 = vmatpush.msrb.mxu0 %v498_v54  ;;  %1221 = vmatpush.msrb.mxu1 %v515_v55  ;;  %v715_v48 = vadd.f32 %v714_v47, %v695_v46 }
  0xfb   :  { %1242 = vmatpush.msrb.mxu2 %v530_v56  ;;  %1261 = vmatpush.msrb.mxu3 %v547_v57  ;;  %v734_v49 = vpop.f32.mrf.mxu0 }
  0xfc   :  { %1203 = vmatpush.msrb.mxu0 %v497_v58  ;;  %1222 = vmatpush.msrb.mxu1 %v514_v59  ;;  %v735_v50 = vadd.f32 %v734_v49, %v715_v48  ;;  %v754_v51 = vpop.f32.mrf.mxu1 }
  0xfd   :  { %1243 = vmatpush.msrb.mxu2 %v529_v60  ;;  %1262 = vmatpush.msrb.mxu3 %v546_v61  ;;  %v774_v53 = vpop.f32.mrf.mxu2 }
  0xfe   :  { %1204 = vmatpush.msrb.mxu0 %v496_v62  ;;  %1223 = vmatpush.msrb.mxu1 %v513_v63  ;;  %v755_v52 = vadd.f32 %v754_v51, %v735_v50  ;;  %v794_v55 = vpop.f32.mrf.mxu3 }
  0xff   :  { %1244 = vmatpush.msrb.mxu2 %v528_v0  ;;  %1263 = vmatpush.msrb.mxu3 %v545_v1 }
 0x100   :  { %1205 = vmatpush.msrb.mxu0 %v495_v2  ;;  %1224 = vmatpush.msrb.mxu1 %v512_v3  ;;  %v775_v54 = vadd.f32 %v774_v53, %v755_v52 }
 0x101   :  { %1245 = vmatpush.msrb.mxu2 %v527_v4  ;;  %1264 = vmatpush.msrb.mxu3 %v544_v5 }
 0x102   :  { %1206 = vmatpush.msrb.mxu0 %v494_v6  ;;  %1225 = vmatpush.msrb.mxu1 %v511_v7  ;;  %v795_v57 = vadd.f32 %v794_v55, %v775_v54 }
 0x103   :  { %1246 = vmatpush.msrb.mxu2 %v526_v8  ;;  %1265 = vmatpush.msrb.mxu3 %v543_v9  ;;  %v814_v56 = vpop.f32.mrf.mxu0 }
 0x104   :  { %1207 = vmatpush.msrb.mxu0 %v493_v10  ;;  %1226 = vmatpush.msrb.mxu1 %v510_v11  ;;  %v815_v58 = vadd.f32 %v814_v56, %v795_v57  ;;  %v834_v59 = vpop.f32.mrf.mxu1 }
 0x105   :  { %1247 = vmatpush.msrb.mxu2 %v525_v12  ;;  %1266 = vmatpush.msrb.mxu3 %v542_v13  ;;  %v854_v60 = vpop.f32.mrf.mxu2 }
 0x106   :  { %1208 = vmatpush.msrb.mxu0 %v492_v14  ;;  %1227 = vmatpush.msrb.mxu1 %v509_v15  ;;  %v835_v61 = vadd.f32 %v834_v59, %v815_v58  ;;  %v874_v63 = vpop.f32.mrf.mxu3 }
 0x107   :  { %1248 = vmatpush.msrb.mxu2 %v524_v16  ;;  %1267 = vmatpush.msrb.mxu3 %v541_v17 }
 0x108   :  { %1209 = vmatpush.msrb.mxu0 %v491_v18  ;;  %1228 = vmatpush.msrb.mxu1 %v508_v19  ;;  %v855_v62 = vadd.f32 %v854_v60, %v835_v61  ;;  %v1424_v61 = vld [vmem:[%s6755_s5 + $0x310] sm:$0xff] }
 0x109   :  { %1249 = vmatpush.msrb.mxu2 %v523_v20  ;;  %1268 = vmatpush.msrb.mxu3 %v540_v21 }
 0x10a   :  { %1210 = vmatpush.msrb.mxu0 %v490_v22  ;;  %1229 = vmatpush.msrb.mxu1 %v507_v23  ;;  %v875_v1 = vadd.f32 %v874_v63, %v855_v62  ;;  %v1425_v62 = vld [vmem:[%s6755_s5 + $0x318] sm:$0xff]  ;;  %v1422_v63 = vld [vmem:[%s6755_s5 + $0x300] sm:$0xff] }
 0x10b   :  { %1250 = vmatpush.msrb.mxu2 %v522_v24  ;;  %1269 = vmatpush.msrb.mxu3 %v539_v25  ;;  %v894_v0 = vpop.f32.mrf.mxu0 }
 0x10c   :  { %1211 = vmatpush.msrb.mxu0 %v489_v26  ;;  %1230 = vmatpush.msrb.mxu1 %v506_v27  ;;  %v895_v2 = vadd.f32 %v894_v0, %v875_v1  ;;  %v914_v3 = vpop.f32.mrf.mxu1  ;;  %v1423_v0 = vld [vmem:[%s6755_s5 + $0x308] sm:$0xff] }
 0x10d   :  { %1251 = vmatpush.msrb.mxu2 %v521_v28  ;;  %1270 = vmatpush.msrb.mxu3 %v538_v29  ;;  %v934_v4 = vpop.f32.mrf.mxu2 }
 0x10e   :  { %1212 = vmatpush.msrb.mxu0 %v488_v31  ;;  %1231 = vmatpush.msrb.mxu1 %v505_v32  ;;  %v915_v5 = vadd.f32 %v914_v3, %v895_v2  ;;  %v954_v7 = vpop.f32.mrf.mxu3  ;;  %v1392_v2 = vld [vmem:[%s6755_s5 + $0x210] sm:$0xff]  ;;  %v1393_v3 = vld [vmem:[%s6755_s5 + $0x218] sm:$0xff] }
 0x10f   :  { %1252 = vmatpush.msrb.mxu2 %v520_v34  ;;  %1271 = vmatpush.msrb.mxu3 %v537_v35  ;;  %v3577_v34 = vmov 2.0  }
 0x110   :  { %1213 = vmatmul.f32.vlgmr.msrb.gmra.mxu0 %v601_v36  ;;  %1253 = vmatmul.f32.vlgmr.msrb.gmra.mxu2 %v603_v39  ;;  %v935_v6 = vadd.f32 %v934_v4, %v915_v5  ;;  %3509 = vrcp.f32 %v3577_v34  ;;  %v1390_v4 = vld [vmem:[%s6755_s5 + $0x200] sm:$0xff]  ;;  %v1391_v5 = vld [vmem:[%s6755_s5 + $0x208] sm:$0xff]  ;;  %v1333_v34 = vld [vmem:[%s6755_s5 + $0x38] sm:$0xff] }
 0x111   :  { %1232 = vmatpush.msrb.mxu1 %v504_v30  ;;  %1272 = vmatpush.msrb.mxu3 %v536_v33 }
 0x112   :  { %1233 = vmatmul.f32.vlgmr.msrb.gmra.mxu1 %v602_v40  ;;  %1273 = vmatmul.f32.vlgmr.msrb.gmra.mxu3 %v604_v41  ;;  %v955_v9 = vadd.f32 %v954_v7, %v935_v6  ;;  %v1360_v7 = vld [vmem:[%s6755_s5 + $0x110] sm:$0xff] }
 0x113   :  { %1582 = vmatpush.msra.mxu2 %v1424_v61  ;;  %1602 = vmatpush.msra.mxu3 %v1425_v62  ;;  %v1336_v61 = vld [vmem:[%s6755_s5 + $0x50] sm:$0xff]  ;;  %v1337_v62 = vld [vmem:[%s6755_s5 + $0x58] sm:$0xff] }
 0x114   :  { %1542 = vmatpush.msra.mxu0 %v1422_v63  ;;  %1562 = vmatpush.msra.mxu1 %v1423_v0  ;;  %v1334_v63 = vld [vmem:[%s6755_s5 + $0x40] sm:$0xff]  ;;  %v1335_v0 = vld [vmem:[%s6755_s5 + $0x48] sm:$0xff] }
 0x115   :  { %1583 = vmatpush.msra.mxu2 %v1392_v2  ;;  %1603 = vmatpush.msra.mxu3 %v1393_v3  ;;  %v1437_v2 = vld [vmem:[%s6755_s5 + $0x378] sm:$0xff]  ;;  %v1434_v3 = vld [vmem:[%s6755_s5 + $0x360] sm:$0xff] }
 0x116   :  { %v3510_v30 = vpop.eup %3509  ;;  %1543 = vmatpush.msra.mxu0 %v1390_v4  ;;  %1563 = vmatpush.msra.mxu1 %v1391_v5  ;;  %v1435_v4 = vld [vmem:[%s6755_s5 + $0x368] sm:$0xff]  ;;  %v1404_v5 = vld [vmem:[%s6755_s5 + $0x270] sm:$0xff] }
 0x117   :  { %v1286_v41 = vmul.f32 2.0, %v3510_v30  ;;  %vm1290_vm1 = vweird.f32 %v3510_v30  ;;  %1584 = vmatpush.msra.mxu2 %v1360_v7  ;;  %v1402_v7 = vld [vmem:[%s6755_s5 + $0x260] sm:$0xff] }
 0x119   :  { %v1287_v38 = vsub.f32 1.0, %v1286_v41 }
 0x11b   :  { %v1288_v47 = vmul.f32 %v3510_v30, %v1287_v38  ;;  %v3508_v38 = vld [vmem:[%s6754_s4] ss:$0 sm:$0xff] }
 0x11d   :  { %v1289_v50 = vadd.f32 %v3510_v30, %v1288_v47 }
 0x11f   :  { %v5258_v53 = vsel %vm1290_vm1, %v3510_v30, %v1289_v50  ;;  %v1430_v50 = vld [vmem:[%s6755_s5 + $0x340] sm:$0xff] }
 0x127   :  { %v974_v8 = vpop.f32.mrf.mxu0 }
 0x128   :  { %v975_v10 = vadd.f32 %v974_v8, %v955_v9  ;;  %v1361_v8 = vld [vmem:[%s6755_s5 + $0x118] sm:$0xff]  ;;  %v1358_v9 = vld [vmem:[%s6755_s5 + $0x100] sm:$0xff] }
 0x129   :  { %1604 = vmatpush.msra.mxu3 %v1361_v8  ;;  %1544 = vmatpush.msra.mxu0 %v1358_v9  ;;  %v1403_v8 = vld [vmem:[%s6755_s5 + $0x268] sm:$0xff]  ;;  %v1372_v9 = vld [vmem:[%s6755_s5 + $0x170] sm:$0xff] }
 0x12a   :  { %v994_v11 = vpop.f32.mrf.mxu1 }
 0x12b   :  { %v995_v13 = vadd.f32 %v994_v11, %v975_v10  ;;  %v1359_v10 = vld [vmem:[%s6755_s5 + $0x108] sm:$0xff] }
 0x12c   :  { %1564 = vmatpush.msra.mxu1 %v1359_v10  ;;  %v1373_v10 = vld [vmem:[%s6755_s5 + $0x178] sm:$0xff] }
 0x12d   :  { %v1014_v12 = vpop.f32.mrf.mxu2 }
 0x12e   :  { %v1015_v14 = vadd.f32 %v1014_v12, %v995_v13  ;;  %v1328_v12 = vld [vmem:[%s6755_s5 + $0x10] sm:$0xff]  ;;  %v1329_v13 = vld [vmem:[%s6755_s5 + $0x18] sm:$0xff] }
 0x12f   :  { %1585 = vmatpush.msra.mxu2 %v1328_v12  ;;  %1605 = vmatpush.msra.mxu3 %v1329_v13  ;;  %v1371_v12 = vld [vmem:[%s6755_s5 + $0x168] sm:$0xff]  ;;  %v1340_v13 = vld [vmem:[%s6755_s5 + $0x70] sm:$0xff] }
 0x130   :  { %v1034_v15 = vpop.f32.mrf.mxu3 }
 0x131   :  { %v1035_v17 = vadd.f32 %v1034_v15, %v1015_v14  ;;  %v1326_v14 = vld [vmem:[%s6755_s5] sm:$0xff]  ;;  %v1327_v15 = vld [vmem:[%s6755_s5 + $0x8] sm:$0xff] }
 0x132   :  { %1545 = vmatpush.msra.mxu0 %v1326_v14  ;;  %1565 = vmatpush.msra.mxu1 %v1327_v15  ;;  %v1341_v14 = vld [vmem:[%s6755_s5 + $0x78] sm:$0xff]  ;;  %v1338_v15 = vld [vmem:[%s6755_s5 + $0x60] sm:$0xff] }
 0x149   :  { %v1054_v16 = vpop.f32.mrf.mxu0 }
 0x14a   :  { %v1055_v18 = vadd.f32 %v1054_v16, %v1035_v17  ;;  %v1428_v17 = vld [vmem:[%s6755_s5 + $0x330] sm:$0xff] }
 0x14b   :  { %1662 = vmatpush.msrb.mxu2 %v1428_v17  ;;  %v1440_v17 = vld [vmem:[%s6755_s5 + $0x390] sm:$0xff] }
 0x14c   :  { %v1074_v19 = vpop.f32.mrf.mxu1 }
 0x14d   :  { %v1075_v21 = vadd.f32 %v1074_v19, %v1055_v18  ;;  %v1429_v18 = vld [vmem:[%s6755_s5 + $0x338] sm:$0xff]  ;;  %v1426_v19 = vld [vmem:[%s6755_s5 + $0x320] sm:$0xff] }
 0x14e   :  { %1682 = vmatpush.msrb.mxu3 %v1429_v18  ;;  %1622 = vmatpush.msrb.mxu0 %v1426_v19  ;;  %v1441_v18 = vld [vmem:[%s6755_s5 + $0x398] sm:$0xff]  ;;  %v1438_v19 = vld [vmem:[%s6755_s5 + $0x380] sm:$0xff] }
 0x14f   :  { %v1094_v20 = vpop.f32.mrf.mxu2 }
 0x150   :  { %v1095_v22 = vadd.f32 %v1094_v20, %v1075_v21  ;;  %v1427_v21 = vld [vmem:[%s6755_s5 + $0x328] sm:$0xff] }
 0x151   :  { %1642 = vmatpush.msrb.mxu1 %v1427_v21  ;;  %v1408_v21 = vld [vmem:[%s6755_s5 + $0x290] sm:$0xff] }
 0x152   :  { %v1114_v23 = vpop.f32.mrf.mxu3 }
 0x153   :  { %v1115_v25 = vadd.f32 %v1114_v23, %v1095_v22  ;;  %v1396_v22 = vld [vmem:[%s6755_s5 + $0x230] sm:$0xff]  ;;  %v1397_v23 = vld [vmem:[%s6755_s5 + $0x238] sm:$0xff] }
 0x154   :  { %1663 = vmatpush.msrb.mxu2 %v1396_v22  ;;  %1683 = vmatpush.msrb.mxu3 %v1397_v23  ;;  %v1409_v22 = vld [vmem:[%s6755_s5 + $0x298] sm:$0xff]  ;;  %v1406_v23 = vld [vmem:[%s6755_s5 + $0x280] sm:$0xff] }
 0x16b   :  { %v1134_v24 = vpop.f32.mrf.mxu0 }
 0x16c   :  { %v1135_v26 = vadd.f32 %v1134_v24, %v1115_v25  ;;  %v1394_v24 = vld [vmem:[%s6755_s5 + $0x220] sm:$0xff]  ;;  %v1395_v25 = vld [vmem:[%s6755_s5 + $0x228] sm:$0xff] }
 0x16d   :  { %1623 = vmatpush.msrb.mxu0 %v1394_v24  ;;  %1643 = vmatpush.msrb.mxu1 %v1395_v25  ;;  %v1407_v24 = vld [vmem:[%s6755_s5 + $0x288] sm:$0xff]  ;;  %v1376_v25 = vld [vmem:[%s6755_s5 + $0x190] sm:$0xff] }
 0x16e   :  { %v1154_v27 = vpop.f32.mrf.mxu1 }
 0x16f   :  { %v1155_v29 = vadd.f32 %v1154_v27, %v1135_v26  ;;  %v1364_v26 = vld [vmem:[%s6755_s5 + $0x130] sm:$0xff] }
 0x170   :  { %1664 = vmatpush.msrb.mxu2 %v1364_v26  ;;  %v1377_v26 = vld [vmem:[%s6755_s5 + $0x198] sm:$0xff] }
 0x171   :  { %v1174_v28 = vpop.f32.mrf.mxu2 }
 0x172   :  { %v1175_v31 = vadd.f32 %v1174_v28, %v1155_v29  ;;  %v1365_v28 = vld [vmem:[%s6755_s5 + $0x138] sm:$0xff]  ;;  %v1362_v29 = vld [vmem:[%s6755_s5 + $0x120] sm:$0xff] }
 0x173   :  { %1684 = vmatpush.msrb.mxu3 %v1365_v28  ;;  %1624 = vmatpush.msrb.mxu0 %v1362_v29  ;;  %v1375_v28 = vld [vmem:[%s6755_s5 + $0x188] sm:$0xff]  ;;  %v1344_v29 = vld [vmem:[%s6755_s5 + $0x90] sm:$0xff] }
 0x174   :  { %v1194_v32 = vpop.f32.mrf.mxu3 }
 0x175   :  { %v1195_v35 = vadd.f32 %v1194_v32, %v1175_v31  ;;  %v1363_v31 = vld [vmem:[%s6755_s5 + $0x128] sm:$0xff]  ;;  %v1332_v32 = vld [vmem:[%s6755_s5 + $0x30] sm:$0xff]  ;;  %1685 = vmatpush.msrb.mxu3 %v1333_v34 }
 0x176   :  { %1644 = vmatpush.msrb.mxu1 %v1363_v31  ;;  %1665 = vmatpush.msrb.mxu2 %v1332_v32  ;;  %v1345_v31 = vld [vmem:[%s6755_s5 + $0x98] sm:$0xff]  ;;  %v1342_v32 = vld [vmem:[%s6755_s5 + $0x80] sm:$0xff]  ;;  %v1343_v34 = vld [vmem:[%s6755_s5 + $0x88] sm:$0xff] }
 0x18d   :  { %v1214_v36 = vpop.f32.mrf.mxu0 }
 0x18e   :  { %v1215_v39 = vadd.f32 %v1214_v36, %v1195_v35  ;;  %v1330_v35 = vld [vmem:[%s6755_s5 + $0x20] sm:$0xff]  ;;  %v1331_v36 = vld [vmem:[%s6755_s5 + $0x28] sm:$0xff] }
 0x18f   :  { %v1234_v33 = vpop.f32.mrf.mxu1  ;;  %1625 = vmatpush.msrb.mxu0 %v1330_v35  ;;  %1645 = vmatpush.msrb.mxu1 %v1331_v36  ;;  %v1444_v35 = vld [vmem:[%s6755_s5 + $0x3b0] sm:$0xff]  ;;  %v1445_v36 = vld [vmem:[%s6755_s5 + $0x3b8] sm:$0xff] }
 0x190   :  { %v1235_v40 = vadd.f32 %v1234_v33, %v1215_v39 }
 0x193   :  { %v1254_v44 = vpop.f32.mrf.mxu2 }
 0x194   :  { %v1255_v42 = vadd.f32 %v1254_v44, %v1235_v40 }
 0x195   :  { %v1274_v43 = vpop.f32.mrf.mxu3 }
 0x196   :  { %v1275_v37 = vadd.f32 %v1274_v43, %v1255_v42  ;;  %v3507_v42 = vld [vmem:[%s6753_s3] ss:$0 sm:$0xff] }
 0x198   :  { %v1278_v45 = vsel %vm1277_vm0, %v1275_v37, 0.0 }
 0x199   :  { %v1279_v46 = vrot.slane %v1278_v45, 4 }
 0x19b   :  { %v1280_v48 = vadd.f32 %v1279_v46, %v1278_v45 }
 0x19d   :  { %v1281_v49 = vrot.slane %v1280_v48, 2 }
 0x19f   :  { %v1282_v51 = vadd.f32 %v1281_v49, %v1280_v48  ;;  %v1432_v48 = vld [vmem:[%s6755_s5 + $0x350] sm:$0xff]  ;;  %v1433_v49 = vld [vmem:[%s6755_s5 + $0x358] sm:$0xff] }
 0x1a1   :  { %v1283_v52 = vrot.slane %v1282_v51, 1 }
 0x1a3   :  { %v1284_v54 = vadd.f32 %v1283_v52, %v1282_v51  ;;  %v1431_v51 = vld [vmem:[%s6755_s5 + $0x348] sm:$0xff]  ;;  %v1400_v52 = vld [vmem:[%s6755_s5 + $0x250] sm:$0xff] }
 0x1a5   :  { %v1292_v55 = vmul.f32 %v5258_v53, %v1284_v54  ;;  %v1401_v54 = vld [vmem:[%s6755_s5 + $0x258] sm:$0xff] }
 0x1a7   :  { %v5261_v56 = vsub.f32 %v1275_v37, %v1292_v55  ;;  %v1398_v55 = vld [vmem:[%s6755_s5 + $0x240] sm:$0xff] }
 0x1a9   :  { %v1294_v57 = vmul.f32 %v5261_v56, %v5261_v56 }
 0x1ab   :  { %v1295_v58 = vsel %vm1277_vm0, %v1294_v57, 0.0  ;;  %v1368_v57 = vld [vmem:[%s6755_s5 + $0x150] sm:$0xff] }
 0x1ac   :  { %v1296_v59 = vrot.slane %v1295_v58, 4 }
 0x1ae   :  { %v1297_v60 = vadd.f32 %v1296_v59, %v1295_v58  ;;  %v1369_v58 = vld [vmem:[%s6755_s5 + $0x158] sm:$0xff]  ;;  %v1366_v59 = vld [vmem:[%s6755_s5 + $0x140] sm:$0xff] }
 0x1b0   :  { %v1298_v1 = vrot.slane %v1297_v60, 2 }
 0x1b2   :  { %v1299_v6 = vadd.f32 %v1298_v1, %v1297_v60  ;;  %v1367_v60 = vld [vmem:[%s6755_s5 + $0x148] sm:$0xff]  ;;  %v1436_v1 = vld [vmem:[%s6755_s5 + $0x370] sm:$0xff] }
 0x1b4   :  { %v1300_v11 = vrot.slane %v1299_v6, 1 }
 0x1b6   :  { %v1301_v16 = vadd.f32 %v1300_v11, %v1299_v6  ;;  %v1405_v6 = vld [vmem:[%s6755_s5 + $0x278] sm:$0xff]  ;;  %v1370_v11 = vld [vmem:[%s6755_s5 + $0x160] sm:$0xff] }
 0x1b8   :  { %v1302_v20 = vmul.f32 %v1301_v16, %v5258_v53  ;;  %v1339_v16 = vld [vmem:[%s6755_s5 + $0x68] sm:$0xff] }
 0x1ba   :  { %v1303_v27 = vadd.f32 0.8, %v1302_v20  ;;  %v1439_v20 = vld [vmem:[%s6755_s5 + $0x388] sm:$0xff] }
 0x1bc   :  { %3511 = vrsqrt.f32 %v1303_v27  ;;  %vm1310_vm3 = vweird.f32 %v1303_v27 }
 0x1c2   :  { %v3512_v39 = vpop.eup %3511 }
 0x1c3   :  { %v1305_v30 = vmul.f32 %v3512_v39, %v1303_v27  ;;  %vm1311_vm2 = vweird.f32 %v3512_v39  ;;  %v1374_v27 = vld [vmem:[%s6755_s5 + $0x180] sm:$0xff] }
 0x1c4   :  { %vm1312_vm4 = vmor %vm1310_vm3, %vm1311_vm2  ;;  %vm3428_vm3 = vcmask 1045508  }
 0x1c5   :  { %v1306_v33 = vmul.f32 %v3512_v39, %v1305_v30  ;;  %v1443_v30 = vld [vmem:[%s6755_s5 + $0x3a8] sm:$0xff] }
 0x1c7   :  { %v1307_v40 = vmul.f32 0.5, %v1306_v33  ;;  %v1412_v33 = vld [vmem:[%s6755_s5 + $0x2b0] sm:$0xff] }
 0x1c9   :  { %v1308_v41 = vsub.f32 1.5, %v1307_v40  ;;  %v1413_v40 = vld [vmem:[%s6755_s5 + $0x2b8] sm:$0xff] }
 0x1cb   :  { %v1309_v44 = vmul.f32 %v3512_v39, %v1308_v41  ;;  %v1410_v41 = vld [vmem:[%s6755_s5 + $0x2a0] sm:$0xff] }
 0x1cd   :  { %v1313_v43 = vsel %vm1312_vm4, %v3512_v39, %v1309_v44  ;;  %v1442_v39 = vld [vmem:[%s6755_s5 + $0x3a0] sm:$0xff]  ;;  %v1411_v44 = vld [vmem:[%s6755_s5 + $0x2a8] sm:$0xff]  ;;  %vm3430_vm4 = vcmask 1043456  }
 0x1ce   :  { %v1314_v37 = vmul.f32 %v1313_v43, %v5261_v56  ;;  %v1399_v56 = vld [vmem:[%s6755_s5 + $0x248] sm:$0xff]  ;;  %v1381_v43 = vld [vmem:[%s6755_s5 + $0x1b8] sm:$0xff] }
 0x1d0   :  { %v1319_v45 = vmul.f32 %v3507_v42, %v1314_v37  ;;  %v1380_v42 = vld [vmem:[%s6755_s5 + $0x1b0] sm:$0xff]  ;;  %v1378_v37 = vld [vmem:[%s6755_s5 + $0x1a0] sm:$0xff] }
 0x1d2   :  { %v1324_v46 = vadd.f32 %v3508_v38, %v1319_v45  ;;  %v1379_v38 = vld [vmem:[%s6755_s5 + $0x1a8] sm:$0xff]  ;;  %v1348_v45 = vld [vmem:[%s6755_s5 + $0xb0] sm:$0xff] }
 0x1d4   :  { %v5370_v47 = vmax.f32 %v1324_v46, 0.0  ;;  %v1349_v46 = vld [vmem:[%s6755_s5 + $0xb8] sm:$0xff] }
 0x1d6   :  { %3473 = vmatmul.msk.f32.vlgmr.msra.gmra.mxu0 %vm1526_vm5, %v5370_v47  ;;  %3474 = vmatmul.msk.f32.vlgmr.msra.gmra.mxu1 %vm1526_vm5, %v5370_v47 }
 0x1d7   :  { %3475 = vmatmul.msk.f32.vlgmr.msra.gmra.mxu2 %vm1526_vm5, %v5370_v47  ;;  %3476 = vmatmul.msk.f32.vlgmr.msra.gmra.mxu3 %vm1526_vm5, %v5370_v47 }
 0x1d8   :  { %1742 = vmatpush.msra.mxu2 %v1432_v48  ;;  %1762 = vmatpush.msra.mxu3 %v1433_v49  ;;  %v1346_v48 = vld [vmem:[%s6755_s5 + $0xa0] sm:$0xff]  ;;  %v1347_v49 = vld [vmem:[%s6755_s5 + $0xa8] sm:$0xff] }
 0x1d9   :  { %1702 = vmatpush.msra.mxu0 %v1430_v50  ;;  %1722 = vmatpush.msra.mxu1 %v1431_v51  ;;  %v1448_v50 = vld [vmem:[%s6755_s5 + $0x3d0] sm:$0xff]  ;;  %v1449_v51 = vld [vmem:[%s6755_s5 + $0x3d8] sm:$0xff] }
 0x1da   :  { %1743 = vmatpush.msra.mxu2 %v1400_v52  ;;  %1763 = vmatpush.msra.mxu3 %v1401_v54  ;;  %v1446_v52 = vld [vmem:[%s6755_s5 + $0x3c0] sm:$0xff]  ;;  %v1447_v54 = vld [vmem:[%s6755_s5 + $0x3c8] sm:$0xff] }
 0x1db   :  { %1703 = vmatpush.msra.mxu0 %v1398_v55  ;;  %1723 = vmatpush.msra.mxu1 %v1399_v56  ;;  %v1416_v55 = vld [vmem:[%s6755_s5 + $0x2d0] sm:$0xff]  ;;  %v1417_v56 = vld [vmem:[%s6755_s5 + $0x2d8] sm:$0xff] }
 0x1dc   :  { %1744 = vmatpush.msra.mxu2 %v1368_v57  ;;  %1764 = vmatpush.msra.mxu3 %v1369_v58  ;;  %v1414_v57 = vld [vmem:[%s6755_s5 + $0x2c0] sm:$0xff]  ;;  %v1415_v58 = vld [vmem:[%s6755_s5 + $0x2c8] sm:$0xff] }
 0x1dd   :  { %1704 = vmatpush.msra.mxu0 %v1366_v59  ;;  %1724 = vmatpush.msra.mxu1 %v1367_v60  ;;  %v1384_v59 = vld [vmem:[%s6755_s5 + $0x1d0] sm:$0xff]  ;;  %v1385_v60 = vld [vmem:[%s6755_s5 + $0x1d8] sm:$0xff] }
 0x1de   :  { %3477 = vmatmul.msk.f32.vlgmr.msrb.gmra.mxu0 %vm1526_vm5, %v5370_v47  ;;  %3478 = vmatmul.msk.f32.vlgmr.msrb.gmra.mxu1 %vm1526_vm5, %v5370_v47 }
 0x1df   :  { %3479 = vmatmul.msk.f32.vlgmr.msrb.gmra.mxu2 %vm1526_vm5, %v5370_v47  ;;  %3480 = vmatmul.msk.f32.vlgmr.msrb.gmra.mxu3 %vm1526_vm5, %v5370_v47 }
 0x1e0   :  { %1745 = vmatpush.msra.mxu2 %v1336_v61  ;;  %1765 = vmatpush.msra.mxu3 %v1337_v62  ;;  %v1382_v61 = vld [vmem:[%s6755_s5 + $0x1c0] sm:$0xff]  ;;  %v1383_v62 = vld [vmem:[%s6755_s5 + $0x1c8] sm:$0xff] }
 0x1e1   :  { %1705 = vmatpush.msra.mxu0 %v1334_v63  ;;  %1725 = vmatpush.msra.mxu1 %v1335_v0  ;;  %v1352_v63 = vld [vmem:[%s6755_s5 + $0xd0] sm:$0xff]  ;;  %v1353_v0 = vld [vmem:[%s6755_s5 + $0xd8] sm:$0xff] }
 0x1e2   :  { %1822 = vmatpush.msrb.mxu2 %v1436_v1  ;;  %1842 = vmatpush.msrb.mxu3 %v1437_v2  ;;  %v1350_v1 = vld [vmem:[%s6755_s5 + $0xc0] sm:$0xff]  ;;  %v1351_v2 = vld [vmem:[%s6755_s5 + $0xc8] sm:$0xff] }
 0x1e3   :  { %1782 = vmatpush.msrb.mxu0 %v1434_v3  ;;  %1802 = vmatpush.msrb.mxu1 %v1435_v4  ;;  %v1452_v3 = vld [vmem:[%s6755_s5 + $0x3f0] sm:$0xff]  ;;  %v1453_v4 = vld [vmem:[%s6755_s5 + $0x3f8] sm:$0xff] }
 0x1e4   :  { %1823 = vmatpush.msrb.mxu2 %v1404_v5  ;;  %1843 = vmatpush.msrb.mxu3 %v1405_v6  ;;  %v1450_v5 = vld [vmem:[%s6755_s5 + $0x3e0] sm:$0xff]  ;;  %v1451_v6 = vld [vmem:[%s6755_s5 + $0x3e8] sm:$0xff] }
 0x1e5   :  { %1783 = vmatpush.msrb.mxu0 %v1402_v7  ;;  %1803 = vmatpush.msrb.mxu1 %v1403_v8  ;;  %v1420_v7 = vld [vmem:[%s6755_s5 + $0x2f0] sm:$0xff]  ;;  %v1421_v8 = vld [vmem:[%s6755_s5 + $0x2f8] sm:$0xff] }
 0x1e6   :  { %3481 = vmatmul.msk.f32.vlgmr.msra.gmra.mxu0 %vm1526_vm5, %v5370_v47  ;;  %3482 = vmatmul.msk.f32.vlgmr.msra.gmra.mxu1 %vm1526_vm5, %v5370_v47 }
 0x1e7   :  { %3483 = vmatmul.msk.f32.vlgmr.msra.gmra.mxu2 %vm1526_vm5, %v5370_v47  ;;  %3484 = vmatmul.msk.f32.vlgmr.msra.gmra.mxu3 %vm1526_vm5, %v5370_v47 }
 0x1e8   :  { %1824 = vmatpush.msrb.mxu2 %v1372_v9  ;;  %1844 = vmatpush.msrb.mxu3 %v1373_v10  ;;  %v1418_v9 = vld [vmem:[%s6755_s5 + $0x2e0] sm:$0xff]  ;;  %v1419_v10 = vld [vmem:[%s6755_s5 + $0x2e8] sm:$0xff] }
 0x1e9   :  { %1784 = vmatpush.msrb.mxu0 %v1370_v11  ;;  %1804 = vmatpush.msrb.mxu1 %v1371_v12  ;;  %v1388_v11 = vld [vmem:[%s6755_s5 + $0x1f0] sm:$0xff]  ;;  %v1389_v12 = vld [vmem:[%s6755_s5 + $0x1f8] sm:$0xff] }
 0x1ea   :  { %1825 = vmatpush.msrb.mxu2 %v1340_v13  ;;  %1845 = vmatpush.msrb.mxu3 %v1341_v14  ;;  %v1386_v13 = vld [vmem:[%s6755_s5 + $0x1e0] sm:$0xff]  ;;  %v1387_v14 = vld [vmem:[%s6755_s5 + $0x1e8] sm:$0xff] }
 0x1eb   :  { %1785 = vmatpush.msrb.mxu0 %v1338_v15  ;;  %1805 = vmatpush.msrb.mxu1 %v1339_v16  ;;  %v1356_v15 = vld [vmem:[%s6755_s5 + $0xf0] sm:$0xff]  ;;  %v1357_v16 = vld [vmem:[%s6755_s5 + $0xf8] sm:$0xff] }
 0x1ec   :  { %1902 = vmatpush.msra.mxu2 %v1440_v17  ;;  %1922 = vmatpush.msra.mxu3 %v1441_v18  ;;  %v1354_v17 = vld [vmem:[%s6755_s5 + $0xe0] sm:$0xff]  ;;  %v1355_v18 = vld [vmem:[%s6755_s5 + $0xe8] sm:$0xff] }
 0x1ed   :  { %1862 = vmatpush.msra.mxu0 %v1438_v19  ;;  %1882 = vmatpush.msra.mxu1 %v1439_v20  ;;  %v1454_v19 = vld [vmem:[%s6756_s6] sm:$0xff] }
 0x1ee   :  { %3485 = vmatmul.msk.f32.vlgmr.msrb.gmra.mxu0 %vm1526_vm5, %v5370_v47  ;;  %3486 = vmatmul.msk.f32.vlgmr.msrb.gmra.mxu1 %vm1526_vm5, %v5370_v47  ;;  %v1462_v20 = vperm.slane %v1454_v19, 0 }
 0x1ef   :  { %3487 = vmatmul.msk.f32.vlgmr.msrb.gmra.mxu2 %vm1526_vm5, %v5370_v47  ;;  %3488 = vmatmul.msk.f32.vlgmr.msrb.gmra.mxu3 %vm1526_vm5, %v5370_v47 }
 0x1f0   :  { %1903 = vmatpush.msra.mxu2 %v1408_v21  ;;  %1923 = vmatpush.msra.mxu3 %v1409_v22  ;;  %v1463_v21 = vperm.slane %v1454_v19, 1 }
 0x1f1   :  { %1863 = vmatpush.msra.mxu0 %v1406_v23  ;;  %1883 = vmatpush.msra.mxu1 %v1407_v24 }
 0x1f2   :  { %1904 = vmatpush.msra.mxu2 %v1376_v25  ;;  %1924 = vmatpush.msra.mxu3 %v1377_v26 }
 0x1f3   :  { %1864 = vmatpush.msra.mxu0 %v1374_v27  ;;  %1884 = vmatpush.msra.mxu1 %v1375_v28 }
 0x1f4   :  { %1905 = vmatpush.msra.mxu2 %v1344_v29  ;;  %1925 = vmatpush.msra.mxu3 %v1345_v31  ;;  %v1464_v31 = vperm.slane %v1454_v19, 2 }
 0x1f5   :  { %1865 = vmatpush.msra.mxu0 %v1342_v32  ;;  %1885 = vmatpush.msra.mxu1 %v1343_v34  ;;  %v1465_v32 = vperm.slane %v1454_v19, 3  ;;  %v1467_v34 = vperm.slane %v1454_v19, 5 }
 0x1f6   :  { %3489 = vmatmul.msk.f32.vlgmr.msra.gmra.mxu0 %vm1526_vm5, %v5370_v47  ;;  %3490 = vmatmul.msk.f32.vlgmr.msra.gmra.mxu1 %vm1526_vm5, %v5370_v47 }
 0x1f7   :  { %3491 = vmatmul.msk.f32.vlgmr.msra.gmra.mxu2 %vm1526_vm5, %v5370_v47  ;;  %3492 = vmatmul.msk.f32.vlgmr.msra.gmra.mxu3 %vm1526_vm5, %v5370_v47 }
 0x1f8   :  { %1982 = vmatpush.msrb.mxu2 %v1444_v35  ;;  %2002 = vmatpush.msrb.mxu3 %v1445_v36 }
 0x1f9   :  { %1942 = vmatpush.msrb.mxu0 %v1442_v39  ;;  %1962 = vmatpush.msrb.mxu1 %v1443_v30 }
 0x1fa   :  { %1983 = vmatpush.msrb.mxu2 %v1412_v33  ;;  %2003 = vmatpush.msrb.mxu3 %v1413_v40 }
 0x1fb   :  { %1943 = vmatpush.msrb.mxu0 %v1410_v41  ;;  %1963 = vmatpush.msrb.mxu1 %v1411_v44 }
 0x1fc   :  { %1984 = vmatpush.msrb.mxu2 %v1380_v42  ;;  %2004 = vmatpush.msrb.mxu3 %v1381_v43 }
 0x1fd   :  { %1944 = vmatpush.msrb.mxu0 %v1378_v37  ;;  %1964 = vmatpush.msrb.mxu1 %v1379_v38 }
 0x1fe   :  { %1985 = vmatpush.msrb.mxu2 %v1348_v45  ;;  %2005 = vmatpush.msrb.mxu3 %v1349_v46 }
 0x1ff   :  { %1945 = vmatpush.msrb.mxu0 %v1346_v48  ;;  %1965 = vmatpush.msrb.mxu1 %v1347_v49 }
 0x200   :  { %3493 = vmatmul.msk.f32.vlgmr.msrb.gmra.mxu0 %vm1526_vm5, %v5370_v47  ;;  %3494 = vmatmul.msk.f32.vlgmr.msrb.gmra.mxu1 %vm1526_vm5, %v5370_v47 }
 0x201   :  { %3495 = vmatmul.msk.f32.vlgmr.msrb.gmra.mxu2 %vm1526_vm5, %v5370_v47  ;;  %3496 = vmatmul.msk.f32.vlgmr.msrb.gmra.mxu3 %vm1526_vm5, %v5370_v47 }
 0x202   :  { %2062 = vmatpush.msra.mxu2 %v1448_v50  ;;  %2082 = vmatpush.msra.mxu3 %v1449_v51 }
 0x203   :  { %2022 = vmatpush.msra.mxu0 %v1446_v52  ;;  %2042 = vmatpush.msra.mxu1 %v1447_v54 }
 0x204   :  { %2063 = vmatpush.msra.mxu2 %v1416_v55  ;;  %2083 = vmatpush.msra.mxu3 %v1417_v56 }
 0x205   :  { %2023 = vmatpush.msra.mxu0 %v1414_v57  ;;  %2043 = vmatpush.msra.mxu1 %v1415_v58 }
 0x206   :  { %2064 = vmatpush.msra.mxu2 %v1384_v59  ;;  %2084 = vmatpush.msra.mxu3 %v1385_v60 }
 0x207   :  { %2024 = vmatpush.msra.mxu0 %v1382_v61  ;;  %2044 = vmatpush.msra.mxu1 %v1383_v62  ;;  %v1468_v61 = vperm.slane %v1454_v19, 6  ;;  %v1469_v62 = vperm.slane %v1454_v19, 7 }
 0x208   :  { %2065 = vmatpush.msra.mxu2 %v1352_v63  ;;  %2085 = vmatpush.msra.mxu3 %v1353_v0 }
 0x209   :  { %2025 = vmatpush.msra.mxu0 %v1350_v1  ;;  %2045 = vmatpush.msra.mxu1 %v1351_v2 }
 0x20a   :  { %3497 = vmatmul.msk.f32.vlgmr.msra.gmra.mxu0 %vm1526_vm5, %v5370_v47  ;;  %3498 = vmatmul.msk.f32.vlgmr.msra.gmra.mxu1 %vm1526_vm5, %v5370_v47 }
 0x20b   :  { %3499 = vmatmul.msk.f32.vlgmr.msra.gmra.mxu2 %vm1526_vm5, %v5370_v47  ;;  %3500 = vmatmul.msk.f32.vlgmr.msra.gmra.mxu3 %vm1526_vm5, %v5370_v47 }
 0x20c   :  { %2142 = vmatpush.msrb.mxu2 %v1452_v3  ;;  %2162 = vmatpush.msrb.mxu3 %v1453_v4 }
 0x20d   :  { %2102 = vmatpush.msrb.mxu0 %v1450_v5  ;;  %2122 = vmatpush.msrb.mxu1 %v1451_v6 }
 0x20e   :  { %2143 = vmatpush.msrb.mxu2 %v1420_v7  ;;  %2163 = vmatpush.msrb.mxu3 %v1421_v8 }
 0x20f   :  { %2103 = vmatpush.msrb.mxu0 %v1418_v9  ;;  %2123 = vmatpush.msrb.mxu1 %v1419_v10 }
 0x210   :  { %2144 = vmatpush.msrb.mxu2 %v1388_v11  ;;  %2164 = vmatpush.msrb.mxu3 %v1389_v12 }
 0x211   :  { %2104 = vmatpush.msrb.mxu0 %v1386_v13  ;;  %2124 = vmatpush.msrb.mxu1 %v1387_v14 }
 0x212   :  { %2145 = vmatpush.msrb.mxu2 %v1356_v15  ;;  %2165 = vmatpush.msrb.mxu3 %v1357_v16 }
 0x213   :  { %2105 = vmatpush.msrb.mxu0 %v1354_v17  ;;  %2125 = vmatpush.msrb.mxu1 %v1355_v18 }
 0x214   :  { %3501 = vmatmul.msk.f32.vlgmr.msrb.gmra.mxu0 %vm1526_vm5, %v5370_v47  ;;  %3502 = vmatmul.msk.f32.vlgmr.msrb.gmra.mxu1 %vm1526_vm5, %v5370_v47 }
 0x215   :  { %3503 = vmatmul.msk.f32.vlgmr.msrb.gmra.mxu2 %vm1526_vm5, %v5370_v47  ;;  %3504 = vmatmul.msk.f32.vlgmr.msrb.gmra.mxu3 %vm1526_vm5, %v5370_v47  ;;  %v1466_v47 = vperm.slane %v1454_v19, 4 }
 0x253   :  { %v1547_v22 = vpop.f32.mrf.mxu0  ;;  %v1567_v23 = vpop.f32.mrf.mxu1 }
 0x254   :  { %v1548_v24 = vadd.f32 %v1547_v22, %v1462_v20  ;;  %v1568_v25 = vadd.f32 %v1567_v23, %v1463_v21 }
 0x256   :  { %v2171_v26 = vsel %vm2170_vm6, %v1548_v24, 0.0  ;;  %v2178_v27 = vsel %vm2170_vm6, %v1568_v25, 0.0 }
 0x257   :  { %v2172_v28 = vrot.slane %v2171_v26, 4  ;;  %v2179_v29 = vrot.slane %v2178_v27, 4 }
 0x259   :  { %v2173_v35 = vadd.f32 %v2172_v28, %v2171_v26  ;;  %v2180_v36 = vadd.f32 %v2179_v29, %v2178_v27 }
 0x25a   :  { %v1587_v39 = vpop.f32.mrf.mxu2  ;;  %v1607_v30 = vpop.f32.mrf.mxu3 }
 0x25b   :  { %v2174_v33 = vrot.slane %v2173_v35, 2  ;;  %v2181_v40 = vrot.slane %v2180_v36, 2  ;;  %v5729_v41 = vadd.f32 %v1587_v39, %v1464_v31  ;;  %v5731_v44 = vadd.f32 %v1607_v30, %v1465_v32  ;;  %v1627_v42 = vpop.f32.mrf.mxu0  ;;  %v1647_v43 = vpop.f32.mrf.mxu1 }
 0x25c   :  { %v5733_v37 = vadd.f32 %v1627_v42, %v1466_v47  ;;  %v5735_v38 = vadd.f32 %v1647_v43, %v1467_v34 }
 0x25d   :  { %v2175_v45 = vadd.f32 %v2174_v33, %v2173_v35  ;;  %v2182_v46 = vadd.f32 %v2181_v40, %v2180_v36  ;;  %v2185_v48 = vsel %vm2170_vm6, %v5729_v41, 0.0  ;;  %v2192_v49 = vsel %vm2170_vm6, %v5731_v44, 0.0 }
 0x25e   :  { %v2186_v50 = vrot.slane %v2185_v48, 4  ;;  %v2193_v51 = vrot.slane %v2192_v49, 4  ;;  %v2199_v52 = vsel %vm2170_vm6, %v5733_v37, 0.0  ;;  %v2206_v54 = vsel %vm2170_vm6, %v5735_v38, 0.0 }
 0x25f   :  { %v2176_v55 = vrot.slane %v2175_v45, 1  ;;  %v2183_v56 = vrot.slane %v2182_v46, 1  ;;  %v2200_v57 = vrot.slane %v2199_v52, 4  ;;  %v2207_v58 = vrot.slane %v2206_v54, 4 }
 0x260   :  { %v2187_v59 = vadd.f32 %v2186_v50, %v2185_v48  ;;  %v2194_v60 = vadd.f32 %v2193_v51, %v2192_v49 }
 0x261   :  { %v2177_v63 = vadd.f32 %v2176_v55, %v2175_v45  ;;  %v2184_v0 = vadd.f32 %v2183_v56, %v2182_v46  ;;  %v2201_v1 = vadd.f32 %v2200_v57, %v2199_v52  ;;  %v2208_v2 = vadd.f32 %v2207_v58, %v2206_v54 }
 0x262   :  { %v2188_v3 = vrot.slane %v2187_v59, 2  ;;  %v2195_v4 = vrot.slane %v2194_v60, 2  ;;  %v1667_v5 = vpop.f32.mrf.mxu2  ;;  %v1687_v6 = vpop.f32.mrf.mxu3 }
 0x263   :  { %v2395_v7 = vmul.f32 %v2177_v63, %v5258_v53  ;;  %v2396_v8 = vmul.f32 %v2184_v0, %v5258_v53  ;;  %v2202_v9 = vrot.slane %v2201_v1, 2  ;;  %v2209_v10 = vrot.slane %v2208_v2, 2 }
 0x264   :  { %v2189_v11 = vadd.f32 %v2188_v3, %v2187_v59  ;;  %v2196_v12 = vadd.f32 %v2195_v4, %v2194_v60  ;;  %v5747_v13 = vadd.f32 %v1667_v5, %v1468_v61  ;;  %v5749_v14 = vadd.f32 %v1687_v6, %v1469_v62 }
 0x265   :  { %v5751_v15 = vsub.f32 %v1548_v24, %v2395_v7  ;;  %v5753_v16 = vsub.f32 %v1568_v25, %v2396_v8  ;;  %v2203_v17 = vadd.f32 %v2202_v9, %v2201_v1  ;;  %v2210_v18 = vadd.f32 %v2209_v10, %v2208_v2 }
 0x266   :  { %v2190_v19 = vrot.slane %v2189_v11, 1  ;;  %v2197_v20 = vrot.slane %v2196_v12, 1  ;;  %v2213_v21 = vsel %vm2170_vm6, %v5747_v13, 0.0  ;;  %v2220_v25 = vsel %vm2170_vm6, %v5749_v14, 0.0 }
 0x267   :  { %v2459_v22 = vmul.f32 %v5751_v15, %v5751_v15  ;;  %v2460_v23 = vmul.f32 %v5753_v16, %v5753_v16  ;;  %v2204_v26 = vrot.slane %v2203_v17, 1  ;;  %v2211_v27 = vrot.slane %v2210_v18, 1 }
 0x268   :  { %v2191_v28 = vadd.f32 %v2190_v19, %v2189_v11  ;;  %v2198_v24 = vadd.f32 %v2197_v20, %v2196_v12  ;;  %v2214_v29 = vrot.slane %v2213_v21, 4  ;;  %v2221_v52 = vrot.slane %v2220_v25, 4 }
 0x269   :  { %v2491_v31 = vsel %vm2170_vm6, %v2459_v22, 0.0  ;;  %v2498_v32 = vsel %vm2170_vm6, %v2460_v23, 0.0  ;;  %v2205_v47 = vadd.f32 %v2204_v26, %v2203_v17  ;;  %v2212_v34 = vadd.f32 %v2211_v27, %v2210_v18 }
 0x26a   :  { %v2492_v35 = vrot.slane %v2491_v31, 4  ;;  %v2499_v36 = vrot.slane %v2498_v32, 4  ;;  %v2397_v39 = vmul.f32 %v2191_v28, %v5258_v53  ;;  %v2398_v30 = vmul.f32 %v2198_v24, %v5258_v53 }
 0x26b   :  { %v2399_v33 = vmul.f32 %v2205_v47, %v5258_v53  ;;  %v2400_v40 = vmul.f32 %v2212_v34, %v5258_v53  ;;  %v2215_v42 = vadd.f32 %v2214_v29, %v2213_v21  ;;  %v2222_v3 = vadd.f32 %v2221_v52, %v2220_v25  ;;  %v5808_v47 = vld [vmem:[%s6757_s7] sm:$0xff] }
 0x26c   :  { %v2493_v43 = vadd.f32 %v2492_v35, %v2491_v31  ;;  %v2500_v45 = vadd.f32 %v2499_v36, %v2498_v32  ;;  %v5770_v46 = vsub.f32 %v5729_v41, %v2397_v39  ;;  %v5773_v48 = vsub.f32 %v5731_v44, %v2398_v30  ;;  %v5802_v32 = vld [vmem:[%s6756_s6 + $0x8] sm:$0xff]  ;;  %v5813_v34 = vld [vmem:[%s6758_s8] sm:$0xff] }
 0x26d   :  { %v5776_v49 = vsub.f32 %v5733_v37, %v2399_v33  ;;  %v5779_v50 = vsub.f32 %v5735_v38, %v2400_v40  ;;  %v2216_v51 = vrot.slane %v2215_v42, 2  ;;  %v2223_v26 = vrot.slane %v2222_v3, 2 }
 0x26e   :  { %v2494_v54 = vrot.slane %v2493_v43, 2  ;;  %v2501_v55 = vrot.slane %v2500_v45, 2  ;;  %v2461_v56 = vmul.f32 %v5770_v46, %v5770_v46  ;;  %v2462_v41 = vmul.f32 %v5773_v48, %v5773_v48 }
 0x26f   :  { %v2463_v44 = vmul.f32 %v5776_v49, %v5776_v49  ;;  %v2464_v37 = vmul.f32 %v5779_v50, %v5779_v50  ;;  %v2217_v57 = vadd.f32 %v2216_v51, %v2215_v42  ;;  %v2224_v42 = vadd.f32 %v2223_v26, %v2222_v3 }
 0x270   :  { %v2495_v58 = vadd.f32 %v2494_v54, %v2493_v43  ;;  %v2502_v38 = vadd.f32 %v2501_v55, %v2500_v45  ;;  %v2505_v59 = vsel %vm2170_vm6, %v2461_v56, 0.0  ;;  %v2512_v60 = vsel %vm2170_vm6, %v2462_v41, 0.0 }
 0x271   :  { %v2506_v61 = vrot.slane %v2505_v59, 4  ;;  %v2513_v62 = vrot.slane %v2512_v60, 4  ;;  %v2519_v63 = vsel %vm2170_vm6, %v2463_v44, 0.0  ;;  %v2526_v0 = vsel %vm2170_vm6, %v2464_v37, 0.0 }
 0x272   :  { %v2496_v1 = vrot.slane %v2495_v58, 1  ;;  %v2503_v2 = vrot.slane %v2502_v38, 1  ;;  %v2520_v6 = vrot.slane %v2519_v63, 4  ;;  %v2527_v7 = vrot.slane %v2526_v0, 4 }
 0x273   :  { %v2507_v4 = vadd.f32 %v2506_v61, %v2505_v59  ;;  %v2514_v5 = vadd.f32 %v2513_v62, %v2512_v60  ;;  %v2218_v10 = vrot.slane %v2217_v57, 1  ;;  %v1470_v43 = vperm.slane %v5802_v32, 0 }
 0x274   :  { %v2497_v8 = vadd.f32 %v2496_v1, %v2495_v58  ;;  %v2504_v9 = vadd.f32 %v2503_v2, %v2502_v38  ;;  %v2521_v17 = vadd.f32 %v2520_v6, %v2519_v63  ;;  %v2528_v18 = vadd.f32 %v2527_v7, %v2526_v0 }
 0x275   :  { %v2508_v11 = vrot.slane %v2507_v4, 2  ;;  %v2515_v12 = vrot.slane %v2514_v5, 2  ;;  %v2219_v23 = vadd.f32 %v2218_v10, %v2217_v57  ;;  %v3139_v45 = vperm.slane %v5808_v47, 0 }
 0x276   :  { %v2715_v19 = vmul.f32 %v2497_v8, %v5258_v53  ;;  %v2716_v20 = vmul.f32 %v2504_v9, %v5258_v53  ;;  %v2522_v24 = vrot.slane %v2521_v17, 2  ;;  %v2529_v29 = vrot.slane %v2528_v18, 2  ;;  %v1707_v9 = vpop.f32.mrf.mxu0 }
 0x277   :  { %v2509_v21 = vadd.f32 %v2508_v11, %v2507_v4  ;;  %v2516_v22 = vadd.f32 %v2515_v12, %v2514_v5  ;;  %v2401_v30 = vmul.f32 %v2219_v23, %v5258_v53  ;;  %v3243_v51 = vperm.slane %v5813_v34, 0 }
 0x278   :  { %v5795_v27 = vadd.f32 1e-05, %v2715_v19  ;;  %v5797_v28 = vadd.f32 1e-05, %v2716_v20  ;;  %v2523_v35 = vadd.f32 %v2522_v24, %v2521_v17  ;;  %v2530_v40 = vadd.f32 %v2529_v29, %v2528_v18 }
 0x279   :  { %v2510_v25 = vrot.slane %v2509_v21, 1  ;;  %v2517_v31 = vrot.slane %v2516_v22, 1  ;;  %v3140_v55 = vperm.slane %v5808_v47, 1  ;;  %v3244_v56 = vperm.slane %v5813_v34, 1 }
 0x27a   :  { %3513 = vrsqrt.f32 %v5795_v27  ;;  %v2524_v33 = vrot.slane %v2523_v35, 1  ;;  %v2531_v44 = vrot.slane %v2530_v40, 1  ;;  %v3141_v57 = vperm.slane %v5808_v47, 2 }
 0x27b   :  { %3515 = vrsqrt.f32 %v5797_v28  ;;  %v2511_v36 = vadd.f32 %v2510_v25, %v2509_v21  ;;  %v2518_v39 = vadd.f32 %v2517_v31, %v2516_v22  ;;  %v5830_v38 = vsub.f32 %v5747_v13, %v2401_v30 }
 0x27c   :  { %v2525_v41 = vadd.f32 %v2524_v33, %v2523_v35  ;;  %v3245_v60 = vperm.slane %v5813_v34, 2  ;;  %v2532_v62 = vadd.f32 %v2531_v44, %v2530_v40  ;;  %v2225_v63 = vrot.slane %v2224_v42, 1 }
 0x27d   :  { %v2717_v52 = vmul.f32 %v2511_v36, %v5258_v53  ;;  %v2718_v54 = vmul.f32 %v2518_v39, %v5258_v53  ;;  %vm2785_vm7 = vweird.f32 %v5795_v27  ;;  %v3142_v2 = vperm.slane %v5808_v47, 3 }
 0x27e   :  { %v2719_v61 = vmul.f32 %v2525_v41, %v5258_v53  ;;  %vm2795_vm8 = vweird.f32 %v5797_v28  ;;  %v3246_v3 = vperm.slane %v5813_v34, 3  ;;  %v3143_v4 = vperm.slane %v5808_v47, 4 }
 0x27f   :  { %v5824_v37 = vadd.f32 1e-05, %v2717_v52  ;;  %v5827_v58 = vadd.f32 1e-05, %v2718_v54  ;;  %v2720_v7 = vmul.f32 %v2532_v62, %v5258_v53  ;;  %v2465_v8 = vmul.f32 %v5830_v38, %v5830_v38 }
 0x280   :  { %v5832_v59 = vpop.eup %3513  ;;  %v5847_v6 = vadd.f32 1e-05, %v2719_v61  ;;  %v3247_v11 = vperm.slane %v5813_v34, 4  ;;  %v3144_v12 = vperm.slane %v5808_v47, 5  ;;  %v2226_v17 = vadd.f32 %v2225_v63, %v2224_v42 }
 0x281   :  { %v3516_v0 = vpop.eup %3515  ;;  %v2780_v1 = vmul.f32 %v5832_v59, %v5795_v27  ;;  %3517 = vrsqrt.f32 %v5824_v37  ;;  %v5855_v19 = vadd.f32 1e-05, %v2720_v7  ;;  %v3248_v20 = vperm.slane %v5813_v34, 5 }
 0x282   :  { %v2790_v13 = vmul.f32 %v3516_v0, %v5797_v28  ;;  %3519 = vrsqrt.f32 %v5827_v58  ;;  %v2533_v22 = vsel %vm2170_vm6, %v2465_v8, 0.0  ;;  %v2402_v23 = vmul.f32 %v2226_v17, %v5258_v53 }
 0x283   :  { %v2781_v5 = vmul.f32 %v5832_v59, %v2780_v1  ;;  %3521 = vrsqrt.f32 %v5847_v6  ;;  %v5860_v26 = vadd.f32 %v1707_v9, %v1470_v43  ;;  %vm2786_vm9 = vweird.f32 %v5832_v59  ;;  %v1727_v9 = vpop.f32.mrf.mxu1 }
 0x284   :  { %v2791_v10 = vmul.f32 %v3516_v0, %v2790_v13  ;;  %3523 = vrsqrt.f32 %v5855_v19  ;;  %v2534_v25 = vrot.slane %v2533_v22, 4  ;;  %vm2796_vm10 = vweird.f32 %v3516_v0  ;;  %vm5873_vm11 = vmor %vm2785_vm7, %vm2786_vm9 }
 0x285   :  { %v2782_v18 = vmul.f32 0.5, %v2781_v5  ;;  %v1471_v39 = vperm.slane %v5802_v32, 1  ;;  %v5869_v42 = vsub.f32 %v5749_v14, %v2402_v23  ;;  %vm2805_vm12 = vweird.f32 %v5824_v37  ;;  %vm2797_vm14 = vmor %vm2795_vm8, %vm2796_vm10 }
 0x286   :  { %v2792_v21 = vmul.f32 0.5, %v2791_v10  ;;  %v2535_v40 = vadd.f32 %v2534_v25, %v2533_v22  ;;  %vm2815_vm13 = vweird.f32 %v5827_v58  ;;  %v2227_v27 = vsel %vm2170_vm6, %v5860_v26, 0.0 }
 0x287   :  { %v3518_v24 = vpop.eup %3517  ;;  %v2783_v29 = vsub.f32 1.5, %v2782_v18  ;;  %v2466_v8 = vmul.f32 %v5869_v42, %v5869_v42  ;;  %v5902_v25 = vadd.f32 %v1727_v9, %v1471_v39  ;;  %v2228_v39 = vrot.slane %v2227_v27, 4 }
 0x288   :  { %v3520_v31 = vpop.eup %3519  ;;  %v2793_v35 = vsub.f32 1.5, %v2792_v21  ;;  %v2800_v36 = vmul.f32 %v3518_v24, %v5824_v37  ;;  %vm2806_vm15 = vweird.f32 %v3518_v24  ;;  %v2536_v44 = vrot.slane %v2535_v40, 2 }
 0x289   :  { %v2784_v30 = vmul.f32 %v5832_v59, %v2783_v29  ;;  %v2810_v33 = vmul.f32 %v3520_v31, %v5827_v58  ;;  %v5879_v41 = vpop.eup %3521  ;;  %vm2816_vm0 = vweird.f32 %v3520_v31  ;;  %vm2807_vm1 = vmor %vm2805_vm12, %vm2806_vm15  ;;  %vm2825_vm8 = vweird.f32 %v5847_v6 }
 0x28a   :  { %v2794_v52 = vmul.f32 %v3516_v0, %v2793_v35  ;;  %v2801_v54 = vmul.f32 %v3518_v24, %v2800_v36  ;;  %v2820_v1 = vmul.f32 %v5879_v41, %v5847_v6  ;;  %v5890_v13 = vpop.eup %3523  ;;  %v2537_v7 = vadd.f32 %v2536_v44, %v2535_v40  ;;  %vm2817_vm2 = vmor %vm2815_vm13, %vm2816_vm0 }
 0x28b   :  { %v2811_v14 = vmul.f32 %v3520_v31, %v2810_v33  ;;  %v2788_v61 = vsel %vm5873_vm11, %v5832_v59, %v2784_v30  ;;  %v2830_v59 = vmul.f32 %v5890_v13, %v5855_v19  ;;  %v2540_v30 = vsel %vm2170_vm6, %v2466_v8, 0.0 }
 0x28c   :  { %v2798_v62 = vsel %vm2797_vm14, %v3516_v0, %v2794_v52  ;;  %v2802_v63 = vmul.f32 0.5, %v2801_v54  ;;  %v2821_v17 = vmul.f32 %v5879_v41, %v2820_v1  ;;  %v3099_v0 = vmul.f32 %v2788_v61, %v5751_v15 }
 0x28d   :  { %v3100_v28 = vmul.f32 %v2798_v62, %v5753_v16  ;;  %v2812_v5 = vmul.f32 0.5, %v2811_v14  ;;  %v2538_v16 = vrot.slane %v2537_v7, 1  ;;  %v2831_v29 = vmul.f32 %v5890_v13, %v2830_v59 }
 0x28e   :  { %v2803_v10 = vsub.f32 1.5, %v2802_v63  ;;  %v2822_v23 = vmul.f32 0.5, %v2821_v17  ;;  %v3203_v43 = vmul.f32 %v3139_v45, %v3099_v0  ;;  %vm2826_vm5 = vweird.f32 %v5879_v41 }
 0x28f   :  { %v3204_v18 = vmul.f32 %v3140_v55, %v3100_v28  ;;  %v2813_v21 = vsub.f32 1.5, %v2812_v5  ;;  %v2539_v15 = vadd.f32 %v2538_v16, %v2537_v7  ;;  %v2832_v40 = vmul.f32 0.5, %v2831_v29  ;;  %vm5939_vm10 = vmor %vm2825_vm8, %vm2826_vm5 }
 0x290   :  { %v2804_v22 = vmul.f32 %v3518_v24, %v2803_v10  ;;  %v2823_v33 = vsub.f32 1.5, %v2822_v23  ;;  %v2541_v58 = vrot.slane %v2540_v30, 4  ;;  %vm2836_vm7 = vweird.f32 %v5890_v13 }
 0x291   :  { %v3308_v35 = vadd.f32 %v3244_v56, %v3204_v18  ;;  %v2814_v36 = vmul.f32 %v3520_v31, %v2813_v21  ;;  %v2721_v37 = vmul.f32 %v2539_v15, %v5258_v53  ;;  %v3307_v62 = vadd.f32 %v3243_v51, %v3203_v43  ;;  %v1767_v15 = vpop.f32.mrf.mxu3 }
 0x292   :  { %v2808_v55 = vsel %vm2807_vm1, %v3518_v24, %v2804_v22  ;;  %v2833_v24 = vsub.f32 1.5, %v2832_v40  ;;  %v2542_v61 = vadd.f32 %v2541_v58, %v2540_v30  ;;  %vm2835_vm9 = vweird.f32 %v5855_v19 }
 0x293   :  { %v3101_v56 = vmul.f32 %v2808_v55, %v5770_v46  ;;  %v2818_v52 = vsel %vm2817_vm2, %v3520_v31, %v2814_v36  ;;  %v3340_v14 = vmax.f32 %v3308_v35, 0.0  ;;  %v5922_v45 = vadd.f32 1e-05, %v2721_v37  ;;  %vm5950_vm11 = vmor %vm2835_vm9, %vm2836_vm7  ;;  %v1747_v35 = vpop.f32.mrf.mxu2 }
 0x294   :  { %v3102_v54 = vmul.f32 %v2818_v52, %v5773_v48  ;;  %v2824_v31 = vmul.f32 %v5879_v41, %v2823_v33  ;;  %v2229_v48 = vadd.f32 %v2228_v39, %v2227_v27  ;;  %v2834_v1 = vmul.f32 %v5890_v13, %v2833_v24 }
 0x295   :  { %v3205_v44 = vmul.f32 %v3141_v57, %v3101_v56  ;;  %3525 = vrsqrt.f32 %v5922_v45  ;;  %v3403_v28 = vrot.slane %v3340_v14, 6  ;;  %v3249_v5 = vperm.slane %v5813_v34, 6 }
 0x296   :  { %v3206_v46 = vmul.f32 %v3142_v2, %v3102_v54  ;;  %v2543_v2 = vrot.slane %v2542_v61, 2  ;;  %v2230_v8 = vrot.slane %v2229_v48, 2  ;;  %v3339_v9 = vmax.f32 %v3307_v62, 0.0 }
 0x297   :  { %v3309_v63 = vadd.f32 %v3245_v60, %v3205_v44  ;;  %v3145_v60 = vperm.slane %v5808_v47, 6  ;;  %v2838_v17 = vsel %vm5950_vm11, %v5890_v13, %v2834_v1  ;;  %v2234_v59 = vsel %vm2170_vm6, %v5902_v25, 0.0 }
 0x298   :  { %v3310_v57 = vadd.f32 %v3246_v3, %v3206_v46  ;;  %v2828_v3 = vsel %vm5939_vm10, %v5879_v41, %v2824_v31  ;;  %v2544_v19 = vadd.f32 %v2543_v2, %v2542_v61  ;;  %v2231_v41 = vadd.f32 %v2230_v8, %v2229_v48  ;;  %v1787_v61 = vpop.f32.mrf.mxu0 }
 0x299   :  { %v3341_v27 = vmax.f32 %v3309_v63, 0.0  ;;  %v2235_v21 = vrot.slane %v2234_v59, 4  ;;  %v3427_v22 = vsel %vm2170_vm6, %v3339_v9, %v3403_v28  ;;  %v3103_v23 = vmul.f32 %v2828_v3, %v5776_v49 }
 0x29a   :  { %v3342_v7 = vmax.f32 %v3310_v57, 0.0  ;;  %v2545_v18 = vrot.slane %v2544_v19, 1  ;;  %v1472_v29 = vperm.slane %v5802_v32, 2  ;;  %v1473_v36 = vperm.slane %v5802_v32, 3 }
 0x29b   :  { %v3404_v10 = vrot.slane %v3341_v27, 4  ;;  %v3526_v16 = vpop.eup %3525  ;;  %vm2845_vm12 = vweird.f32 %v5922_v45  ;;  %v3104_v40 = vmul.f32 %v2838_v17, %v5779_v50  ;;  %v2232_v39 = vrot.slane %v2231_v41, 1 }
 0x29c   :  { %v3405_v0 = vrot.slane %v3342_v7, 2  ;;  %v2840_v30 = vmul.f32 %v3526_v16, %v5922_v45  ;;  %v2546_v55 = vadd.f32 %v2545_v18, %v2544_v19  ;;  %v2236_v43 = vadd.f32 %v2235_v21, %v2234_v59 }
 0x29d   :  { %v5972_v52 = vadd.f32 %v1747_v35, %v1472_v29  ;;  %v5974_v37 = vadd.f32 %v1767_v15, %v1473_v36  ;;  %v5978_v54 = vmul.f32 %v3143_v4, %v3103_v23  ;;  %v2233_v24 = vadd.f32 %v2232_v39, %v2231_v41 }
 0x29e   :  { %v3429_v13 = vsel %vm3428_vm3, %v3404_v10, %v3405_v0  ;;  %v2841_v49 = vmul.f32 %v3526_v16, %v2840_v30  ;;  %v2722_v56 = vmul.f32 %v2546_v55, %v5258_v53  ;;  %v2237_v58 = vrot.slane %v2236_v43, 2  ;;  %v1807_v10 = vpop.f32.mrf.mxu1 }
 0x29f   :  { %v3431_v33 = vsel %vm3430_vm4, %v3427_v22, %v3429_v13  ;;  %v1474_v50 = vperm.slane %v5802_v32, 4  ;;  %v2241_v46 = vsel %vm2170_vm6, %v5972_v52, 0.0  ;;  %v2248_v31 = vsel %vm2170_vm6, %v5974_v37, 0.0 }
 0x2a0   :  { %3461 = vst [vmem:[%s6759_s9] sm:$0xff] %v3431_v33  ;;  %v2842_v14 = vmul.f32 0.5, %v2841_v49  ;;  %v5981_v44 = vadd.f32 1e-05, %v2722_v56  ;;  %v3208_v48 = vmul.f32 %v3144_v12, %v3104_v40  ;;  %v2403_v4 = vmul.f32 %v2233_v24, %v5258_v53 }
 0x2a1   :  { %v2238_v62 = vadd.f32 %v2237_v58, %v2236_v43  ;;  %v2242_v63 = vrot.slane %v2241_v46, 4  ;;  %vm2846_vm13 = vweird.f32 %v3526_v16  ;;  %v2249_v57 = vrot.slane %v2248_v31, 4 }
 0x2a2   :  { %v2843_v1 = vsub.f32 1.5, %v2842_v14  ;;  %3527 = vrsqrt.f32 %v5981_v44  ;;  %v5992_v2 = vsub.f32 %v5860_v26, %v2403_v4  ;;  %v5994_v51 = vadd.f32 %v1787_v61, %v1474_v50  ;;  %vm2847_vm14 = vmor %vm2845_vm12, %vm2846_vm13 }
 0x2a3   :  { %v2239_v28 = vrot.slane %v2238_v62, 1  ;;  %v2243_v27 = vadd.f32 %v2242_v63, %v2241_v46  ;;  %v3146_v3 = vperm.slane %v5808_v47, 7  ;;  %v2250_v12 = vadd.f32 %v2249_v57, %v2248_v31 }
 0x2a4   :  { %v2844_v7 = vmul.f32 %v3526_v16, %v2843_v1  ;;  %v1475_v6 = vperm.slane %v5802_v32, 5  ;;  %v2467_v19 = vmul.f32 %v5992_v2, %v5992_v2  ;;  %v2255_v26 = vsel %vm2170_vm6, %v5994_v51, 0.0 }
 0x2a5   :  { %v2240_v8 = vadd.f32 %v2239_v28, %v2238_v62  ;;  %v2244_v9 = vrot.slane %v2243_v27, 2  ;;  %v6006_v17 = vadd.f32 %v3248_v20, %v3208_v48  ;;  %v2251_v0 = vrot.slane %v2250_v12, 2 }
 0x2a6   :  { %v2848_v59 = vsel %vm2847_vm14, %v3526_v16, %v2844_v7  ;;  %v2256_v18 = vrot.slane %v2255_v26, 4  ;;  %v2547_v45 = vsel %vm2170_vm6, %v2467_v19, 0.0  ;;  %v6011_v15 = vadd.f32 %v1807_v10, %v1475_v6 }
 0x2a7   :  { %v3105_v41 = vmul.f32 %v2848_v59, %v5830_v38  ;;  %v2404_v21 = vmul.f32 %v2240_v8, %v5258_v53  ;;  %v2245_v22 = vadd.f32 %v2244_v9, %v2243_v27  ;;  %v2548_v29 = vrot.slane %v2547_v45, 4 }
 0x2a8   :  { %v3528_v23 = vpop.eup %3527  ;;  %v2252_v35 = vadd.f32 %v2251_v0, %v2250_v12  ;;  %v2257_v36 = vadd.f32 %v2256_v18, %v2255_v26  ;;  %v3250_v13 = vperm.slane %v5813_v34, 7  ;;  %v3344_v30 = vmax.f32 %v6006_v17, 0.0 }
 0x2a9   :  { %v3209_v20 = vmul.f32 %v3145_v60, %v3105_v41  ;;  %v2850_v16 = vmul.f32 %v3528_v23, %v5981_v44  ;;  %v6018_v38 = vsub.f32 %v5902_v25, %v2404_v21  ;;  %v2549_v55 = vadd.f32 %v2548_v29, %v2547_v45 }
 0x2aa   :  { %v2246_v33 = vrot.slane %v2245_v22, 1  ;;  %v2253_v40 = vrot.slane %v2252_v35, 1  ;;  %vm2855_vm15 = vweird.f32 %v5981_v44  ;;  %v2258_v49 = vrot.slane %v2257_v36, 2 }
 0x2ab   :  { %v2851_v39 = vmul.f32 %v3528_v23, %v2850_v16  ;;  %v2468_v43 = vmul.f32 %v6018_v38, %v6018_v38  ;;  %v2550_v60 = vrot.slane %v2549_v55, 2  ;;  %v2262_v58 = vsel %vm2170_vm6, %v6011_v15, 0.0 }
 0x2ac   :  { %v2247_v56 = vadd.f32 %v2246_v33, %v2245_v22  ;;  %v2254_v24 = vadd.f32 %v2253_v40, %v2252_v35  ;;  %v3313_v25 = vadd.f32 %v3249_v5, %v3209_v20  ;;  %v2259_v46 = vadd.f32 %v2258_v49, %v2257_v36  ;;  %v1827_v35 = vpop.f32.mrf.mxu2 }
 0x2ad   :  { %v2852_v50 = vmul.f32 0.5, %v2851_v39  ;;  %v2554_v14 = vsel %vm2170_vm6, %v2468_v43, 0.0  ;;  %v2551_v31 = vadd.f32 %v2550_v60, %v2549_v55  ;;  %vm2856_vm0 = vweird.f32 %v3528_v23 }
 0x2ae   :  { %v2555_v61 = vrot.slane %v2554_v14, 4  ;;  %v2405_v48 = vmul.f32 %v2247_v56, %v5258_v53  ;;  %v2406_v4 = vmul.f32 %v2254_v24, %v5258_v53  ;;  %v2260_v63 = vrot.slane %v2259_v46, 1  ;;  %vm2857_vm1 = vmor %vm2855_vm15, %vm2856_vm0 }
 0x2af   :  { %v2853_v62 = vsub.f32 1.5, %v2852_v50  ;;  %v2263_v1 = vrot.slane %v2262_v58, 4  ;;  %v2552_v57 = vrot.slane %v2551_v31, 1  ;;  %v1476_v5 = vperm.slane %v5802_v32, 6 }
 0x2b0   :  { %v2556_v28 = vadd.f32 %v2555_v61, %v2554_v14  ;;  %v6032_v27 = vsub.f32 %v5972_v52, %v2405_v48  ;;  %v6036_v12 = vsub.f32 %v5974_v37, %v2406_v4  ;;  %v2261_v6 = vadd.f32 %v2260_v63, %v2259_v46 }
 0x2b1   :  { %v2854_v7 = vmul.f32 %v3528_v23, %v2853_v62  ;;  %v2264_v19 = vadd.f32 %v2263_v1, %v2262_v58  ;;  %v3345_v8 = vmax.f32 %v3313_v25, 0.0  ;;  %v2553_v9 = vadd.f32 %v2552_v57, %v2551_v31 }
 0x2b2   :  { %v2557_v26 = vrot.slane %v2556_v28, 2  ;;  %v2469_v10 = vmul.f32 %v6032_v27, %v6032_v27  ;;  %v2470_v52 = vmul.f32 %v6036_v12, %v6036_v12  ;;  %v2407_v0 = vmul.f32 %v2261_v6, %v5258_v53 }
 0x2b3   :  { %v2858_v59 = vsel %vm2857_vm1, %v3528_v23, %v2854_v7  ;;  %v2265_v18 = vrot.slane %v2264_v19, 2  ;;  %v2723_v41 = vmul.f32 %v2553_v9, %v5258_v53  ;;  %v3311_v55 = vadd.f32 %v3247_v11, %v5978_v54 }
 0x2b4   :  { %v3106_v37 = vmul.f32 %v2858_v59, %v5869_v42  ;;  %v2558_v45 = vadd.f32 %v2557_v26, %v2556_v28  ;;  %v2561_v44 = vsel %vm2170_vm6, %v2469_v10, 0.0  ;;  %v2568_v22 = vsel %vm2170_vm6, %v2470_v52, 0.0  ;;  %v1847_v10 = vpop.f32.mrf.mxu3  ;;  %v6092_v59 = vld [vmem:[%s6757_s7 + $0x8] sm:$0xff] }
 0x2b5   :  { %v2562_v21 = vrot.slane %v2561_v44, 4  ;;  %v6050_v29 = vsub.f32 %v5994_v51, %v2407_v0  ;;  %v2266_v23 = vadd.f32 %v2265_v18, %v2264_v19  ;;  %v6054_v20 = vadd.f32 1e-05, %v2723_v41  ;;  %v6097_v52 = vld [vmem:[%s6758_s8 + $0x8] sm:$0xff] }
 0x2b6   :  { %v3210_v36 = vmul.f32 %v3146_v3, %v3106_v37  ;;  %v2559_v16 = vrot.slane %v2558_v45, 1  ;;  %v2569_v42 = vrot.slane %v2568_v22, 4  ;;  %v6062_v49 = vadd.f32 %v1827_v35, %v1476_v5 }
 0x2b7   :  { %v2563_v33 = vadd.f32 %v2562_v21, %v2561_v44  ;;  %v2471_v40 = vmul.f32 %v6050_v29, %v6050_v29  ;;  %v2267_v39 = vrot.slane %v2266_v23, 1  ;;  %3529 = vrsqrt.f32 %v6054_v20 }
 0x2b8   :  { %v3314_v51 = vadd.f32 %v3250_v13, %v3210_v36  ;;  %v2560_v43 = vadd.f32 %v2559_v16, %v2558_v45  ;;  %v2570_v3 = vadd.f32 %v2569_v42, %v2568_v22  ;;  %v3406_v56 = vrot.slane %v3344_v30, 6 }
 0x2b9   :  { %v2564_v47 = vrot.slane %v2563_v33, 2  ;;  %v2575_v60 = vsel %vm2170_vm6, %v2471_v40, 0.0  ;;  %v3407_v34 = vrot.slane %v3345_v8, 4  ;;  %v2268_v13 = vadd.f32 %v2267_v39, %v2266_v23 }
 0x2ba   :  { %v3346_v11 = vmax.f32 %v3314_v51, 0.0  ;;  %v2724_v54 = vmul.f32 %v2560_v43, %v5258_v53  ;;  %v2571_v58 = vrot.slane %v2570_v3, 2  ;;  %v2576_v25 = vrot.slane %v2575_v60, 4 }
 0x2bb   :  { %v2565_v24 = vadd.f32 %v2564_v47, %v2563_v33  ;;  %v3343_v50 = vmax.f32 %v3311_v55, 0.0  ;;  %v2269_v31 = vsel %vm2170_vm6, %v6062_v49, 0.0  ;;  %v2408_v17 = vmul.f32 %v2268_v13, %v5258_v53 }
 0x2bc   :  { %v3408_v14 = vrot.slane %v3346_v11, 2  ;;  %v6068_v46 = vadd.f32 1e-05, %v2724_v54  ;;  %v2572_v48 = vadd.f32 %v2571_v58, %v2570_v3  ;;  %v2577_v4 = vadd.f32 %v2576_v25, %v2575_v60  ;;  %v1867_v25 = vpop.f32.mrf.mxu0 }
 0x2bd   :  { %v2566_v61 = vrot.slane %v2565_v24, 1  ;;  %v6073_v30 = vpop.eup %3529  ;;  %v3432_v62 = vsel %vm2170_vm6, %v3343_v50, %v3406_v56  ;;  %v2270_v1 = vrot.slane %v2269_v31, 4  ;;  %v6085_v19 = vsub.f32 %v6011_v15, %v2408_v17 }
 0x2be   :  { %v3433_v63 = vsel %vm3428_vm3, %v3407_v34, %v3408_v14  ;;  %3531 = vrsqrt.f32 %v6068_v46  ;;  %v2860_v28 = vmul.f32 %v6073_v30, %v6054_v20  ;;  %v2573_v7 = vrot.slane %v2572_v48, 1 }
 0x2bf   :  { %v3434_v57 = vsel %vm3430_vm4, %v3432_v62, %v3433_v63  ;;  %v2567_v5 = vadd.f32 %v2566_v61, %v2565_v24  ;;  %v2578_v6 = vrot.slane %v2577_v4, 2  ;;  %v2271_v26 = vadd.f32 %v2270_v1, %v2269_v31 }
 0x2c0   :  { %3462 = vst [vmem:[%s6759_s9 + $0x8] sm:$0xff] %v3434_v57  ;;  %v2861_v8 = vmul.f32 %v6073_v30, %v2860_v28  ;;  %v2574_v0 = vadd.f32 %v2573_v7, %v2572_v48  ;;  %v2472_v15 = vmul.f32 %v6085_v19, %v6085_v19  ;;  %v1477_v37 = vperm.slane %v5802_v32, 7  ;;  %v6115_v32 = vld [vmem:[%s6756_s6 + $0x10] sm:$0xff] }
 0x2c1   :  { %v2725_v9 = vmul.f32 %v2567_v5, %v5258_v53  ;;  %v2579_v18 = vadd.f32 %v2578_v6, %v2577_v4  ;;  %v2272_v44 = vrot.slane %v2271_v26, 2  ;;  %v3147_v16 = vperm.slane %v6092_v59, 0 }
 0x2c2   :  { %v2862_v41 = vmul.f32 0.5, %v2861_v8  ;;  %v2726_v22 = vmul.f32 %v2574_v0, %v5258_v53  ;;  %v2582_v35 = vsel %vm2170_vm6, %v2472_v15, 0.0  ;;  %v6106_v36 = vadd.f32 %v1847_v10, %v1477_v37 }
 0x2c3   :  { %v6102_v45 = vadd.f32 1e-05, %v2725_v9  ;;  %v2580_v23 = vrot.slane %v2579_v18, 1  ;;  %v3251_v42 = vperm.slane %v6097_v52, 0  ;;  %v3148_v33 = vperm.slane %v6092_v59, 1 }
 0x2c4   :  { %v3532_v21 = vpop.eup %3531  ;;  %v6118_v40 = vadd.f32 1e-05, %v2726_v22  ;;  %v2583_v51 = vrot.slane %v2582_v35, 4  ;;  %v2863_v43 = vsub.f32 1.5, %v2862_v41  ;;  %v2273_v3 = vadd.f32 %v2272_v44, %v2271_v26 }
 0x2c5   :  { %v2870_v55 = vmul.f32 %v3532_v21, %v6068_v46  ;;  %3533 = vrsqrt.f32 %v6102_v45  ;;  %v2581_v39 = vadd.f32 %v2580_v23, %v2579_v18  ;;  %v2276_v60 = vsel %vm2170_vm6, %v6106_v36, 0.0 }
 0x2c6   :  { %3535 = vrsqrt.f32 %v6118_v40  ;;  %v2584_v34 = vadd.f32 %v2583_v51, %v2582_v35  ;;  %v1478_v11 = vperm.slane %v6115_v32, 0  ;;  %vm2865_vm2 = vweird.f32 %v6054_v20 }
 0x2c7   :  { %v2871_v47 = vmul.f32 %v3532_v21, %v2870_v55  ;;  %v2727_v56 = vmul.f32 %v2581_v39, %v5258_v53  ;;  %v3252_v24 = vperm.slane %v6097_v52, 1  ;;  %v2274_v58 = vrot.slane %v2273_v3, 1 }
 0x2c8   :  { %vm2866_vm5 = vweird.f32 %v6073_v30  ;;  %v2585_v50 = vrot.slane %v2584_v34, 2  ;;  %v2277_v14 = vrot.slane %v2276_v60, 4  ;;  %v2864_v61 = vmul.f32 %v6073_v30, %v2863_v43 }
 0x2c9   :  { %v2872_v54 = vmul.f32 0.5, %v2871_v47  ;;  %v6128_v13 = vadd.f32 1e-05, %v2727_v56  ;;  %vm2876_vm7 = vweird.f32 %v3532_v21  ;;  %v2275_v4 = vadd.f32 %v2274_v58, %v2273_v3  ;;  %vm6138_vm8 = vmor %vm2865_vm2, %vm2866_vm5 }
 0x2ca   :  { %v3149_v62 = vperm.slane %v6092_v59, 2  ;;  %v6134_v63 = vadd.f32 %v1867_v25, %v1478_v11  ;;  %vm2875_vm9 = vweird.f32 %v6068_v46  ;;  %v2586_v28 = vadd.f32 %v2585_v50, %v2584_v34 }
 0x2cb   :  { %v3534_v31 = vpop.eup %3533  ;;  %v2873_v48 = vsub.f32 1.5, %v2872_v54  ;;  %3537 = vrsqrt.f32 %v6128_v13  ;;  %v2409_v5 = vmul.f32 %v2275_v4, %v5258_v53  ;;  %vm2877_vm10 = vmor %vm2875_vm9, %vm2876_vm7  ;;  %v3253_v8 = vperm.slane %v6097_v52, 2 }
 0x2cc   :  { %v2880_v17 = vmul.f32 %v3534_v31, %v6102_v45  ;;  %v3536_v7 = vpop.eup %3535  ;;  %v3150_v9 = vperm.slane %v6092_v59, 3  ;;  %v2278_v26 = vadd.f32 %v2277_v14, %v2276_v60  ;;  %v2868_v20 = vsel %vm6138_vm8, %v6073_v30, %v2864_v61 }
 0x2cd   :  { %v2874_v57 = vmul.f32 %v3532_v21, %v2873_v48  ;;  %v2890_v0 = vmul.f32 %v3536_v7, %v6118_v40  ;;  %v2587_v18 = vrot.slane %v2586_v28, 1  ;;  %v6152_v37 = vsub.f32 %v6062_v49, %v2409_v5 }
 0x2ce   :  { %v2881_v6 = vmul.f32 %v3534_v31, %v2880_v17  ;;  %v2283_v41 = vsel %vm2170_vm6, %v6134_v63, 0.0  ;;  %vm2885_vm11 = vweird.f32 %v6102_v45  ;;  %v2279_v23 = vrot.slane %v2278_v26, 2 }
 0x2cf   :  { %v2878_v10 = vsel %vm2877_vm10, %v3532_v21, %v2874_v57  ;;  %v2891_v44 = vmul.f32 %v3536_v7, %v2890_v0  ;;  %v2588_v22 = vadd.f32 %v2587_v18, %v2586_v28  ;;  %vm2886_vm12 = vweird.f32 %v3534_v31 }
 0x2d0   :  { %v3108_v46 = vmul.f32 %v2878_v10, %v6018_v38  ;;  %v2882_v15 = vmul.f32 0.5, %v2881_v6  ;;  %v2473_v38 = vmul.f32 %v6152_v37, %v6152_v37  ;;  %v3107_v55 = vmul.f32 %v2868_v20, %v5992_v2  ;;  %vm2887_vm14 = vmor %vm2885_vm11, %vm2886_vm12 }
 0x2d1   :  { %v6157_v35 = vpop.eup %3537  ;;  %v2892_v49 = vmul.f32 0.5, %v2891_v44  ;;  %v2728_v39 = vmul.f32 %v2588_v22, %v5258_v53  ;;  %v2284_v51 = vrot.slane %v2283_v41, 4  ;;  %vm2896_vm13 = vweird.f32 %v3536_v7 }
 0x2d2   :  { %v3212_v30 = vmul.f32 %v3148_v33, %v3108_v46  ;;  %v2883_v21 = vsub.f32 1.5, %v2882_v15  ;;  %v2589_v47 = vsel %vm2170_vm6, %v2473_v38, 0.0  ;;  %v2280_v3 = vadd.f32 %v2279_v23, %v2278_v26 }
 0x2d3   :  { %v2893_v33 = vsub.f32 1.5, %v2892_v49  ;;  %v2900_v60 = vmul.f32 %v6157_v35, %v6128_v13  ;;  %v6168_v56 = vadd.f32 1e-05, %v2728_v39  ;;  %v2590_v34 = vrot.slane %v2589_v47, 4 }
 0x2d4   :  { %v2884_v43 = vmul.f32 %v3534_v31, %v2883_v21  ;;  %v3316_v2 = vadd.f32 %v3252_v24, %v3212_v30  ;;  %vm2895_vm15 = vweird.f32 %v6118_v40  ;;  %v2281_v54 = vrot.slane %v2280_v3, 1 }
 0x2d5   :  { %v2894_v25 = vmul.f32 %v3536_v7, %v2893_v33  ;;  %3539 = vrsqrt.f32 %v6168_v56  ;;  %v2285_v50 = vadd.f32 %v2284_v51, %v2283_v41  ;;  %vm2897_vm0 = vmor %vm2895_vm15, %vm2896_vm13  ;;  %v3254_v45 = vperm.slane %v6097_v52, 3 }
 0x2d6   :  { %v2888_v11 = vsel %vm2887_vm14, %v3534_v31, %v2884_v43  ;;  %v2591_v14 = vadd.f32 %v2590_v34, %v2589_v47  ;;  %v2282_v61 = vadd.f32 %v2281_v54, %v2280_v3  ;;  %v1479_v48 = vperm.slane %v6115_v32, 1 }
 0x2d7   :  { %v3109_v58 = vmul.f32 %v2888_v11, %v6032_v27  ;;  %v3211_v24 = vmul.f32 %v3147_v16, %v3107_v55  ;;  %v2898_v40 = vsel %vm2897_vm0, %v3536_v7, %v2894_v25  ;;  %v2901_v4 = vmul.f32 %v6157_v35, %v2900_v60  ;;  %v1887_v27 = vpop.f32.mrf.mxu1  ;;  %v1907_v55 = vpop.f32.mrf.mxu2 }
 0x2d8   :  { %v3348_v17 = vmax.f32 %v3316_v2, 0.0  ;;  %v3110_v1 = vmul.f32 %v2898_v40, %v6036_v12  ;;  %v2592_v57 = vrot.slane %v2591_v14, 2  ;;  %v2410_v28 = vmul.f32 %v2282_v61, %v5258_v53 }
 0x2d9   :  { %v3213_v31 = vmul.f32 %v3149_v62, %v3109_v58  ;;  %v3151_v6 = vperm.slane %v6092_v59, 4  ;;  %v2286_v26 = vrot.slane %v2285_v50, 2  ;;  %v6185_v16 = vadd.f32 %v1887_v27, %v1479_v48 }
 0x2da   :  { %v3214_v20 = vmul.f32 %v3150_v9, %v3110_v1  ;;  %v2593_v10 = vadd.f32 %v2592_v57, %v2591_v14  ;;  %v6183_v0 = vsub.f32 %v6106_v36, %v2410_v28  ;;  %v3315_v7 = vadd.f32 %v3251_v42, %v3211_v24 }
 0x2db   :  { %v3317_v5 = vadd.f32 %v3253_v8, %v3213_v31  ;;  %v6187_v62 = vpop.eup %3539  ;;  %v3255_v18 = vperm.slane %v6097_v52, 4  ;;  %v2287_v46 = vadd.f32 %v2286_v26, %v2285_v50  ;;  %v3409_v8 = vrot.slane %v3348_v17, 6  ;;  %v1927_v26 = vpop.f32.mrf.mxu3 }
 0x2dc   :  { %v3318_v15 = vadd.f32 %v3254_v45, %v3214_v20  ;;  %v2902_v41 = vmul.f32 0.5, %v2901_v4  ;;  %v2910_v9 = vmul.f32 %v6187_v62, %v6168_v56  ;;  %v2594_v44 = vrot.slane %v2593_v10, 1  ;;  %v1947_v20 = vpop.f32.mrf.mxu0 }
 0x2dd   :  { %v3349_v12 = vmax.f32 %v3317_v5, 0.0  ;;  %v2474_v36 = vmul.f32 %v6183_v0, %v6183_v0  ;;  %v2288_v22 = vrot.slane %v2287_v46, 1  ;;  %v1480_v23 = vperm.slane %v6115_v32, 2 }
 0x2de   :  { %v3350_v21 = vmax.f32 %v3318_v15, 0.0  ;;  %v2911_v42 = vmul.f32 %v6187_v62, %v2910_v9  ;;  %v2290_v38 = vsel %vm2170_vm6, %v6185_v16, 0.0  ;;  %v2595_v49 = vadd.f32 %v2594_v44, %v2593_v10 }
 0x2df   :  { %v3410_v30 = vrot.slane %v3349_v12, 4  ;;  %v2596_v39 = vsel %vm2170_vm6, %v2474_v36, 0.0  ;;  %v2289_v51 = vadd.f32 %v2288_v22, %v2287_v46  ;;  %v2291_v43 = vrot.slane %v2290_v38, 4  ;;  %v1987_v9 = vpop.f32.mrf.mxu2 }
 0x2e0   :  { %v3347_v47 = vmax.f32 %v3315_v7, 0.0  ;;  %v3411_v3 = vrot.slane %v3350_v21, 2  ;;  %v2912_v33 = vmul.f32 0.5, %v2911_v42  ;;  %v2597_v60 = vrot.slane %v2596_v39, 4 }
 0x2e1   :  { %v2729_v34 = vmul.f32 %v2595_v49, %v5258_v53  ;;  %v2411_v2 = vmul.f32 %v2289_v51, %v5258_v53  ;;  %v2292_v11 = vadd.f32 %v2291_v43, %v2290_v38  ;;  %v6203_v54 = vadd.f32 %v1907_v55, %v1480_v23 }
 0x2e2   :  { %v3435_v58 = vsel %vm2170_vm6, %v3347_v47, %v3409_v8  ;;  %v3436_v25 = vsel %vm3428_vm3, %v3410_v30, %v3411_v3  ;;  %v2903_v50 = vsub.f32 1.5, %v2902_v41  ;;  %v2598_v45 = vadd.f32 %v2597_v60, %v2596_v39 }
 0x2e3   :  { %v3437_v14 = vsel %vm3430_vm4, %v3435_v58, %v3436_v25  ;;  %v3152_v61 = vperm.slane %v6092_v59, 5  ;;  %v6209_v48 = vadd.f32 1e-05, %v2729_v34  ;;  %v6212_v24 = vsub.f32 %v6134_v63, %v2411_v2 }
 0x2e4   :  { %3463 = vst [vmem:[%s6759_s9 + $0x10] sm:$0xff] %v3437_v14  ;;  %vm2906_vm1 = vweird.f32 %v6157_v35  ;;  %v3256_v31 = vperm.slane %v6097_v52, 5  ;;  %v2599_v40 = vrot.slane %v2598_v45, 2  ;;  %v2293_v4 = vrot.slane %v2292_v11, 2 }
 0x2e5   :  { %v2913_v27 = vsub.f32 1.5, %v2912_v33  ;;  %3541 = vrsqrt.f32 %v6209_v48  ;;  %v2475_v17 = vmul.f32 %v6212_v24, %v6212_v24  ;;  %v2297_v63 = vsel %vm2170_vm6, %v6203_v54, 0.0 }
 0x2e6   :  { %v2904_v1 = vmul.f32 %v6157_v35, %v2903_v50  ;;  %v2600_v57 = vadd.f32 %v2599_v40, %v2598_v45  ;;  %v2294_v28 = vadd.f32 %v2293_v4, %v2292_v11  ;;  %v2298_v5 = vrot.slane %v2297_v63, 4  ;;  %v1967_v40 = vpop.f32.mrf.mxu1 }
 0x2e7   :  { %vm2905_vm2 = vweird.f32 %v6128_v13  ;;  %v2603_v10 = vsel %vm2170_vm6, %v2475_v17, 0.0  ;;  %v1481_v7 = vperm.slane %v6115_v32, 3  ;;  %v1482_v12 = vperm.slane %v6115_v32, 4 }
 0x2e8   :  { %v2601_v46 = vrot.slane %v2600_v57, 1  ;;  %v2604_v8 = vrot.slane %v2603_v10, 4  ;;  %v2295_v15 = vrot.slane %v2294_v28, 1  ;;  %v2299_v41 = vadd.f32 %v2298_v5, %v2297_v63  ;;  %vm6231_vm5 = vmor %vm2905_vm2, %vm2906_vm1 }
 0x2e9   :  { %v2914_v44 = vmul.f32 %v6187_v62, %v2913_v27  ;;  %vm2916_vm7 = vweird.f32 %v6187_v62  ;;  %v6237_v13 = vadd.f32 %v1927_v26, %v1481_v7  ;;  %v6239_v36 = vadd.f32 %v1947_v20, %v1482_v12 }
 0x2ea   :  { %v2908_v22 = vsel %vm6231_vm5, %v6157_v35, %v2904_v1  ;;  %v2602_v23 = vadd.f32 %v2601_v46, %v2600_v57  ;;  %v2605_v30 = vadd.f32 %v2604_v8, %v2603_v10  ;;  %v2296_v21 = vadd.f32 %v2295_v15, %v2294_v28 }
 0x2eb   :  { %v3542_v42 = vpop.eup %3541  ;;  %vm2915_vm8 = vweird.f32 %v6168_v56  ;;  %v3153_v38 = vperm.slane %v6092_v59, 6  ;;  %v2300_v55 = vrot.slane %v2299_v41, 2  ;;  %v2304_v49 = vsel %vm2170_vm6, %v6237_v13, 0.0 }
 0x2ec   :  { %vm6248_vm9 = vmor %vm2915_vm8, %vm2916_vm7  ;;  %v2920_v51 = vmul.f32 %v3542_v42, %v6209_v48  ;;  %v2730_v35 = vmul.f32 %v2602_v23, %v5258_v53  ;;  %v2606_v43 = vrot.slane %v2605_v30, 2  ;;  %v2311_v47 = vsel %vm2170_vm6, %v6239_v36, 0.0 }
 0x2ed   :  { %v3111_v56 = vmul.f32 %v2908_v22, %v6050_v29  ;;  %v2918_v3 = vsel %vm6248_vm9, %v6187_v62, %v2914_v44  ;;  %v2412_v33 = vmul.f32 %v2296_v21, %v5258_v53  ;;  %v2301_v60 = vadd.f32 %v2300_v55, %v2299_v41 }
 0x2ee   :  { %v2921_v34 = vmul.f32 %v3542_v42, %v2920_v51  ;;  %v6261_v2 = vadd.f32 1e-05, %v2730_v35  ;;  %v2607_v11 = vadd.f32 %v2606_v43, %v2605_v30  ;;  %v2305_v58 = vrot.slane %v2304_v49, 4 }
 0x2ef   :  { %v6264_v25 = vsub.f32 %v6185_v16, %v2412_v33  ;;  %v2302_v50 = vrot.slane %v2301_v60, 1  ;;  %v2312_v45 = vrot.slane %v2311_v47, 4  ;;  %v1483_v14 = vperm.slane %v6115_v32, 5 }
 0x2f0   :  { %v2922_v29 = vmul.f32 0.5, %v2921_v34  ;;  %vm2925_vm10 = vweird.f32 %v6209_v48  ;;  %3543 = vrsqrt.f32 %v6261_v2  ;;  %v2608_v62 = vrot.slane %v2607_v11, 1 }
 0x2f1   :  { %v3112_v4 = vmul.f32 %v2918_v3, %v6085_v19  ;;  %v2476_v27 = vmul.f32 %v6264_v25, %v6264_v25  ;;  %v2303_v17 = vadd.f32 %v2302_v50, %v2301_v60  ;;  %v2306_v63 = vadd.f32 %v2305_v58, %v2304_v49 }
 0x2f2   :  { %v2923_v16 = vsub.f32 1.5, %v2922_v29  ;;  %vm2926_vm11 = vweird.f32 %v3542_v42  ;;  %v2609_v1 = vadd.f32 %v2608_v62, %v2607_v11  ;;  %v2313_v57 = vadd.f32 %v2312_v45, %v2311_v47 }
 0x2f3   :  { %v2610_v28 = vsel %vm2170_vm6, %v2476_v27, 0.0  ;;  %v2413_v5 = vmul.f32 %v2303_v17, %v5258_v53  ;;  %v2307_v26 = vrot.slane %v2306_v63, 2  ;;  %v6274_v20 = vadd.f32 %v1967_v40, %v1483_v14  ;;  %vm2927_vm12 = vmor %vm2925_vm10, %vm2926_vm11 }
 0x2f4   :  { %v2924_v10 = vmul.f32 %v3542_v42, %v2923_v16  ;;  %v2731_v7 = vmul.f32 %v2609_v1, %v5258_v53  ;;  %v2611_v19 = vrot.slane %v2610_v28, 4  ;;  %v1484_v12 = vperm.slane %v6115_v32, 6 }
 0x2f5   :  { %v3216_v46 = vmul.f32 %v3152_v61, %v3112_v4  ;;  %v3257_v8 = vperm.slane %v6097_v52, 6  ;;  %v6284_v15 = vsub.f32 %v6203_v54, %v2413_v5  ;;  %v2308_v41 = vadd.f32 %v2307_v26, %v2306_v63 }
 0x2f6   :  { %v3544_v44 = vpop.eup %3543  ;;  %v2928_v22 = vsel %vm2927_vm12, %v3542_v42, %v2924_v10  ;;  %v6286_v23 = vadd.f32 1e-05, %v2731_v7  ;;  %v2612_v30 = vadd.f32 %v2611_v19, %v2610_v28  ;;  %v2314_v21 = vrot.slane %v2313_v57, 2 }
 0x2f7   :  { %v3113_v55 = vmul.f32 %v2928_v22, %v6152_v37  ;;  %v2930_v61 = vmul.f32 %v3544_v44, %v6261_v2  ;;  %v2477_v48 = vmul.f32 %v6284_v15, %v6284_v15  ;;  %v2318_v49 = vsel %vm2170_vm6, %v6274_v20, 0.0 }
 0x2f8   :  { %v3215_v54 = vmul.f32 %v3151_v6, %v3111_v56  ;;  %3545 = vrsqrt.f32 %v6286_v23  ;;  %v2613_v42 = vrot.slane %v2612_v30, 2  ;;  %v6297_v39 = vadd.f32 %v1987_v9, %v1484_v12 }
 0x2f9   :  { %v3217_v51 = vmul.f32 %v3153_v38, %v3113_v55  ;;  %v2931_v35 = vmul.f32 %v3544_v44, %v2930_v61  ;;  %v2617_v37 = vsel %vm2170_vm6, %v2477_v48, 0.0  ;;  %v2309_v43 = vrot.slane %v2308_v41, 1 }
 0x2fa   :  { %v2614_v47 = vadd.f32 %v2613_v42, %v2612_v30  ;;  %v2618_v3 = vrot.slane %v2617_v37, 4  ;;  %v2315_v33 = vadd.f32 %v2314_v21, %v2313_v57  ;;  %v2319_v60 = vrot.slane %v2318_v49, 4 }
 0x2fb   :  { %v3320_v34 = vadd.f32 %v3256_v31, %v3216_v46  ;;  %v2932_v11 = vmul.f32 0.5, %v2931_v35  ;;  %v3154_v6 = vperm.slane %v6092_v59, 7  ;;  %v2310_v56 = vadd.f32 %v2309_v43, %v2308_v41 }
 0x2fc   :  { %vm2936_vm13 = vweird.f32 %v3544_v44  ;;  %v2615_v58 = vrot.slane %v2614_v47, 1  ;;  %v2619_v50 = vadd.f32 %v2618_v3, %v2617_v37  ;;  %v2316_v45 = vrot.slane %v2315_v33, 1 }
 0x2fd   :  { %v3321_v38 = vadd.f32 %v3257_v8, %v3217_v51  ;;  %v2933_v14 = vsub.f32 1.5, %v2932_v11  ;;  %v2414_v29 = vmul.f32 %v2310_v56, %v5258_v53  ;;  %v2320_v62 = vadd.f32 %v2319_v60, %v2318_v49  ;;  %v6344_v56 = vld [vmem:[%s6757_s7 + $0x10] sm:$0xff] }
 0x2fe   :  { %v6304_v40 = vpop.eup %3545  ;;  %v2616_v4 = vadd.f32 %v2615_v58, %v2614_v47  ;;  %v2620_v27 = vrot.slane %v2619_v50, 2  ;;  %v2317_v17 = vadd.f32 %v2316_v45, %v2315_v33  ;;  %v2325_v31 = vsel %vm2170_vm6, %v6297_v39, 0.0 }
 0x2ff   :  { %v3352_v63 = vmax.f32 %v3320_v34, 0.0  ;;  %v2934_v59 = vmul.f32 %v3544_v44, %v2933_v14  ;;  %vm2935_vm14 = vweird.f32 %v6261_v2  ;;  %v3258_v16 = vperm.slane %v6097_v52, 7 }
 0x300   :  { %vm2937_vm15 = vmor %vm2935_vm14, %vm2936_vm13  ;;  %v2732_v1 = vmul.f32 %v2616_v4, %v5258_v53  ;;  %v2621_v57 = vadd.f32 %v2620_v27, %v2619_v50  ;;  %v6313_v28 = vsub.f32 %v6237_v13, %v2414_v29  ;;  %v2415_v5 = vmul.f32 %v2317_v17, %v5258_v53  ;;  %v2007_v4 = vpop.f32.mrf.mxu3 }
 0x301   :  { %v3353_v26 = vmax.f32 %v3321_v38, 0.0  ;;  %v2938_v10 = vsel %vm2937_vm15, %v3544_v44, %v2934_v59  ;;  %v2321_v7 = vrot.slane %v2320_v62, 2  ;;  %v2326_v19 = vrot.slane %v2325_v31, 4 }
 0x302   :  { %v3114_v12 = vmul.f32 %v2938_v10, %v6183_v0  ;;  %v6317_v46 = vadd.f32 1e-05, %v2732_v1  ;;  %v2622_v2 = vrot.slane %v2621_v57, 1  ;;  %v2478_v8 = vmul.f32 %v6313_v28, %v6313_v28  ;;  %v6364_v1 = vld [vmem:[%s6756_s6 + $0x18] sm:$0xff] }
 0x303   :  { %v2940_v41 = vmul.f32 %v6304_v40, %v6286_v23  ;;  %v6324_v13 = vsub.f32 %v6239_v36, %v2415_v5  ;;  %v2322_v9 = vadd.f32 %v2321_v7, %v2320_v62  ;;  %v2327_v22 = vadd.f32 %v2326_v19, %v2325_v31 }
 0x304   :  { %v3319_v44 = vadd.f32 %v3255_v18, %v3215_v54  ;;  %v3218_v30 = vmul.f32 %v3154_v6, %v3114_v12  ;;  %3547 = vrsqrt.f32 %v6317_v46  ;;  %v2623_v0 = vadd.f32 %v2622_v2, %v2621_v57 }
 0x305   :  { %v3412_v21 = vrot.slane %v3352_v63, 6  ;;  %v2624_v55 = vsel %vm2170_vm6, %v2478_v8, 0.0  ;;  %v2479_v61 = vmul.f32 %v6324_v13, %v6324_v13  ;;  %v2323_v48 = vrot.slane %v2322_v9, 1 }
 0x306   :  { %v3322_v49 = vadd.f32 %v3258_v16, %v3218_v30  ;;  %v2733_v36 = vmul.f32 %v2623_v0, %v5258_v53  ;;  %v2625_v42 = vrot.slane %v2624_v55, 4  ;;  %v2328_v51 = vrot.slane %v2327_v22, 2 }
 0x307   :  { %v3413_v35 = vrot.slane %v3353_v26, 4  ;;  %v2941_v52 = vmul.f32 %v6304_v40, %v2940_v41  ;;  %v2631_v18 = vsel %vm2170_vm6, %v2479_v61, 0.0  ;;  %v2324_v54 = vadd.f32 %v2323_v48, %v2322_v9 }
 0x308   :  { %v3354_v37 = vmax.f32 %v3322_v49, 0.0  ;;  %v6335_v43 = vadd.f32 1e-05, %v2733_v36  ;;  %v2626_v47 = vadd.f32 %v2625_v42, %v2624_v55  ;;  %v2632_v3 = vrot.slane %v2631_v18, 4  ;;  %v2027_v49 = vpop.f32.mrf.mxu0 }
 0x309   :  { %v2416_v33 = vmul.f32 %v2324_v54, %v5258_v53  ;;  %v3351_v34 = vmax.f32 %v3319_v44, 0.0  ;;  %v2329_v6 = vadd.f32 %v2328_v51, %v2327_v22  ;;  %v1485_v45 = vperm.slane %v6115_v32, 7 }
 0x30a   :  { %v6338_v60 = vpop.eup %3547  ;;  %v3414_v11 = vrot.slane %v3354_v37, 2  ;;  %3549 = vrsqrt.f32 %v6335_v43  ;;  %v2627_v50 = vrot.slane %v2626_v47, 2  ;;  %v2942_v29 = vmul.f32 0.5, %v2941_v52 }
 0x30b   :  { %v2950_v58 = vmul.f32 %v6338_v60, %v6317_v46  ;;  %v3438_v38 = vsel %vm2170_vm6, %v3351_v34, %v3412_v21  ;;  %v2633_v62 = vadd.f32 %v2632_v3, %v2631_v18  ;;  %v6354_v63 = vsub.f32 %v6274_v20, %v2416_v33 }
 0x30c   :  { %v3439_v14 = vsel %vm3428_vm3, %v3413_v35, %v3414_v11  ;;  %v2628_v31 = vadd.f32 %v2627_v50, %v2626_v47  ;;  %vm2946_vm0 = vweird.f32 %v6304_v40  ;;  %v3155_v32 = vperm.slane %v6344_v56, 0 }
 0x30d   :  { %v3440_v27 = vsel %vm3430_vm4, %v3438_v38, %v3439_v14  ;;  %v2951_v17 = vmul.f32 %v6338_v60, %v2950_v58  ;;  %v2634_v59 = vrot.slane %v2633_v62, 2  ;;  %v2330_v16 = vrot.slane %v2329_v6, 1 }
 0x30e   :  { %3464 = vst [vmem:[%s6759_s9 + $0x18] sm:$0xff] %v3440_v27  ;;  %v2629_v5 = vrot.slane %v2628_v31, 1  ;;  %v2480_v20 = vmul.f32 %v6354_v63, %v6354_v63  ;;  %v6368_v26 = vadd.f32 %v2007_v4, %v1485_v45  ;;  %v2943_v7 = vsub.f32 1.5, %v2942_v29 }
 0x30f   :  { %v2952_v57 = vmul.f32 0.5, %v2951_v17  ;;  %vm2956_vm1 = vweird.f32 %v6338_v60  ;;  %v2635_v19 = vadd.f32 %v2634_v59, %v2633_v62  ;;  %v2331_v12 = vadd.f32 %v2330_v16, %v2329_v6  ;;  %v6423_v62 = vld [vmem:[%s6758_s8 + $0x10] sm:$0xff] }
 0x310   :  { %v3550_v10 = vpop.eup %3549  ;;  %v2630_v41 = vadd.f32 %v2629_v5, %v2628_v31  ;;  %v1486_v9 = vperm.slane %v6364_v1, 0  ;;  %v2638_v44 = vsel %vm2170_vm6, %v2480_v20, 0.0  ;;  %v2332_v0 = vsel %vm2170_vm6, %v6368_v26, 0.0 }
 0x311   :  { %v2953_v2 = vsub.f32 1.5, %v2952_v57  ;;  %v2960_v8 = vmul.f32 %v3550_v10, %v6335_v43  ;;  %v2636_v22 = vrot.slane %v2635_v19, 1  ;;  %v2417_v30 = vmul.f32 %v2331_v12, %v5258_v53 }
 0x312   :  { %v2734_v61 = vmul.f32 %v2630_v41, %v5258_v53  ;;  %v2639_v48 = vrot.slane %v2638_v44, 4  ;;  %v2944_v36 = vmul.f32 %v6304_v40, %v2943_v7  ;;  %vm2955_vm2 = vweird.f32 %v6317_v46 }
 0x313   :  { %v2954_v21 = vmul.f32 %v6338_v60, %v2953_v2  ;;  %v2961_v55 = vmul.f32 %v3550_v10, %v2960_v8  ;;  %v2637_v42 = vadd.f32 %v2636_v22, %v2635_v19  ;;  %v6382_v51 = vsub.f32 %v6297_v39, %v2417_v30  ;;  %vm6388_vm5 = vmor %vm2955_vm2, %vm2956_vm1  ;;  %v2047_v8 = vpop.f32.mrf.mxu1 }
 0x314   :  { %v6384_v52 = vadd.f32 1e-05, %v2734_v61  ;;  %v2640_v18 = vadd.f32 %v2639_v48, %v2638_v44  ;;  %v2333_v54 = vrot.slane %v2332_v0, 4  ;;  %vm2966_vm7 = vweird.f32 %v3550_v10 }
 0x315   :  { %v2962_v35 = vmul.f32 0.5, %v2961_v55  ;;  %v2735_v47 = vmul.f32 %v2637_v42, %v5258_v53  ;;  %v2481_v46 = vmul.f32 %v6382_v51, %v6382_v51  ;;  %v6395_v3 = vadd.f32 %v2027_v49, %v1486_v9 }
 0x316   :  { %v2958_v39 = vsel %vm6388_vm5, %v6338_v60, %v2954_v21  ;;  %3551 = vrsqrt.f32 %v6384_v52  ;;  %v2641_v34 = vrot.slane %v2640_v18, 2  ;;  %vm2945_vm8 = vweird.f32 %v6286_v23 }
 0x317   :  { %v2963_v33 = vsub.f32 1.5, %v2962_v35  ;;  %vm2965_vm9 = vweird.f32 %v6335_v43  ;;  %v6403_v11 = vadd.f32 1e-05, %v2735_v47  ;;  %v2645_v6 = vsel %vm2170_vm6, %v2481_v46, 0.0  ;;  %vm6408_vm10 = vmor %vm2945_vm8, %vm2946_vm0 }
 0x318   :  { %v2642_v60 = vadd.f32 %v2641_v34, %v2640_v18  ;;  %v2646_v45 = vrot.slane %v2645_v6, 4  ;;  %v2334_v38 = vadd.f32 %v2333_v54, %v2332_v0  ;;  %v2948_v23 = vsel %vm6408_vm10, %v6304_v40, %v2944_v36  ;;  %vm2967_vm11 = vmor %vm2965_vm9, %vm2966_vm7 }
 0x319   :  { %v2964_v50 = vmul.f32 %v3550_v10, %v2963_v33  ;;  %v3116_v43 = vmul.f32 %v2958_v39, %v6264_v25  ;;  %v3156_v14 = vperm.slane %v6344_v56, 1  ;;  %v2339_v29 = vsel %vm2170_vm6, %v6395_v3, 0.0  ;;  %v2067_v39 = vpop.f32.mrf.mxu2 }
 0x31a   :  { %v3157_v27 = vperm.slane %v6344_v56, 2  ;;  %v2643_v17 = vrot.slane %v2642_v60, 1  ;;  %v2647_v31 = vadd.f32 %v2646_v45, %v2645_v6  ;;  %3553 = vrsqrt.f32 %v6403_v11 }
 0x31b   :  { %v2968_v4 = vsel %vm2967_vm11, %v3550_v10, %v2964_v50  ;;  %v2335_v25 = vrot.slane %v2334_v38, 2  ;;  %v2340_v59 = vrot.slane %v2339_v29, 4  ;;  %v3115_v57 = vmul.f32 %v2948_v23, %v6212_v24 }
 0x31c   :  { %v3117_v40 = vmul.f32 %v2968_v4, %v6284_v15  ;;  %v3552_v16 = vpop.eup %3551  ;;  %v2644_v5 = vadd.f32 %v2643_v17, %v2642_v60  ;;  %v2648_v20 = vrot.slane %v2647_v31, 2  ;;  %v1487_v7 = vperm.slane %v6364_v1, 1 }
 0x31d   :  { %v3259_v19 = vperm.slane %v6423_v62, 0  ;;  %v3220_v10 = vmul.f32 %v3156_v14, %v3116_v43  ;;  %v3260_v12 = vperm.slane %v6423_v62, 1  ;;  %v2970_v2 = vmul.f32 %v3552_v16, %v6384_v52 }
 0x31e   :  { %v2736_v15 = vmul.f32 %v2644_v5, %v5258_v53  ;;  %v2649_v41 = vadd.f32 %v2648_v20, %v2647_v31  ;;  %v2336_v9 = vadd.f32 %v2335_v25, %v2334_v38  ;;  %v2341_v22 = vadd.f32 %v2340_v59, %v2339_v29 }
 0x31f   :  { %v3221_v44 = vmul.f32 %v3157_v27, %v3117_v40  ;;  %v3261_v24 = vperm.slane %v6423_v62, 2  ;;  %v2971_v30 = vmul.f32 %v3552_v16, %v2970_v2  ;;  %v3158_v0 = vperm.slane %v6344_v56, 3 }
 0x320   :  { %v3219_v21 = vmul.f32 %v3155_v32, %v3115_v57  ;;  %v6438_v55 = vadd.f32 1e-05, %v2736_v15  ;;  %v2650_v61 = vrot.slane %v2649_v41, 1  ;;  %v6440_v48 = vadd.f32 %v2047_v8, %v1487_v7  ;;  %v6442_v49 = vpop.eup %3553 }
 0x321   :  { %v2972_v36 = vmul.f32 0.5, %v2971_v30  ;;  %vm2975_vm12 = vweird.f32 %v6384_v52  ;;  %v2337_v42 = vrot.slane %v2336_v9, 1  ;;  %v2342_v35 = vrot.slane %v2341_v22, 2 }
 0x322   :  { %v3324_v18 = vadd.f32 %v3260_v12, %v3220_v10  ;;  %vm2976_vm13 = vweird.f32 %v3552_v16  ;;  %3555 = vrsqrt.f32 %v6438_v55  ;;  %v2651_v54 = vadd.f32 %v2650_v61, %v2649_v41 }
 0x323   :  { %v3325_v37 = vadd.f32 %v3261_v24, %v3221_v44  ;;  %v2973_v47 = vsub.f32 1.5, %v2972_v36  ;;  %v2338_v32 = vadd.f32 %v2337_v42, %v2336_v9  ;;  %v2343_v46 = vadd.f32 %v2342_v35, %v2341_v22  ;;  %vm2977_vm14 = vmor %vm2975_vm12, %vm2976_vm13  ;;  %v2087_v35 = vpop.f32.mrf.mxu3 }
 0x324   :  { %v2980_v33 = vmul.f32 %v6442_v49, %v6403_v11  ;;  %v2737_v34 = vmul.f32 %v2651_v54, %v5258_v53  ;;  %v2346_v6 = vsel %vm2170_vm6, %v6440_v48, 0.0  ;;  %v1488_v58 = vperm.slane %v6364_v1, 2 }
 0x325   :  { %v2974_v50 = vmul.f32 %v3552_v16, %v2973_v47  ;;  %v2418_v60 = vmul.f32 %v2338_v32, %v5258_v53  ;;  %v2344_v45 = vrot.slane %v2343_v46, 1  ;;  %v2347_v38 = vrot.slane %v2346_v6, 4 }
 0x326   :  { %v3323_v23 = vadd.f32 %v3259_v19, %v3219_v21  ;;  %v3356_v43 = vmax.f32 %v3324_v18, 0.0  ;;  %v6456_v14 = vadd.f32 1e-05, %v2737_v34  ;;  %v6458_v29 = vadd.f32 %v2067_v39, %v1488_v58 }
 0x327   :  { %v2978_v4 = vsel %vm2977_vm14, %v3552_v16, %v2974_v50  ;;  %v6461_v27 = vsub.f32 %v6368_v26, %v2418_v60  ;;  %v2345_v17 = vadd.f32 %v2344_v45, %v2343_v46  ;;  %v2348_v31 = vadd.f32 %v2347_v38, %v2346_v6 }
 0x328   :  { %v6463_v40 = vpop.eup %3555  ;;  %v3118_v25 = vmul.f32 %v2978_v4, %v6313_v28  ;;  %v3262_v59 = vperm.slane %v6423_v62, 3  ;;  %v2981_v57 = vmul.f32 %v6442_v49, %v2980_v33  ;;  %3557 = vrsqrt.f32 %v6456_v14 }
 0x329   :  { %v3357_v52 = vmax.f32 %v3325_v37, 0.0  ;;  %v2990_v5 = vmul.f32 %v6463_v40, %v6438_v55  ;;  %v2482_v26 = vmul.f32 %v6461_v27, %v6461_v27  ;;  %v2419_v16 = vmul.f32 %v2345_v17, %v5258_v53 }
 0x32a   :  { %v3355_v20 = vmax.f32 %v3323_v23, 0.0  ;;  %v3415_v7 = vrot.slane %v3356_v43, 6  ;;  %v3222_v19 = vmul.f32 %v3158_v0, %v3118_v25  ;;  %v2349_v10 = vrot.slane %v2348_v31, 2 }
 0x32b   :  { %v2991_v28 = vmul.f32 %v6463_v40, %v2990_v5  ;;  %v2652_v12 = vsel %vm2170_vm6, %v2482_v26, 0.0  ;;  %v6477_v2 = vsub.f32 %v6395_v3, %v2419_v16  ;;  %v2353_v8 = vsel %vm2170_vm6, %v6458_v29, 0.0 }
 0x32c   :  { %v3326_v15 = vadd.f32 %v3262_v59, %v3222_v19  ;;  %v2982_v41 = vmul.f32 0.5, %v2981_v57  ;;  %v2653_v9 = vrot.slane %v2652_v12, 4  ;;  %v2350_v22 = vadd.f32 %v2349_v10, %v2348_v31 }
 0x32d   :  { %v3416_v44 = vrot.slane %v3357_v52, 4  ;;  %v2992_v24 = vmul.f32 0.5, %v2991_v28  ;;  %v2483_v30 = vmul.f32 %v6477_v2, %v6477_v2  ;;  %v1489_v0 = vperm.slane %v6364_v1, 3 }
 0x32e   :  { %v6484_v21 = vpop.eup %3557  ;;  %v3358_v61 = vmax.f32 %v3326_v15, 0.0  ;;  %v2654_v36 = vadd.f32 %v2653_v9, %v2652_v12  ;;  %v2351_v3 = vrot.slane %v2350_v22, 1  ;;  %v2354_v42 = vrot.slane %v2353_v8, 4 }
 0x32f   :  { %v3441_v18 = vsel %vm2170_vm6, %v3355_v20, %v3415_v7  ;;  %v3159_v54 = vperm.slane %v6344_v56, 4  ;;  %v3000_v37 = vmul.f32 %v6484_v21, %v6456_v14  ;;  %v2983_v32 = vsub.f32 1.5, %v2982_v41 }
 0x330   :  { %v3417_v47 = vrot.slane %v3358_v61, 2  ;;  %v2655_v46 = vrot.slane %v2654_v36, 2  ;;  %v2659_v39 = vsel %vm2170_vm6, %v2483_v30, 0.0  ;;  %v2993_v33 = vsub.f32 1.5, %v2992_v24 }
 0x331   :  { %v3001_v34 = vmul.f32 %v6484_v21, %v3000_v37  ;;  %v2660_v6 = vrot.slane %v2659_v39, 4  ;;  %v6492_v58 = vadd.f32 %v2087_v35, %v1489_v0  ;;  %v2352_v45 = vadd.f32 %v2351_v3, %v2350_v22  ;;  %v2107_v3 = vpop.f32.mrf.mxu0 }
 0x332   :  { %v3442_v50 = vsel %vm3428_vm3, %v3416_v44, %v3417_v47  ;;  %v2656_v60 = vadd.f32 %v2655_v46, %v2654_v36  ;;  %v2355_v38 = vadd.f32 %v2354_v42, %v2353_v8  ;;  %vm2985_vm15 = vweird.f32 %v6403_v11 }
 0x333   :  { %v3443_v23 = vsel %vm3430_vm4, %v3441_v18, %v3442_v50  ;;  %v3002_v43 = vmul.f32 0.5, %v3001_v34  ;;  %v2661_v4 = vadd.f32 %v2660_v6, %v2659_v39  ;;  %v2984_v17 = vmul.f32 %v6442_v49, %v2983_v32  ;;  %v2127_v50 = vpop.f32.mrf.mxu1 }
 0x334   :  { %3465 = vst [vmem:[%s6759_s9 + $0x20] sm:$0xff] %v3443_v23  ;;  %vm2986_vm0 = vweird.f32 %v6442_v49  ;;  %v2657_v31 = vrot.slane %v2656_v60, 1  ;;  %v2420_v25 = vmul.f32 %v2352_v45, %v5258_v53  ;;  %v2994_v59 = vmul.f32 %v6463_v40, %v2993_v33 }
 0x335   :  { %vm2996_vm1 = vweird.f32 %v6463_v40  ;;  %v2662_v57 = vrot.slane %v2661_v4, 2  ;;  %v2356_v52 = vrot.slane %v2355_v38, 2  ;;  %v3003_v5 = vsub.f32 1.5, %v3002_v43  ;;  %vm6512_vm2 = vmor %vm2985_vm15, %vm2986_vm0 }
 0x336   :  { %v2658_v26 = vadd.f32 %v2657_v31, %v2656_v60  ;;  %v6506_v16 = vsub.f32 %v6440_v48, %v2420_v25  ;;  %v2360_v20 = vsel %vm2170_vm6, %v6492_v58, 0.0  ;;  %vm2995_vm5 = vweird.f32 %v6438_v55 }
 0x337   :  { %v2663_v19 = vadd.f32 %v2662_v57, %v2661_v4  ;;  %v2357_v10 = vadd.f32 %v2356_v52, %v2355_v38  ;;  %v2361_v28 = vrot.slane %v2360_v20, 4  ;;  %v2988_v12 = vsel %vm6512_vm2, %v6442_v49, %v2984_v17  ;;  %vm6520_vm7 = vmor %vm2995_vm5, %vm2996_vm1 }
 0x338   :  { %vm3006_vm8 = vweird.f32 %v6484_v21  ;;  %v2738_v11 = vmul.f32 %v2658_v26, %v5258_v53  ;;  %v2484_v8 = vmul.f32 %v6506_v16, %v6506_v16  ;;  %v2998_v55 = vsel %vm6520_vm7, %v6463_v40, %v2994_v59 }
 0x339   :  { %v2664_v15 = vrot.slane %v2663_v19, 1  ;;  %v2358_v41 = vrot.slane %v2357_v10, 1  ;;  %v2362_v9 = vadd.f32 %v2361_v28, %v2360_v20  ;;  %v3004_v49 = vmul.f32 %v6484_v21, %v3003_v5 }
 0x33a   :  { %v6532_v22 = vadd.f32 1e-05, %v2738_v11  ;;  %v2666_v44 = vsel %vm2170_vm6, %v2484_v8, 0.0  ;;  %v1490_v24 = vperm.slane %v6364_v1, 4  ;;  %v3263_v42 = vperm.slane %v6423_v62, 4 }
 0x33b   :  { %v2665_v30 = vadd.f32 %v2664_v15, %v2663_v19  ;;  %v2667_v0 = vrot.slane %v2666_v44, 4  ;;  %v2359_v61 = vadd.f32 %v2358_v41, %v2357_v10  ;;  %v2363_v36 = vrot.slane %v2362_v9, 2 }
 0x33c   :  { %v3160_v40 = vperm.slane %v6344_v56, 5  ;;  %vm3005_vm9 = vweird.f32 %v6456_v14  ;;  %3559 = vrsqrt.f32 %v6532_v22  ;;  %v3119_v35 = vmul.f32 %v2988_v12, %v6324_v13 }
 0x33d   :  { %v3120_v18 = vmul.f32 %v2998_v55, %v6354_v63  ;;  %v2668_v37 = vadd.f32 %v2667_v0, %v2666_v44  ;;  %v2421_v47 = vmul.f32 %v2359_v61, %v5258_v53  ;;  %v3264_v32 = vperm.slane %v6423_v62, 5  ;;  %vm6546_vm10 = vmor %vm3005_vm9, %vm3006_vm8 }
 0x33e   :  { %v3161_v39 = vperm.slane %v6344_v56, 6  ;;  %v2364_v14 = vadd.f32 %v2363_v36, %v2362_v9  ;;  %v6551_v33 = vadd.f32 %v2107_v3, %v1490_v24  ;;  %v3008_v13 = vsel %vm6546_vm10, %v6484_v21, %v3004_v49 }
 0x33f   :  { %v2739_v63 = vmul.f32 %v2665_v30, %v5258_v53  ;;  %v2669_v34 = vrot.slane %v2668_v37, 2  ;;  %v6558_v6 = vsub.f32 %v6458_v29, %v2421_v47  ;;  %v3265_v60 = vperm.slane %v6423_v62, 6 }
 0x340   :  { %v2365_v45 = vrot.slane %v2364_v14, 1  ;;  %v2367_v38 = vsel %vm2170_vm6, %v6551_v33, 0.0  ;;  %v1491_v23 = vperm.slane %v6364_v1, 5  ;;  %v6566_v43 = vmul.f32 %v3159_v54, %v3119_v35 }
 0x341   :  { %v3224_v21 = vmul.f32 %v3160_v40, %v3120_v18  ;;  %v2670_v4 = vadd.f32 %v2669_v34, %v2668_v37  ;;  %v2485_v17 = vmul.f32 %v6558_v6, %v6558_v6  ;;  %v3121_v31 = vmul.f32 %v3008_v13, %v6382_v51  ;;  %v2147_v18 = vpop.f32.mrf.mxu2 }
 0x342   :  { %v3560_v29 = vpop.eup %3559  ;;  %v2366_v25 = vadd.f32 %v2365_v45, %v2364_v14  ;;  %v2368_v59 = vrot.slane %v2367_v38, 4  ;;  %v6571_v57 = vadd.f32 %v2127_v50, %v1491_v23  ;;  %v6574_v5 = vadd.f32 1e-05, %v2739_v63 }
 0x343   :  { %v3010_v52 = vmul.f32 %v3560_v29, %v6532_v22  ;;  %v2671_v26 = vrot.slane %v2670_v4, 1  ;;  %v2673_v54 = vsel %vm2170_vm6, %v2485_v17, 0.0  ;;  %v3162_v51 = vperm.slane %v6344_v56, 7 }
 0x344   :  { %v2674_v20 = vrot.slane %v2673_v54, 4  ;;  %v2422_v7 = vmul.f32 %v2366_v25, %v5258_v53  ;;  %v2369_v19 = vadd.f32 %v2368_v59, %v2367_v38  ;;  %v2374_v10 = vsel %vm2170_vm6, %v6571_v57, 0.0 }
 0x345   :  { %v3011_v28 = vmul.f32 %v3560_v29, %v3010_v52  ;;  %v2672_v12 = vadd.f32 %v2671_v26, %v2670_v4  ;;  %v2375_v48 = vrot.slane %v2374_v10, 4  ;;  %v3225_v11 = vmul.f32 %v3161_v39, %v3121_v31  ;;  %v2167_v26 = vpop.f32.mrf.mxu3 }
 0x346   :  { %v2675_v8 = vadd.f32 %v2674_v20, %v2673_v54  ;;  %v6582_v55 = vsub.f32 %v6492_v58, %v2422_v7  ;;  %v2370_v15 = vrot.slane %v2369_v19, 2  ;;  %v3328_v41 = vadd.f32 %v3264_v32, %v3224_v21 }
 0x347   :  { %v3012_v9 = vmul.f32 0.5, %v3011_v28  ;;  %v2740_v49 = vmul.f32 %v2672_v12, %v5258_v53  ;;  %v2376_v44 = vadd.f32 %v2375_v48, %v2374_v10  ;;  %vm3016_vm11 = vweird.f32 %v3560_v29 }
 0x348   :  { %3561 = vrsqrt.f32 %v6574_v5  ;;  %v2676_v24 = vrot.slane %v2675_v8, 2  ;;  %v2486_v56 = vmul.f32 %v6582_v55, %v6582_v55  ;;  %v2371_v61 = vadd.f32 %v2370_v15, %v2369_v19 }
 0x349   :  { %v3013_v30 = vsub.f32 1.5, %v3012_v9  ;;  %v6588_v0 = vadd.f32 1e-05, %v2740_v49  ;;  %v1492_v58 = vperm.slane %v6364_v1, 6  ;;  %v3329_v36 = vadd.f32 %v3265_v60, %v3225_v11 }
 0x34a   :  { %v2677_v3 = vadd.f32 %v2676_v24, %v2675_v8  ;;  %v2680_v40 = vsel %vm2170_vm6, %v2486_v56, 0.0  ;;  %v2377_v35 = vrot.slane %v2376_v44, 2  ;;  %vm3015_vm12 = vweird.f32 %v6532_v22 }
 0x34b   :  { %v3014_v37 = vmul.f32 %v3560_v29, %v3013_v30  ;;  %3563 = vrsqrt.f32 %v6588_v0  ;;  %v2681_v47 = vrot.slane %v2680_v40, 4  ;;  %vm3017_vm13 = vmor %vm3015_vm12, %vm3016_vm11  ;;  %v3266_v32 = vperm.slane %v6423_v62, 7 }
 0x34c   :  { %v2678_v46 = vrot.slane %v2677_v3, 1  ;;  %v2372_v39 = vrot.slane %v2371_v61, 1  ;;  %v2378_v14 = vadd.f32 %v2377_v35, %v2376_v44  ;;  %v3360_v13 = vmax.f32 %v3328_v41, 0.0 }
 0x34d   :  { %v3018_v63 = vsel %vm3017_vm13, %v3560_v29, %v3014_v37  ;;  %v2682_v34 = vadd.f32 %v2681_v47, %v2680_v40  ;;  %v6596_v50 = vadd.f32 %v2147_v18, %v1492_v58  ;;  %v3361_v45 = vmax.f32 %v3329_v36, 0.0  ;;  %v6639_v40 = vld [vmem:[%s6757_s7 + $0x18] sm:$0xff] }
 0x34e   :  { %v6598_v60 = vpop.eup %3561  ;;  %v3122_v22 = vmul.f32 %v3018_v63, %v6461_v27  ;;  %v2679_v38 = vadd.f32 %v2678_v46, %v2677_v3  ;;  %v2373_v23 = vadd.f32 %v2372_v39, %v2371_v61  ;;  %v2379_v4 = vrot.slane %v2378_v14, 1 }
 0x34f   :  { %v2683_v21 = vrot.slane %v2682_v34, 2  ;;  %v2381_v17 = vsel %vm2170_vm6, %v6596_v50, 0.0  ;;  %v1493_v31 = vperm.slane %v6364_v1, 7  ;;  %v3327_v29 = vadd.f32 %v3263_v42, %v6566_v43 }
 0x350   :  { %v3226_v25 = vmul.f32 %v3162_v51, %v3122_v22  ;;  %v2741_v59 = vmul.f32 %v2679_v38, %v5258_v53  ;;  %v2423_v52 = vmul.f32 %v2373_v23, %v5258_v53  ;;  %v3020_v54 = vmul.f32 %v6598_v60, %v6574_v5  ;;  %v6656_v22 = vld [vmem:[%s6758_s8 + $0x18] sm:$0xff] }
 0x351   :  { %v6609_v27 = vpop.eup %3563  ;;  %v2684_v20 = vadd.f32 %v2683_v21, %v2682_v34  ;;  %v2380_v7 = vadd.f32 %v2379_v4, %v2378_v14  ;;  %v2382_v19 = vrot.slane %v2381_v17, 4  ;;  %v3418_v10 = vrot.slane %v3360_v13, 6 }
 0x352   :  { %v3419_v1 = vrot.slane %v3361_v45, 4  ;;  %v3330_v28 = vadd.f32 %v3266_v32, %v3226_v25  ;;  %v3030_v62 = vmul.f32 %v6609_v27, %v6588_v0  ;;  %v6615_v42 = vadd.f32 1e-05, %v2741_v59 }
 0x353   :  { %v2685_v43 = vrot.slane %v2684_v20, 1  ;;  %v6618_v51 = vsub.f32 %v6551_v33, %v2423_v52  ;;  %v6620_v12 = vadd.f32 %v2167_v26, %v1493_v31  ;;  %v2424_v8 = vmul.f32 %v2380_v7, %v5258_v53 }
 0x354   :  { %v3362_v48 = vmax.f32 %v3330_v28, 0.0  ;;  %v3031_v11 = vmul.f32 %v6609_v27, %v3030_v62  ;;  %v2383_v15 = vadd.f32 %v2382_v19, %v2381_v17  ;;  %v3359_v41 = vmax.f32 %v3327_v29, 0.0 }
 0x355   :  { %v3021_v9 = vmul.f32 %v6598_v60, %v3020_v54  ;;  %3565 = vrsqrt.f32 %v6615_v42  ;;  %v2686_v49 = vadd.f32 %v2685_v43, %v2684_v20  ;;  %v2487_v33 = vmul.f32 %v6618_v51, %v6618_v51 }
 0x356   :  { %v3420_v44 = vrot.slane %v3362_v48, 2  ;;  %v3032_v24 = vmul.f32 0.5, %v3031_v11  ;;  %v6629_v56 = vsub.f32 %v6571_v57, %v2424_v8  ;;  %v3444_v30 = vsel %vm2170_vm6, %v3359_v41, %v3418_v10 }
 0x357   :  { %v2742_v61 = vmul.f32 %v2686_v49, %v5258_v53  ;;  %v2384_v58 = vrot.slane %v2383_v15, 2  ;;  %v2388_v36 = vsel %vm2170_vm6, %v6620_v12, 0.0  ;;  %v2687_v18 = vsel %vm2170_vm6, %v2487_v33, 0.0 }
 0x358   :  { %v3445_v3 = vsel %vm3428_vm3, %v3419_v1, %v3420_v44  ;;  %v3033_v35 = vsub.f32 1.5, %v3032_v24  ;;  %v2488_v57 = vmul.f32 %v6629_v56, %v6629_v56  ;;  %v3022_v47 = vmul.f32 0.5, %v3021_v9 }
 0x359   :  { %v3446_v37 = vsel %vm3430_vm4, %v3444_v30, %v3445_v3  ;;  %v6645_v32 = vadd.f32 1e-05, %v2742_v61  ;;  %v2688_v46 = vrot.slane %v2687_v18, 4  ;;  %v2385_v14 = vadd.f32 %v2384_v58, %v2383_v15 }
 0x35a   :  { %3466 = vst [vmem:[%s6759_s9 + $0x28] sm:$0xff] %v3446_v37  ;;  %v2694_v39 = vsel %vm2170_vm6, %v2488_v57, 0.0  ;;  %v2389_v13 = vrot.slane %v2388_v36, 4  ;;  %v3163_v34 = vperm.slane %v6639_v40, 0  ;;  %v3034_v38 = vmul.f32 %v6609_v27, %v3033_v35 }
 0x35b   :  { %v3566_v63 = vpop.eup %3565  ;;  %3567 = vrsqrt.f32 %v6645_v32  ;;  %v2689_v45 = vadd.f32 %v2688_v46, %v2687_v18  ;;  %vm3036_vm14 = vweird.f32 %v6609_v27  ;;  %v2695_v21 = vrot.slane %v2694_v39, 4 }
 0x35c   :  { %v3040_v23 = vmul.f32 %v3566_v63, %v6615_v42  ;;  %v3023_v4 = vsub.f32 1.5, %v3022_v47  ;;  %v3164_v17 = vperm.slane %v6639_v40, 1  ;;  %v2386_v29 = vrot.slane %v2385_v14, 1 }
 0x35d   :  { %v2690_v31 = vrot.slane %v2689_v45, 2  ;;  %vm3035_vm15 = vweird.f32 %v6588_v0  ;;  %v2696_v59 = vadd.f32 %v2695_v21, %v2694_v39  ;;  %v2390_v52 = vadd.f32 %v2389_v13, %v2388_v36 }
 0x35e   :  { %v3041_v25 = vmul.f32 %v3566_v63, %v3040_v23  ;;  %vm3025_vm0 = vweird.f32 %v6574_v5  ;;  %vm6664_vm1 = vmor %vm3035_vm15, %vm3036_vm14  ;;  %v3268_v54 = vperm.slane %v6656_v22, 1  ;;  %v2387_v7 = vadd.f32 %v2386_v29, %v2385_v14 }
 0x35f   :  { %v2691_v20 = vadd.f32 %v2690_v31, %v2689_v45  ;;  %v3038_v19 = vsel %vm6664_vm1, %v6609_v27, %v3034_v38  ;;  %v2697_v1 = vrot.slane %v2696_v59, 2  ;;  %v2391_v0 = vrot.slane %v2390_v52, 2 }
 0x360   :  { %v3042_v10 = vmul.f32 0.5, %v3041_v25  ;;  %v3024_v62 = vmul.f32 %v6598_v60, %v3023_v4  ;;  %vm3026_vm2 = vweird.f32 %v6598_v60  ;;  %v2425_v48 = vmul.f32 %v2387_v7, %v5258_v53 }
 0x361   :  { %v3568_v28 = vpop.eup %3567  ;;  %v2692_v43 = vrot.slane %v2691_v20, 1  ;;  %vm3046_vm5 = vweird.f32 %v3566_v63  ;;  %v2698_v15 = vadd.f32 %v2697_v1, %v2696_v59  ;;  %v3124_v41 = vmul.f32 %v3038_v19, %v6506_v16  ;;  %vm6683_vm7 = vmor %vm3025_vm0, %vm3026_vm2 }
 0x362   :  { %v3043_v11 = vsub.f32 1.5, %v3042_v10  ;;  %v3050_v8 = vmul.f32 %v3568_v28, %v6645_v32  ;;  %v3165_v27 = vperm.slane %v6639_v40, 2  ;;  %v6679_v9 = vsub.f32 %v6596_v50, %v2425_v48 }
 0x363   :  { %v2392_v49 = vadd.f32 %v2391_v0, %v2390_v52  ;;  %vm3045_vm8 = vweird.f32 %v6615_v42  ;;  %v2699_v30 = vrot.slane %v2698_v15, 1  ;;  %v3269_v16 = vperm.slane %v6656_v22, 2 }
 0x364   :  { %v3044_v24 = vmul.f32 %v3566_v63, %v3043_v11  ;;  %v3051_v33 = vmul.f32 %v3568_v28, %v3050_v8  ;;  %vm3047_vm9 = vmor %vm3045_vm8, %vm3046_vm5  ;;  %v2693_v61 = vadd.f32 %v2692_v43, %v2691_v20  ;;  %v2489_v50 = vmul.f32 %v6679_v9, %v6679_v9 }
 0x365   :  { %v2393_v58 = vrot.slane %v2392_v49, 1  ;;  %v3028_v5 = vsel %vm6683_vm7, %v6598_v60, %v3024_v62  ;;  %v2700_v35 = vadd.f32 %v2699_v30, %v2698_v15  ;;  %v3228_v18 = vmul.f32 %v3164_v17, %v3124_v41 }
 0x366   :  { %v3048_v36 = vsel %vm3047_vm9, %v3566_v63, %v3044_v24  ;;  %v3052_v3 = vmul.f32 0.5, %v3051_v33  ;;  %vm3056_vm10 = vweird.f32 %v3568_v28  ;;  %v2701_v57 = vsel %vm2170_vm6, %v2489_v50, 0.0 }
 0x367   :  { %v3125_v42 = vmul.f32 %v3048_v36, %v6558_v6  ;;  %v2744_v47 = vmul.f32 %v2700_v35, %v5258_v53  ;;  %v2702_v46 = vrot.slane %v2701_v57, 4  ;;  %v2394_v39 = vadd.f32 %v2393_v58, %v2392_v49 }
 0x368   :  { %v3053_v37 = vsub.f32 1.5, %v3052_v3  ;;  %v3123_v14 = vmul.f32 %v3028_v5, %v6477_v2  ;;  %v3267_v13 = vperm.slane %v6656_v22, 0  ;;  %v2743_v60 = vmul.f32 %v2693_v61, %v5258_v53 }
 0x369   :  { %v3229_v45 = vmul.f32 %v3165_v27, %v3125_v42  ;;  %vm3055_vm11 = vweird.f32 %v6645_v32  ;;  %v6701_v38 = vadd.f32 1e-05, %v2744_v47  ;;  %v2703_v6 = vadd.f32 %v2702_v46, %v2701_v57 }
 0x36a   :  { %v3054_v63 = vmul.f32 %v3568_v28, %v3053_v37  ;;  %v3332_v23 = vadd.f32 %v3268_v54, %v3228_v18  ;;  %vm3057_vm12 = vmor %vm3055_vm11, %vm3056_vm10  ;;  %v3166_v4 = vperm.slane %v6639_v40, 3  ;;  %v2426_v17 = vmul.f32 %v2394_v39, %v5258_v53 }
 0x36b   :  { %v3333_v21 = vadd.f32 %v3269_v16, %v3229_v45  ;;  %v3270_v31 = vperm.slane %v6656_v22, 3  ;;  %3569 = vrsqrt.f32 %v6701_v38  ;;  %v2704_v29 = vrot.slane %v2703_v6, 2 }
 0x36c   :  { %v3058_v2 = vsel %vm3057_vm12, %v3568_v28, %v3054_v63  ;;  %v3227_v32 = vmul.f32 %v3163_v34, %v3123_v14  ;;  %v6711_v59 = vadd.f32 1e-05, %v2743_v60  ;;  %v6714_v52 = vsub.f32 %v6620_v12, %v2426_v17 }
 0x36d   :  { %v3126_v25 = vmul.f32 %v3058_v2, %v6582_v55  ;;  %v2705_v26 = vadd.f32 %v2704_v29, %v2703_v6  ;;  %v3364_v54 = vmax.f32 %v3332_v23, 0.0  ;;  %v3365_v20 = vmax.f32 %v3333_v21, 0.0 }
 0x36e   :  { %v2490_v19 = vmul.f32 %v6714_v52, %v6714_v52  ;;  %v3331_v1 = vadd.f32 %v3267_v13, %v3227_v32  ;;  %3571 = vrsqrt.f32 %v6711_v59  ;;  %vm3075_vm15 = vweird.f32 %v6701_v38 }
 0x36f   :  { %v3230_v7 = vmul.f32 %v3166_v4, %v3126_v25  ;;  %v2706_v10 = vrot.slane %v2705_v26, 1  ;;  %v3421_v43 = vrot.slane %v3364_v54, 6  ;;  %v3422_v12 = vrot.slane %v3365_v20, 4 }
 0x370   :  { %v2708_v34 = vsel %vm2170_vm6, %v2490_v19, 0.0  ;;  %v3363_v41 = vmax.f32 %v3331_v1, 0.0  ;;  %v3168_v2 = vperm.slane %v6639_v40, 5  ;;  %v3169_v29 = vperm.slane %v6639_v40, 6 }
 0x371   :  { %v3334_v0 = vadd.f32 %v3270_v31, %v3230_v7  ;;  %v3570_v55 = vpop.eup %3569  ;;  %v2707_v28 = vadd.f32 %v2706_v10, %v2705_v26  ;;  %v2709_v62 = vrot.slane %v2708_v34, 4  ;;  %vm3065_vm7 = vweird.f32 %v6711_v59 }
 0x372   :  { %v3070_v11 = vmul.f32 %v3570_v55, %v6701_v38  ;;  %v3447_v33 = vsel %vm2170_vm6, %v3363_v41, %v3421_v43  ;;  %vm3076_vm13 = vweird.f32 %v3570_v55  ;;  %v3272_v54 = vperm.slane %v6656_v22, 5 }
 0x373   :  { %v3366_v48 = vmax.f32 %v3334_v0, 0.0  ;;  %v2745_v8 = vmul.f32 %v2707_v28, %v5258_v53  ;;  %v2710_v15 = vadd.f32 %v2709_v62, %v2708_v34  ;;  %vm3077_vm0 = vmor %vm3075_vm15, %vm3076_vm13  ;;  %v3273_v7 = vperm.slane %v6656_v22, 6 }
 0x374   :  { %v3572_v24 = vpop.eup %3571  ;;  %v3071_v61 = vmul.f32 %v3570_v55, %v3070_v11  ;;  %v3170_v0 = vperm.slane %v6639_v40, 7  ;;  %v3271_v28 = vperm.slane %v6656_v22, 4  ;;  %v3274_v43 = vperm.slane %v6656_v22, 7 }
 0x375   :  { %v3423_v27 = vrot.slane %v3366_v48, 2  ;;  %v2777_v49 = vadd.f32 1e-05, %v2745_v8  ;;  %v2711_v44 = vrot.slane %v2710_v15, 2  ;;  %v3060_v58 = vmul.f32 %v3572_v24, %v6711_v59 }
 0x376   :  { %v3072_v36 = vmul.f32 0.5, %v3071_v61  ;;  %vm3066_vm5 = vweird.f32 %v3572_v24 }
 0x377   :  { %v3448_v30 = vsel %vm3428_vm3, %v3422_v12, %v3423_v27  ;;  %3573 = vrsqrt.f32 %v2777_v49  ;;  %v2712_v50 = vadd.f32 %v2711_v44, %v2710_v15  ;;  %v3061_v18 = vmul.f32 %v3572_v24, %v3060_v58  ;;  %vm3067_vm8 = vmor %vm3065_vm7, %vm3066_vm5 }
 0x378   :  { %v3449_v16 = vsel %vm3430_vm4, %v3447_v33, %v3448_v30  ;;  %v3073_v37 = vsub.f32 1.5, %v3072_v36  ;;  %vm3085_vm1 = vweird.f32 %v2777_v49 }
 0x379   :  { %3467 = vst [vmem:[%s6759_s9 + $0x30] sm:$0xff] %v3449_v16  ;;  %v2713_v5 = vrot.slane %v2712_v50, 1  ;;  %v3062_v39 = vmul.f32 0.5, %v3061_v18 }
 0x37a   :  { %v3074_v13 = vmul.f32 %v3570_v55, %v3073_v37 }
 0x37b   :  { %v2714_v3 = vadd.f32 %v2713_v5, %v2712_v50  ;;  %v3063_v60 = vsub.f32 1.5, %v3062_v39 }
 0x37c   :  { %v3078_v6 = vsel %vm3077_vm0, %v3570_v55, %v3074_v13 }
 0x37d   :  { %v3574_v35 = vpop.eup %3573  ;;  %v2746_v57 = vmul.f32 %v2714_v3, %v5258_v53  ;;  %v3064_v21 = vmul.f32 %v3572_v24, %v3063_v60  ;;  %v3128_v17 = vmul.f32 %v3078_v6, %v6629_v56 }
 0x37e   :  { %v3080_v42 = vmul.f32 %v3574_v35, %v2777_v49  ;;  %vm3086_vm14 = vweird.f32 %v3574_v35 }
 0x37f   :  { %v2778_v46 = vadd.f32 1e-05, %v2746_v57  ;;  %vm3087_vm2 = vmor %vm3085_vm1, %vm3086_vm14  ;;  %v3068_v32 = vsel %vm3067_vm8, %v3572_v24, %v3064_v21  ;;  %v3232_v26 = vmul.f32 %v3168_v2, %v3128_v17 }
 0x380   :  { %v3081_v47 = vmul.f32 %v3574_v35, %v3080_v42  ;;  %v3127_v56 = vmul.f32 %v3068_v32, %v6618_v51 }
 0x381   :  { %3575 = vrsqrt.f32 %v2778_v46  ;;  %vm3095_vm10 = vweird.f32 %v2778_v46  ;;  %v3336_v1 = vadd.f32 %v3272_v54, %v3232_v26 }
 0x382   :  { %v3082_v14 = vmul.f32 0.5, %v3081_v47 }
 0x383   :  { %v3368_v12 = vmax.f32 %v3336_v1, 0.0 }
 0x384   :  { %v3083_v45 = vsub.f32 1.5, %v3082_v14 }
 0x385   :  { %v3424_v15 = vrot.slane %v3368_v12, 6 }
 0x386   :  { %v3084_v63 = vmul.f32 %v3574_v35, %v3083_v45 }
 0x387   :  { %v3576_v23 = vpop.eup %3575 }
 0x388   :  { %v3088_v53 = vsel %vm3087_vm2, %v3574_v35, %v3084_v63  ;;  %v3090_v4 = vmul.f32 %v3576_v23, %v2778_v46  ;;  %vm3096_vm9 = vweird.f32 %v3576_v23 }
 0x389   :  { %v3129_v31 = vmul.f32 %v3088_v53, %v6679_v9  ;;  %v3167_v9 = vperm.slane %v6639_v40, 4  ;;  %vm3097_vm11 = vmor %vm3095_vm10, %vm3096_vm9 }
 0x38a   :  { %v3091_v38 = vmul.f32 %v3576_v23, %v3090_v4 }
 0x38b   :  { %v3233_v20 = vmul.f32 %v3169_v29, %v3129_v31  ;;  %v3231_v55 = vmul.f32 %v3167_v9, %v3127_v56 }
 0x38c   :  { %v3092_v25 = vmul.f32 0.5, %v3091_v38 }
 0x38d   :  { %v3337_v59 = vadd.f32 %v3273_v7, %v3233_v20  ;;  %v3335_v11 = vadd.f32 %v3271_v28, %v3231_v55 }
 0x38e   :  { %v3093_v19 = vsub.f32 1.5, %v3092_v25 }
 0x38f   :  { %v3369_v48 = vmax.f32 %v3337_v59, 0.0  ;;  %v3367_v49 = vmax.f32 %v3335_v11, 0.0 }
 0x390   :  { %v3094_v10 = vmul.f32 %v3576_v23, %v3093_v19 }
 0x391   :  { %v3425_v41 = vrot.slane %v3369_v48, 4  ;;  %v3450_v40 = vsel %vm2170_vm6, %v3367_v49, %v3424_v15 }
 0x392   :  { %v3098_v34 = vsel %vm3097_vm11, %v3576_v23, %v3094_v10 }
 0x393   :  { %v3130_v62 = vmul.f32 %v3098_v34, %v6714_v52 }
 0x395   :  { %v3234_v51 = vmul.f32 %v3170_v0, %v3130_v62 }
 0x397   :  { %v3338_v8 = vadd.f32 %v3274_v43, %v3234_v51 }
 0x399   :  { %v3370_v27 = vmax.f32 %v3338_v8, 0.0 }
 0x39b   :  { %v3426_v44 = vrot.slane %v3370_v27, 2 }
 0x39d   :  { %v3451_v24 = vsel %vm3428_vm3, %v3425_v41, %v3426_v44 }
 0x39e   :  { %v3452_v33 = vsel %vm3430_vm4, %v3450_v40, %v3451_v24 }
 0x39f   :  { %3468 = vst [vmem:[%s6759_s9 + $0x38] sm:$0xff] %v3452_v33 }

// kernel: discriminator_forward.5
= control target key start
LH: loop header
LB: loop body
LE: loop exit
PB: predicated region body
PF: predicated region fallthrough
CT: control target
= control target key end

     0   :  { %vm108_vm0 = vcmask 523264   ;;  %s527_s1 = inlined_call_operand.vmem [shape: f32[576,128], index: 1, kind: input, shape index: {}]   ;;  %s528_s0 = inlined_call_operand.vmem [shape: f32[16,576], index: 0, kind: input, shape index: {}]   ;;  %s529_s2 = inlined_call_operand.vmem [shape: f32[16,1], index: 2, kind: input, shape index: {}]   ;;  %s530_s3 = inlined_call_operand.vmem [shape: f32[16,128], index: 3, kind: output, shape index: {}]  }
   0x1   :  { %v39_v0 = vld [vmem:[%s527_s1 + $0x78] sm:$0xff]  ;;  %v38_v2 = vld [vmem:[%s527_s1 + $0x70] sm:$0xff]  ;;  %v37_v6 = vld [vmem:[%s527_s1 + $0x68] sm:$0xff] }
   0x2   :  { %v71_v1 = vld [vmem:[%s527_s1 + $0x178] sm:$0xff]  ;;  %115 = vmatpush.msra.mxu0 %v39_v0  ;;  %v70_v4 = vld [vmem:[%s527_s1 + $0x170] sm:$0xff]  ;;  %v69_v8 = vld [vmem:[%s527_s1 + $0x168] sm:$0xff] }
   0x3   :  { %161 = vmatpush.msra.mxu2 %v71_v1  ;;  %v55_v3 = vld [vmem:[%s527_s1 + $0xf8] sm:$0xff]  ;;  %v54_v7 = vld [vmem:[%s527_s1 + $0xf0] sm:$0xff]  ;;  %v53_v10 = vld [vmem:[%s527_s1 + $0xe8] sm:$0xff] }
   0x4   :  { %v87_v5 = vld [vmem:[%s527_s1 + $0x1f8] sm:$0xff]  ;;  %138 = vmatpush.msra.mxu1 %v55_v3  ;;  %116 = vmatpush.msra.mxu0 %v38_v2  ;;  %v86_v9 = vld [vmem:[%s527_s1 + $0x1f0] sm:$0xff]  ;;  %v36_v11 = vld [vmem:[%s527_s1 + $0x60] sm:$0xff] }
   0x5   :  { %184 = vmatpush.msra.mxu3 %v87_v5  ;;  %162 = vmatpush.msra.mxu2 %v70_v4  ;;  %v68_v12 = vld [vmem:[%s527_s1 + $0x160] sm:$0xff]  ;;  %v85_v13 = vld [vmem:[%s527_s1 + $0x1e8] sm:$0xff]  ;;  %v35_v16 = vld [vmem:[%s527_s1 + $0x58] sm:$0xff] }
   0x6   :  { %139 = vmatpush.msra.mxu1 %v54_v7  ;;  %117 = vmatpush.msra.mxu0 %v37_v6  ;;  %v52_v14 = vld [vmem:[%s527_s1 + $0xe0] sm:$0xff]  ;;  %v67_v17 = vld [vmem:[%s527_s1 + $0x158] sm:$0xff]  ;;  %v34_v20 = vld [vmem:[%s527_s1 + $0x50] sm:$0xff] }
   0x7   :  { %185 = vmatpush.msra.mxu3 %v86_v9  ;;  %163 = vmatpush.msra.mxu2 %v69_v8  ;;  %v84_v15 = vld [vmem:[%s527_s1 + $0x1e0] sm:$0xff]  ;;  %v51_v18 = vld [vmem:[%s527_s1 + $0xd8] sm:$0xff]  ;;  %v66_v21 = vld [vmem:[%s527_s1 + $0x150] sm:$0xff]  ;;  %v248_v8 = vmov 0  }
   0x8   :  { %140 = vmatpush.msra.mxu1 %v53_v10  ;;  %118 = vmatpush.msra.mxu0 %v36_v11  ;;  %v83_v19 = vld [vmem:[%s527_s1 + $0x1d8] sm:$0xff]  ;;  %v50_v22 = vld [vmem:[%s527_s1 + $0xd0] sm:$0xff]  ;;  %v33_v24 = vld [vmem:[%s527_s1 + $0x48] sm:$0xff] }
   0x9   :  { %186 = vmatpush.msra.mxu3 %v85_v13  ;;  %164 = vmatpush.msra.mxu2 %v68_v12  ;;  %v82_v23 = vld [vmem:[%s527_s1 + $0x1d0] sm:$0xff]  ;;  %v65_v25 = vld [vmem:[%s527_s1 + $0x148] sm:$0xff]  ;;  %v32_v28 = vld [vmem:[%s527_s1 + $0x40] sm:$0xff] }
   0xa   :  { %141 = vmatpush.msra.mxu1 %v52_v14  ;;  %119 = vmatpush.msra.mxu0 %v35_v16  ;;  %v49_v26 = vld [vmem:[%s527_s1 + $0xc8] sm:$0xff]  ;;  %v64_v29 = vld [vmem:[%s527_s1 + $0x140] sm:$0xff]  ;;  %v31_v32 = vld [vmem:[%s527_s1 + $0x38] sm:$0xff] }
   0xb   :  { %187 = vmatpush.msra.mxu3 %v84_v15  ;;  %165 = vmatpush.msra.mxu2 %v67_v17  ;;  %v81_v27 = vld [vmem:[%s527_s1 + $0x1c8] sm:$0xff]  ;;  %v48_v30 = vld [vmem:[%s527_s1 + $0xc0] sm:$0xff]  ;;  %v63_v33 = vld [vmem:[%s527_s1 + $0x138] sm:$0xff] }
   0xc   :  { %142 = vmatpush.msra.mxu1 %v51_v18  ;;  %120 = vmatpush.msra.mxu0 %v34_v20  ;;  %v80_v31 = vld [vmem:[%s527_s1 + $0x1c0] sm:$0xff]  ;;  %v47_v34 = vld [vmem:[%s527_s1 + $0xb8] sm:$0xff]  ;;  %v30_v36 = vld [vmem:[%s527_s1 + $0x30] sm:$0xff] }
   0xd   :  { %188 = vmatpush.msra.mxu3 %v83_v19  ;;  %166 = vmatpush.msra.mxu2 %v66_v21  ;;  %v79_v35 = vld [vmem:[%s527_s1 + $0x1b8] sm:$0xff]  ;;  %v62_v37 = vld [vmem:[%s527_s1 + $0x130] sm:$0xff]  ;;  %v29_v40 = vld [vmem:[%s527_s1 + $0x28] sm:$0xff] }
   0xe   :  { %143 = vmatpush.msra.mxu1 %v50_v22  ;;  %121 = vmatpush.msra.mxu0 %v33_v24  ;;  %v46_v38 = vld [vmem:[%s527_s1 + $0xb0] sm:$0xff]  ;;  %v61_v41 = vld [vmem:[%s527_s1 + $0x128] sm:$0xff]  ;;  %v28_v44 = vld [vmem:[%s527_s1 + $0x20] sm:$0xff] }
   0xf   :  { %189 = vmatpush.msra.mxu3 %v82_v23  ;;  %167 = vmatpush.msra.mxu2 %v65_v25  ;;  %v78_v39 = vld [vmem:[%s527_s1 + $0x1b0] sm:$0xff]  ;;  %v45_v42 = vld [vmem:[%s527_s1 + $0xa8] sm:$0xff]  ;;  %v60_v45 = vld [vmem:[%s527_s1 + $0x120] sm:$0xff] }
  0x10   :  { %144 = vmatpush.msra.mxu1 %v49_v26  ;;  %122 = vmatpush.msra.mxu0 %v32_v28  ;;  %v77_v43 = vld [vmem:[%s527_s1 + $0x1a8] sm:$0xff]  ;;  %v44_v46 = vld [vmem:[%s527_s1 + $0xa0] sm:$0xff]  ;;  %v27_v48 = vld [vmem:[%s527_s1 + $0x18] sm:$0xff] }
  0x11   :  { %190 = vmatpush.msra.mxu3 %v81_v27  ;;  %168 = vmatpush.msra.mxu2 %v64_v29  ;;  %v76_v47 = vld [vmem:[%s527_s1 + $0x1a0] sm:$0xff]  ;;  %v59_v49 = vld [vmem:[%s527_s1 + $0x118] sm:$0xff]  ;;  %v26_v52 = vld [vmem:[%s527_s1 + $0x10] sm:$0xff] }
  0x12   :  { %145 = vmatpush.msra.mxu1 %v48_v30  ;;  %123 = vmatpush.msra.mxu0 %v31_v32  ;;  %v43_v50 = vld [vmem:[%s527_s1 + $0x98] sm:$0xff]  ;;  %v58_v53 = vld [vmem:[%s527_s1 + $0x110] sm:$0xff]  ;;  %v25_v56 = vld [vmem:[%s527_s1 + $0x8] sm:$0xff] }
  0x13   :  { %191 = vmatpush.msra.mxu3 %v80_v31  ;;  %169 = vmatpush.msra.mxu2 %v63_v33  ;;  %v75_v51 = vld [vmem:[%s527_s1 + $0x198] sm:$0xff]  ;;  %v42_v54 = vld [vmem:[%s527_s1 + $0x90] sm:$0xff]  ;;  %v57_v57 = vld [vmem:[%s527_s1 + $0x108] sm:$0xff] }
  0x14   :  { %146 = vmatpush.msra.mxu1 %v47_v34  ;;  %124 = vmatpush.msra.mxu0 %v30_v36  ;;  %v74_v55 = vld [vmem:[%s527_s1 + $0x190] sm:$0xff]  ;;  %v41_v58 = vld [vmem:[%s527_s1 + $0x88] sm:$0xff]  ;;  %v24_v60 = vld [vmem:[%s527_s1] sm:$0xff] }
  0x15   :  { %192 = vmatpush.msra.mxu3 %v79_v35  ;;  %170 = vmatpush.msra.mxu2 %v62_v37  ;;  %v73_v59 = vld [vmem:[%s527_s1 + $0x188] sm:$0xff]  ;;  %v56_v61 = vld [vmem:[%s527_s1 + $0x100] sm:$0xff]  ;;  %v16_v63 = vld [vmem:[%s528_s0 + $0x10] sm:$0xff] }
  0x16   :  { %147 = vmatpush.msra.mxu1 %v46_v38  ;;  %125 = vmatpush.msra.mxu0 %v29_v40  ;;  %v14_v62 = vld [vmem:[%s528_s0] sm:$0xff]  ;;  %v95_v2 = vld [vmem:[%s527_s1 + $0x238] sm:$0xff]  ;;  %v15_v3 = vld [vmem:[%s528_s0 + $0x8] sm:$0xff] }
  0x17   :  { %193 = vmatpush.msra.mxu3 %v78_v39  ;;  %171 = vmatpush.msra.mxu2 %v61_v41  ;;  %v40_v0 = vld [vmem:[%s527_s1 + $0x80] sm:$0xff]  ;;  %v17_v4 = vld [vmem:[%s528_s0 + $0x18] sm:$0xff]  ;;  %v94_v5 = vld [vmem:[%s527_s1 + $0x230] sm:$0xff] }
  0x18   :  { %148 = vmatpush.msra.mxu1 %v45_v42  ;;  %126 = vmatpush.msra.mxu0 %v28_v44  ;;  %v72_v1 = vld [vmem:[%s527_s1 + $0x180] sm:$0xff]  ;;  %v93_v7 = vld [vmem:[%s527_s1 + $0x228] sm:$0xff]  ;;  %v21_v10 = vld [vmem:[%s528_s0 + $0x38] sm:$0xff] }
  0x19   :  { %194 = vmatpush.msra.mxu3 %v77_v43  ;;  %172 = vmatpush.msra.mxu2 %v60_v45  ;;  %v96_v6 = vld [vmem:[%s529_s2] sm:$0xff]  ;;  %v19_v11 = vld [vmem:[%s528_s0 + $0x28] sm:$0xff]  ;;  %v91_v12 = vld [vmem:[%s527_s1 + $0x218] sm:$0xff] }
  0x1a   :  { %149 = vmatpush.msra.mxu1 %v44_v46  ;;  %127 = vmatpush.msra.mxu0 %v27_v48  ;;  %v92_v9 = vld [vmem:[%s527_s1 + $0x220] sm:$0xff]  ;;  %v20_v13 = vld [vmem:[%s528_s0 + $0x30] sm:$0xff]  ;;  %v97_v16 = vld [vmem:[%s529_s2 + $0x8] sm:$0xff] }
  0x1b   :  { %195 = vmatpush.msra.mxu3 %v76_v47  ;;  %173 = vmatpush.msra.mxu2 %v59_v49  ;;  %v22_v14 = vld [vmem:[%s528_s0 + $0x40] sm:$0xff]  ;;  %v90_v15 = vld [vmem:[%s527_s1 + $0x210] sm:$0xff]  ;;  %v89_v17 = vld [vmem:[%s527_s1 + $0x208] sm:$0xff] }
  0x1c   :  { %150 = vmatpush.msra.mxu1 %v43_v50  ;;  %128 = vmatpush.msra.mxu0 %v26_v52  ;;  %v88_v18 = vld [vmem:[%s527_s1 + $0x200] sm:$0xff]  ;;  %v23_v20 = vld [vmem:[%s528_s0 + $0x48] sm:$0xff] }
  0x1d   :  { %196 = vmatpush.msra.mxu3 %v75_v51  ;;  %174 = vmatpush.msra.mxu2 %v58_v53  ;;  %v18_v19 = vld [vmem:[%s528_s0 + $0x20] sm:$0xff] }
  0x1e   :  { %151 = vmatpush.msra.mxu1 %v42_v54  ;;  %129 = vmatpush.msra.mxu0 %v25_v56 }
  0x1f   :  { %197 = vmatpush.msra.mxu3 %v74_v55  ;;  %175 = vmatpush.msra.mxu2 %v57_v57 }
  0x20   :  { %152 = vmatpush.msra.mxu1 %v41_v58  ;;  %130 = vmatpush.msra.mxu0 %v24_v60 }
  0x21   :  { %198 = vmatpush.msra.mxu3 %v73_v59  ;;  %176 = vmatpush.msra.mxu2 %v56_v61 }
  0x22   :  { %131 = vmatmul.f32.vlgmr.msra.gmra.mxu0 %v14_v62  ;;  %177 = vmatmul.f32.vlgmr.msra.gmra.mxu2 %v16_v63 }
  0x23   :  { %153 = vmatpush.msra.mxu1 %v40_v0  ;;  %199 = vmatpush.msra.mxu3 %v72_v1 }
  0x24   :  { %215 = vmatpush.msrb.mxu0 %v95_v2  ;;  %154 = vmatmul.f32.vlgmr.msra.gmra.mxu1 %v15_v3 }
  0x25   :  { %200 = vmatmul.f32.vlgmr.msra.gmra.mxu3 %v17_v4  ;;  %238 = vmatpush.msrb.mxu1 %v95_v2 }
  0x26   :  { %216 = vmatpush.msrb.mxu0 %v94_v5  ;;  %247 = vset.pattern.permute.xlu0 %v248_v8 }
  0x27   :  { %239 = vmatpush.msrb.mxu1 %v94_v5  ;;  %100 = vperm.xlu0 %247, %v96_v6  }
  0x28   :  { %217 = vmatpush.msrb.mxu0 %v93_v7 }
  0x29   :  { %240 = vmatpush.msrb.mxu1 %v93_v7 }
  0x2a   :  { %218 = vmatpush.msrb.mxu0 %v92_v9  ;;  %180 = vmatmul.f32.gmra.mxu2 %v21_v10 }
  0x2b   :  { %134 = vmatmul.f32.gmra.mxu0 %v19_v11  ;;  %241 = vmatpush.msrb.mxu1 %v92_v9 }
  0x2c   :  { %219 = vmatpush.msrb.mxu0 %v91_v12  ;;  %157 = vmatmul.f32.gmra.mxu1 %v20_v13 }
  0x2d   :  { %203 = vmatmul.f32.gmra.mxu3 %v22_v14  ;;  %242 = vmatpush.msrb.mxu1 %v91_v12 }
  0x2e   :  { %220 = vmatpush.msrb.mxu0 %v90_v15 }
  0x2f   :  { %243 = vmatpush.msrb.mxu1 %v90_v15  ;;  %105 = vperm.xlu0 %247, %v97_v16  }
  0x30   :  { %221 = vmatpush.msrb.mxu0 %v89_v17 }
  0x31   :  { %244 = vmatpush.msrb.mxu1 %v89_v17 }
  0x32   :  { %222 = vmatpush.msrb.mxu0 %v88_v18 }
  0x33   :  { %245 = vmatpush.msrb.mxu1 %v88_v18  ;;  %236 = vmatmul.msk.f32.vlgmr.msrb.gmra.mxu0 %vm108_vm0, %v18_v19 }
  0x34   :  { %237 = vmatmul.msk.f32.vlgmr.msrb.gmra.mxu1 %vm108_vm0, %v23_v20 }
  0x99   :  { %v101_v21 = vpop.permute.xlu0 %100 }
  0x9f   :  { %v132_v22 = vpop.f32.mrf.mxu0 }
  0xa0   :  { %v133_v24 = vadd.f32 %v132_v22, %v101_v21 }
  0xa1   :  { %v155_v23 = vpop.f32.mrf.mxu1  ;;  %v106_v26 = vpop.permute.xlu0 %105 }
  0xa2   :  { %v156_v29 = vadd.f32 %v155_v23, %v133_v24 }
  0xa5   :  { %v178_v25 = vpop.f32.mrf.mxu2 }
  0xa6   :  { %v179_v32 = vadd.f32 %v178_v25, %v156_v29 }
  0xa8   :  { %v135_v27 = vpop.f32.mrf.mxu0  ;;  %v201_v28 = vpop.f32.mrf.mxu3 }
  0xa9   :  { %v136_v30 = vadd.f32 %v135_v27, %v106_v26  ;;  %v158_v31 = vpop.f32.mrf.mxu1  ;;  %v202_v36 = vadd.f32 %v201_v28, %v179_v32 }
  0xab   :  { %v159_v33 = vadd.f32 %v158_v31, %v136_v30 }
  0xad   :  { %v181_v34 = vpop.f32.mrf.mxu2 }
  0xae   :  { %v182_v35 = vadd.f32 %v181_v34, %v159_v33 }
  0xb0   :  { %v204_v37 = vpop.f32.mrf.mxu3  ;;  %v224_v38 = vpop.f32.mrf.mxu0 }
  0xb1   :  { %v205_v39 = vadd.f32 %v204_v37, %v182_v35  ;;  %v225_v40 = vadd.f32 %v224_v38, %v202_v36  ;;  %v227_v41 = vpop.f32.mrf.mxu1 }
  0xb3   :  { %230 = vst [vmem:[%s530_s3] sm:$0xff] %v225_v40  ;;  %v228_v42 = vadd.f32 %v227_v41, %v205_v39 }
  0xb5   :  { %231 = vst [vmem:[%s530_s3 + $0x8] sm:$0xff] %v228_v42 }

</bundles_post_ra>
